<compile_context>
chip_gen: v7x
topology: tpu7x:2x2x1
jax: 0.10.0
libtpu: 0.0.40
codegen_flags: <defaults>
</compile_context>

<pallas_src>
import functools
import math

import jax
import jax.numpy as jnp
from jax import lax
from jax.experimental import pallas as pl
from jax.experimental.pallas import tpu as pltpu


def _layer_norm(x, w, b, eps=1e-5):
    mu = jnp.mean(x, axis=-1, keepdims=True)
    xc = x - mu
    var = jnp.mean(xc * xc, axis=-1, keepdims=True)
    return xc * lax.rsqrt(var + eps) * w + b


def _gelu_tanh(x):
    # tanh-approximate GELU: tanh runs on the EUP (free slot alongside
    # MXU/VALU); |delta| ~1e-3 vs torch's exact erf GELU.
    c0 = jnp.float32(0.7978845608028654)   # sqrt(2/pi)
    c1 = jnp.float32(0.044715)
    return 0.5 * x * (1.0 + jnp.tanh(c0 * (x + c1 * x * x * x)))


def _enc_sa_cond_kernel(x_ref, emo_ref, spk_ref, madd_ref, keep_ref,
                        ln1w_ref, ln1b_ref, wqkv_ref, wout_ref,
                        ln2w_ref, ln2b_ref, convw_ref, convb_ref,
                        w2_ref, b2_ref, out_ref, ctx_ref,
                        *, num_heads, ksize):
    x = x_ref[0]                                   # [T, C] f32 (residual path)
    T, C = x.shape
    hd = C // num_heads

    mask_add = madd_ref[0]                         # [1, T] additive key mask
    keep = keep_ref[0]                             # [T, 1] 1=keep, 0=padded

    # ----- block 1: LN1 -> conditioned dual self-attention -> residual -----
    xn = _layer_norm(x, ln1w_ref[...], ln1b_ref[...])              # f32 [T, C]
    # emo / spk passes stacked along the time (sublane) axis so the shared
    # projection weights are streamed once with a 2T-row fill; x2 is bf16.
    x2 = jnp.concatenate([(xn + emo_ref[0]).astype(jnp.bfloat16),
                          (xn + spk_ref[0]).astype(jnp.bfloat16)], axis=0)
    qkv = jnp.dot(x2, wqkv_ref[...],
                  preferred_element_type=jnp.float32)              # [2T, 3C]
    # q scaling (hd**-0.5) is pre-folded into wqkv's Q columns on the host.
    q = qkv[:, :C].astype(jnp.bfloat16)
    k = qkv[:, C:2 * C].astype(jnp.bfloat16)
    v = qkv[:, 2 * C:].astype(jnp.bfloat16)

    # Per-head attention; contexts land in one bf16 [2T, C] scratch so a
    # single full-width out_proj matmul runs after the loop.
    for p in range(2):                 # 0 = emo pass, 1 = spk pass
        r0 = p * T
        for h in range(num_heads):
            c0 = h * hd
            qh = q[r0:r0 + T, c0:c0 + hd]
            kh = k[r0:r0 + T, c0:c0 + hd]
            vh = v[r0:r0 + T, c0:c0 + hd]
            # q @ k^T without an explicit transpose (NT dot_general).
            s = lax.dot_general(qh, kh, (((1,), (1,)), ((), ())),
                                preferred_element_type=jnp.float32)  # [T, T]
            s = s + mask_add                        # additive key-padding mask
            s = s - jnp.max(s, axis=-1, keepdims=True)
            e = jnp.exp(s)
            denom = jnp.sum(e, axis=-1, keepdims=True)
            # Deferred softmax normalization: scale the [T, hd] context rows,
            # not the [T, T] probabilities (T/hd fewer VALU multiplies);
            # reciprocal stays on the EUP slot.
            ctx = jnp.dot(e.astype(jnp.bfloat16), vh,
                          preferred_element_type=jnp.float32)        # [T, hd]
            ctx = ctx * pl.reciprocal(denom, approx=True)
            ctx_ref[r0:r0 + T, c0:c0 + hd] = ctx.astype(jnp.bfloat16)

    # One out_proj matmul with contraction C (full MXU) for both passes.
    attn = jnp.dot(ctx_ref[...], wout_ref[...],
                   preferred_element_type=jnp.float32)               # [2T, C]
    x1 = (x + attn[:T, :] + attn[T:, :]) * keep      # masked residual [T, C]

    # ----- block 2: LN2 -> Conv1d(k,SAME) as 9 accumulated matmuls -> GELU --
    xn2 = _layer_norm(x1, ln2w_ref[...], ln2b_ref[...])            # f32 [T, C]
    pad = ksize // 2
    row = lax.broadcasted_iota(jnp.int32, (T, 1), 0)
    conv_acc = None
    for kk in range(ksize):
        d = kk - pad                    # tap kk reads xn2[t + d] (zero outside)
        if d == 0:
            col = xn2
        else:
            shifted = pltpu.roll(xn2, (-d) % T, 0)   # XLU sublane rotate
            valid = (row < (T - d)) if d > 0 else (row >= (-d))
            col = jnp.where(valid, shifted, 0.0)
        tap = jnp.dot(col.astype(jnp.bfloat16), convw_ref[kk],
                      preferred_element_type=jnp.float32)            # [T, 4C]
        conv_acc = tap if conv_acc is None else conv_acc + tap
    h1 = (conv_acc + convb_ref[...]) * (ksize ** -0.5)
    g = _gelu_tanh(h1)
    h2 = jnp.dot(g.astype(jnp.bfloat16), w2_ref[...],
                 preferred_element_type=jnp.float32) + b2_ref[...]   # [T, C]
    out_ref[0] = (x1 + h2) * keep


def _vmem_limit_bytes():
    """Generation-aware VMEM budget: ~85% of physical, capped at 100 MiB."""
    try:
        cap = getattr(pltpu.get_tpu_info(), "vmem_capacity_bytes", None)
    except Exception:
        cap = None
    if not cap:
        return 48 * 1024 * 1024            # conservative fallback
    return min(int(cap * 0.85), 100 * 1024 * 1024)


def enc_sa_layer_cond(x_tbc, encoder_padding_mask, emo_cond, spk_cond, params,
                      *, num_heads, kernel_size):
    T, B, C = x_tbc.shape
    filt = params['conv_b'].shape[-1]              # 4C
    hd = C // num_heads
    scaling = hd ** -0.5

    # Residual input stays f32; conditions + all matmul weights go to bf16
    # (MXU-native inputs, f32 accumulation inside the kernel).
    x_btc = jnp.transpose(x_tbc, (1, 0, 2)).astype(jnp.float32)
    emo_btc = emo_cond.astype(jnp.bfloat16)
    spk_btc = spk_cond.astype(jnp.bfloat16)
    pad_f = encoder_padding_mask.astype(jnp.float32)
    mask_add = (pad_f * jnp.float32(-1e8))[:, None, :]   # [B, 1, T] additive
    keep = (1.0 - pad_f)[:, :, None]                     # [B, T, 1]

    # One-time weight prep: fold q scaling into the Q columns of wqkv.
    wqkv_f32 = params['w_qkv']
    wqkv = jnp.concatenate([wqkv_f32[:, :C] * scaling, wqkv_f32[:, C:]],
                           axis=-1).astype(jnp.bfloat16)             # [C, 3C]
    wout = params['w_out'].astype(jnp.bfloat16)                      # [C, C]
    convw = params['conv_w'].astype(jnp.bfloat16)                    # [K, C, 4C]
    ffn2w = params['ffn2_w'].astype(jnp.bfloat16)                    # [4C, C]

    kernel = functools.partial(_enc_sa_cond_kernel,
                               num_heads=num_heads, ksize=kernel_size)

    def batch_spec(shape):
        nd = len(shape)
        return pl.BlockSpec((1,) + shape[1:],
                            lambda b, nd=nd: (b,) + (0,) * (nd - 1))

    def run(single_buffer_weights):
        if single_buffer_weights:
            # Constant-index weight blocks: 1 buffer (no re-DMA anyway) frees
            # VMEM — decisive on v7x's 64 MiB for the [K,C,4C] conv weight.
            def full_spec(shape):
                nd = len(shape)
                return pl.BlockSpec(shape, lambda b, nd=nd: (0,) * nd,
                                    pipeline_mode=pl.Buffered(1))
        else:
            def full_spec(shape):
                nd = len(shape)
                return pl.BlockSpec(shape, lambda b, nd=nd: (0,) * nd)

        return pl.pallas_call(
            kernel,
            out_shape=jax.ShapeDtypeStruct((B, T, C), jnp.float32),
            grid=(B,),
            in_specs=[
                batch_spec((B, T, C)),                 # x (f32)
                batch_spec((B, T, C)),                 # emo_cond (bf16)
                batch_spec((B, T, C)),                 # spk_cond (bf16)
                batch_spec((B, 1, T)),                 # additive key mask
                batch_spec((B, T, 1)),                 # keep mask
                full_spec((1, C)),                     # ln1 weight
                full_spec((1, C)),                     # ln1 bias
                full_spec((C, 3 * C)),                 # in_proj weight (bf16)
                full_spec((C, C)),                     # out_proj weight (bf16)
                full_spec((1, C)),                     # ln2 weight
                full_spec((1, C)),                     # ln2 bias
                full_spec((kernel_size, C, filt)),     # conv weight (bf16)
                full_spec((1, filt)),                  # conv bias
                full_spec((filt, C)),                  # ffn_2 weight (bf16)
                full_spec((1, C)),                     # ffn_2 bias
            ],
            out_specs=batch_spec((B, T, C)),
            scratch_shapes=[pltpu.VMEM((2 * T, C), jnp.bfloat16)],  # ctx buf
            compiler_params=pltpu.CompilerParams(
                dimension_semantics=("parallel",),
                vmem_limit_bytes=_vmem_limit_bytes()),
        )(x_btc, emo_btc, spk_btc, mask_add, keep,
          params['ln1_w'], params['ln1_b'], wqkv, wout,
          params['ln2_w'], params['ln2_b'], convw, params['conv_b'],
          ffn2w, params['ffn2_b'])

    try:
        out = run(True)
    except Exception:
        # Installed JAX lacks pipeline_mode / Buffered support: double-buffered
        # weight blocks (correct, just a bit more VMEM).
        out = run(False)
    return jnp.transpose(out, (1, 0, 2))            # back to [T, B, C]


def init_params(key, c, num_heads, kernel_size):
    """Deterministic synthetic parameters matching the PyTorch module shapes."""
    filt = 4 * c
    ks = jax.random.split(key, 6)

    def xavier(k, out_dim, in_dim):
        lim = math.sqrt(6.0 / (in_dim + out_dim))
        return jax.random.uniform(k, (out_dim, in_dim), jnp.float32, -lim, lim)

    in_proj_w = xavier(ks[0], 3 * c, c)             # torch [3C, C], bias=False
    out_proj_w = xavier(ks[1], c, c)                # torch [C, C],  bias=False
    conv_bound = 1.0 / math.sqrt(c * kernel_size)
    conv_w = jax.random.uniform(ks[2], (filt, c, kernel_size), jnp.float32,
                                -conv_bound, conv_bound)   # torch [4C, C, K]
    conv_b = jax.random.uniform(ks[3], (filt,), jnp.float32,
                                -conv_bound, conv_bound)
    lin_bound = 1.0 / math.sqrt(filt)
    ffn2_w = jax.random.uniform(ks[4], (c, filt), jnp.float32,
                                -lin_bound, lin_bound)     # torch [C, 4C]
    ffn2_b = jax.random.uniform(ks[5], (c,), jnp.float32,
                                -lin_bound, lin_bound)
    return {
        'ln1_w': jnp.ones((1, c), jnp.float32),
        'ln1_b': jnp.zeros((1, c), jnp.float32),
        'w_qkv': jnp.transpose(in_proj_w),           # [C, 3C] so y = x @ W
        'w_out': jnp.transpose(out_proj_w),          # [C, C]
        'ln2_w': jnp.ones((1, c), jnp.float32),
        'ln2_b': jnp.zeros((1, c), jnp.float32),
        'conv_w': jnp.transpose(conv_w, (2, 1, 0)),  # [K, C, 4C] (per-tap [C,4C])
        'conv_b': conv_b[None, :],                   # [1, 4C]
        'ffn2_w': jnp.transpose(ffn2_w),             # [4C, C]
        'ffn2_b': ffn2_b[None, :],                   # [1, C]
    }


if __name__ == "__main__":
    B, T, C, H, K = 2, 16, 32, 2, 9
    key = jax.random.PRNGKey(0)
    kp, kx, ke, kspk = jax.random.split(key, 4)
    params = init_params(kp, C, H, K)

    x = jax.random.normal(kx, (T, B, C), jnp.float32)          # [T, B, C]
    emo_cond = 0.1 * jax.random.normal(ke, (B, T, C), jnp.float32)
    spk_cond = 0.1 * jax.random.normal(kspk, (B, T, C), jnp.float32)
    # Last 4 positions of batch element 1 are padding.
    encoder_padding_mask = jnp.zeros((B, T), jnp.bool_).at[1, T - 4:].set(True)

    out = enc_sa_layer_cond(x, encoder_padding_mask, emo_cond, spk_cond,
                            params, num_heads=H, kernel_size=K)
    jax.block_until_ready(out)
    assert out.shape == (T, B, C)
    assert bool(jnp.all(jnp.isfinite(out)))
    # Padded time steps must be exactly zero (masked residual).
    assert bool(jnp.all(out[T - 4:, 1, :] == 0.0))
    print("KERNEL_OK")
</pallas_src>

<mosaic_0001>
module attributes {stable_mosaic.version = 11 : i64} {
  func.func @_enc_sa_cond_kernel(%arg0: i32, %arg1: memref<1x16x32xf32, #tpu.memory_space<vmem>>, %arg2: memref<1x16x32xbf16, #tpu.memory_space<vmem>>, %arg3: memref<1x16x32xbf16, #tpu.memory_space<vmem>>, %arg4: memref<1x1x16xf32, #tpu.memory_space<vmem>>, %arg5: memref<1x16x1xf32, #tpu.memory_space<vmem>>, %arg6: memref<1x32xf32, #tpu.memory_space<vmem>>, %arg7: memref<1x32xf32, #tpu.memory_space<vmem>>, %arg8: memref<32x96xbf16, #tpu.memory_space<vmem>>, %arg9: memref<32x32xbf16, #tpu.memory_space<vmem>>, %arg10: memref<1x32xf32, #tpu.memory_space<vmem>>, %arg11: memref<1x32xf32, #tpu.memory_space<vmem>>, %arg12: memref<9x32x128xbf16, #tpu.memory_space<vmem>>, %arg13: memref<1x128xf32, #tpu.memory_space<vmem>>, %arg14: memref<128x32xbf16, #tpu.memory_space<vmem>>, %arg15: memref<1x32xf32, #tpu.memory_space<vmem>>, %arg16: memref<1x16x32xf32, #tpu.memory_space<vmem>>, %arg17: memref<32x32xbf16, #tpu.memory_space<vmem>>) attributes {dimension_semantics = [#tpu.dimension_semantics<parallel>], iteration_bounds = array<i64: 2>, scalar_prefetch = 0 : i64, scratch_operands = 1 : i64, tpu.core_type = #tpu.core_type<tc>, window_params = [{transform_indices = @transform_0, window_bounds = array<i64: 1, 16, 32>}, {transform_indices = @transform_1, window_bounds = array<i64: 1, 16, 32>}, {transform_indices = @transform_2, window_bounds = array<i64: 1, 16, 32>}, {transform_indices = @transform_3, window_bounds = array<i64: 1, 1, 16>}, {transform_indices = @transform_4, window_bounds = array<i64: 1, 16, 1>}, {pipeline_mode = #tpu.pipeline_mode<synchronous>, transform_indices = @transform_5, window_bounds = array<i64: 1, 32>}, {pipeline_mode = #tpu.pipeline_mode<synchronous>, transform_indices = @transform_6, window_bounds = array<i64: 1, 32>}, {pipeline_mode = #tpu.pipeline_mode<synchronous>, transform_indices = @transform_7, window_bounds = array<i64: 32, 96>}, {pipeline_mode = #tpu.pipeline_mode<synchronous>, transform_indices = @transform_8, window_bounds = array<i64: 32, 32>}, {pipeline_mode = #tpu.pipeline_mode<synchronous>, transform_indices = @transform_9, window_bounds = array<i64: 1, 32>}, {pipeline_mode = #tpu.pipeline_mode<synchronous>, transform_indices = @transform_10, window_bounds = array<i64: 1, 32>}, {pipeline_mode = #tpu.pipeline_mode<synchronous>, transform_indices = @transform_11, window_bounds = array<i64: 9, 32, 128>}, {pipeline_mode = #tpu.pipeline_mode<synchronous>, transform_indices = @transform_12, window_bounds = array<i64: 1, 128>}, {pipeline_mode = #tpu.pipeline_mode<synchronous>, transform_indices = @transform_13, window_bounds = array<i64: 128, 32>}, {pipeline_mode = #tpu.pipeline_mode<synchronous>, transform_indices = @transform_14, window_bounds = array<i64: 1, 32>}, {transform_indices = @transform_15, window_bounds = array<i64: 1, 16, 32>}]} {
    %c0 = arith.constant 0 : index
    %c0_0 = arith.constant 0 : index
    %c0_1 = arith.constant 0 : index
    %0 = vector.load %arg1[%c0, %c0_0, %c0_1] : memref<1x16x32xf32, #tpu.memory_space<vmem>>, vector<1x16x32xf32>
    %1 = vector.shape_cast %0 : vector<1x16x32xf32> to vector<16x32xf32>
    %c0_2 = arith.constant 0 : index
    %c0_3 = arith.constant 0 : index
    %c0_4 = arith.constant 0 : index
    %2 = vector.load %arg4[%c0_2, %c0_3, %c0_4] : memref<1x1x16xf32, #tpu.memory_space<vmem>>, vector<1x1x16xf32>
    %3 = vector.shape_cast %2 : vector<1x1x16xf32> to vector<1x16xf32>
    %c0_5 = arith.constant 0 : index
    %c0_6 = arith.constant 0 : index
    %c0_7 = arith.constant 0 : index
    %4 = vector.load %arg5[%c0_5, %c0_6, %c0_7] : memref<1x16x1xf32, #tpu.memory_space<vmem>>, vector<1x16x1xf32>
    %5 = vector.shape_cast %4 : vector<1x16x1xf32> to vector<16x1xf32>
    %c0_8 = arith.constant 0 : index
    %c0_9 = arith.constant 0 : index
    %6 = vector.load %arg6[%c0_8, %c0_9] : memref<1x32xf32, #tpu.memory_space<vmem>>, vector<1x32xf32>
    %c0_10 = arith.constant 0 : index
    %c0_11 = arith.constant 0 : index
    %7 = vector.load %arg7[%c0_10, %c0_11] : memref<1x32xf32, #tpu.memory_space<vmem>>, vector<1x32xf32>
    %cst = arith.constant dense<0.000000e+00> : vector<16xf32>
    %8 = vector.multi_reduction <add>, %1, %cst [1] : vector<16x32xf32> to vector<16xf32>
    %9 = vector.shape_cast %8 : vector<16xf32> to vector<16x1xf32>
    %cst_12 = arith.constant 3.200000e+01 : f32
    %10 = vector.broadcast %cst_12 : f32 to vector<16x1xf32>
    %11 = arith.divf %9, %10 : vector<16x1xf32>
    %12 = vector.broadcast %11 : vector<16x1xf32> to vector<16x32xf32>
    %13 = arith.subf %1, %12 : vector<16x32xf32>
    %14 = arith.mulf %13, %13 : vector<16x32xf32>
    %cst_13 = arith.constant dense<0.000000e+00> : vector<16xf32>
    %15 = vector.multi_reduction <add>, %14, %cst_13 [1] : vector<16x32xf32> to vector<16xf32>
    %16 = vector.shape_cast %15 : vector<16xf32> to vector<16x1xf32>
    %cst_14 = arith.constant 3.200000e+01 : f32
    %17 = vector.broadcast %cst_14 : f32 to vector<16x1xf32>
    %18 = arith.divf %16, %17 : vector<16x1xf32>
    %cst_15 = arith.constant 9.99999974E-6 : f32
    %19 = vector.broadcast %cst_15 : f32 to vector<16x1xf32>
    %20 = arith.addf %18, %19 : vector<16x1xf32>
    %21 = math.rsqrt %20 : vector<16x1xf32>
    %22 = vector.broadcast %21 : vector<16x1xf32> to vector<16x32xf32>
    %23 = arith.mulf %13, %22 : vector<16x32xf32>
    %24 = vector.broadcast %6 : vector<1x32xf32> to vector<16x32xf32>
    %25 = arith.mulf %23, %24 : vector<16x32xf32>
    %26 = vector.broadcast %7 : vector<1x32xf32> to vector<16x32xf32>
    %27 = arith.addf %25, %26 : vector<16x32xf32>
    %c0_16 = arith.constant 0 : index
    %c0_17 = arith.constant 0 : index
    %c0_18 = arith.constant 0 : index
    %28 = vector.load %arg2[%c0_16, %c0_17, %c0_18] : memref<1x16x32xbf16, #tpu.memory_space<vmem>>, vector<1x16x32xbf16>
    %29 = vector.shape_cast %28 : vector<1x16x32xbf16> to vector<16x32xbf16>
    %30 = arith.extf %29 : vector<16x32xbf16> to vector<16x32xf32>
    %31 = arith.addf %27, %30 : vector<16x32xf32>
    %32 = arith.truncf %31 : vector<16x32xf32> to vector<16x32xbf16>
    %c0_19 = arith.constant 0 : index
    %c0_20 = arith.constant 0 : index
    %c0_21 = arith.constant 0 : index
    %33 = vector.load %arg3[%c0_19, %c0_20, %c0_21] : memref<1x16x32xbf16, #tpu.memory_space<vmem>>, vector<1x16x32xbf16>
    %34 = vector.shape_cast %33 : vector<1x16x32xbf16> to vector<16x32xbf16>
    %35 = arith.extf %34 : vector<16x32xbf16> to vector<16x32xf32>
    %36 = arith.addf %27, %35 : vector<16x32xf32>
    %37 = arith.truncf %36 : vector<16x32xf32> to vector<16x32xbf16>
    %38 = tpu.concatenate %32, %37 in 0 : vector<16x32xbf16>, vector<16x32xbf16> -> vector<32x32xbf16>
    %c0_22 = arith.constant 0 : index
    %c0_23 = arith.constant 0 : index
    %39 = vector.load %arg8[%c0_22, %c0_23] : memref<32x96xbf16, #tpu.memory_space<vmem>>, vector<32x96xbf16>
    %cst_24 = arith.constant dense<0.000000e+00> : vector<32x96xf32>
    %40 = tpu.matmul %38, %39, %cst_24 {dimension_numbers = #tpu.dot_dimension_numbers<[1], [0], [0], [1], [0, 0, 1, 1], [], []>} : vector<32x32xbf16>, vector<32x96xbf16>, vector<32x96xf32> -> vector<32x96xf32>
    %41 = vector.extract_strided_slice %40 {offsets = [0, 0], sizes = [32, 32], strides = [1, 1]} : vector<32x96xf32> to vector<32x32xf32>
    %42 = arith.truncf %41 : vector<32x32xf32> to vector<32x32xbf16>
    %43 = vector.extract_strided_slice %40 {offsets = [0, 32], sizes = [32, 32], strides = [1, 1]} : vector<32x96xf32> to vector<32x32xf32>
    %44 = arith.truncf %43 : vector<32x32xf32> to vector<32x32xbf16>
    %45 = vector.extract_strided_slice %40 {offsets = [0, 64], sizes = [32, 32], strides = [1, 1]} : vector<32x96xf32> to vector<32x32xf32>
    %46 = arith.truncf %45 : vector<32x32xf32> to vector<32x32xbf16>
    %47 = vector.extract_strided_slice %42 {offsets = [0, 0], sizes = [16, 16], strides = [1, 1]} : vector<32x32xbf16> to vector<16x16xbf16>
    %48 = vector.extract_strided_slice %44 {offsets = [0, 0], sizes = [16, 16], strides = [1, 1]} : vector<32x32xbf16> to vector<16x16xbf16>
    %49 = vector.extract_strided_slice %46 {offsets = [0, 0], sizes = [16, 16], strides = [1, 1]} : vector<32x32xbf16> to vector<16x16xbf16>
    %cst_25 = arith.constant dense<0.000000e+00> : vector<16x16xf32>
    %50 = tpu.matmul %47, %48, %cst_25 {dimension_numbers = #tpu.dot_dimension_numbers<[1], [1], [0], [0], [0, 0, 1, 0], [], []>} : vector<16x16xbf16>, vector<16x16xbf16>, vector<16x16xf32> -> vector<16x16xf32>
    %51 = vector.broadcast %3 : vector<1x16xf32> to vector<16x16xf32>
    %52 = arith.addf %50, %51 : vector<16x16xf32>
    %cst_26 = arith.constant dense<0xFF800000> : vector<16xf32>
    %53 = vector.multi_reduction <maximumf>, %52, %cst_26 [1] : vector<16x16xf32> to vector<16xf32>
    %54 = vector.shape_cast %53 : vector<16xf32> to vector<16x1xf32>
    %55 = vector.broadcast %54 : vector<16x1xf32> to vector<16x16xf32>
    %56 = arith.subf %52, %55 : vector<16x16xf32>
    %57 = math.exp %56 : vector<16x16xf32>
    %cst_27 = arith.constant dense<0.000000e+00> : vector<16xf32>
    %58 = vector.multi_reduction <add>, %57, %cst_27 [1] : vector<16x16xf32> to vector<16xf32>
    %59 = vector.shape_cast %58 : vector<16xf32> to vector<16x1xf32>
    %60 = arith.truncf %57 : vector<16x16xf32> to vector<16x16xbf16>
    %cst_28 = arith.constant dense<0.000000e+00> : vector<16x16xf32>
    %61 = tpu.matmul %60, %49, %cst_28 {dimension_numbers = #tpu.dot_dimension_numbers<[1], [0], [0], [1], [0, 0, 1, 1], [], []>} : vector<16x16xbf16>, vector<16x16xbf16>, vector<16x16xf32> -> vector<16x16xf32>
    %62 = tpu.reciprocal %59 {approx = true} : vector<16x1xf32> -> vector<16x1xf32>
    %63 = vector.broadcast %62 : vector<16x1xf32> to vector<16x16xf32>
    %64 = arith.mulf %61, %63 : vector<16x16xf32>
    %65 = arith.truncf %64 : vector<16x16xf32> to vector<16x16xbf16>
    %c0_29 = arith.constant 0 : index
    %c0_30 = arith.constant 0 : index
    %66 = vector.load %arg17[%c0_29, %c0_30] : memref<32x32xbf16, #tpu.memory_space<vmem>>, vector<16x16xbf16>
    tpu.vector_store %arg17[%c0_29, %c0_30], %65 {strides = array<i32>} : memref<32x32xbf16, #tpu.memory_space<vmem>>, vector<16x16xbf16>,
    %67 = vector.extract_strided_slice %42 {offsets = [0, 16], sizes = [16, 16], strides = [1, 1]} : vector<32x32xbf16> to vector<16x16xbf16>
    %68 = vector.extract_strided_slice %44 {offsets = [0, 16], sizes = [16, 16], strides = [1, 1]} : vector<32x32xbf16> to vector<16x16xbf16>
    %69 = vector.extract_strided_slice %46 {offsets = [0, 16], sizes = [16, 16], strides = [1, 1]} : vector<32x32xbf16> to vector<16x16xbf16>
    %cst_31 = arith.constant dense<0.000000e+00> : vector<16x16xf32>
    %70 = tpu.matmul %67, %68, %cst_31 {dimension_numbers = #tpu.dot_dimension_numbers<[1], [1], [0], [0], [0, 0, 1, 0], [], []>} : vector<16x16xbf16>, vector<16x16xbf16>, vector<16x16xf32> -> vector<16x16xf32>
    %71 = vector.broadcast %3 : vector<1x16xf32> to vector<16x16xf32>
    %72 = arith.addf %70, %71 : vector<16x16xf32>
    %cst_32 = arith.constant dense<0xFF800000> : vector<16xf32>
    %73 = vector.multi_reduction <maximumf>, %72, %cst_32 [1] : vector<16x16xf32> to vector<16xf32>
    %74 = vector.shape_cast %73 : vector<16xf32> to vector<16x1xf32>
    %75 = vector.broadcast %74 : vector<16x1xf32> to vector<16x16xf32>
    %76 = arith.subf %72, %75 : vector<16x16xf32>
    %77 = math.exp %76 : vector<16x16xf32>
    %cst_33 = arith.constant dense<0.000000e+00> : vector<16xf32>
    %78 = vector.multi_reduction <add>, %77, %cst_33 [1] : vector<16x16xf32> to vector<16xf32>
    %79 = vector.shape_cast %78 : vector<16xf32> to vector<16x1xf32>
    %80 = arith.truncf %77 : vector<16x16xf32> to vector<16x16xbf16>
    %cst_34 = arith.constant dense<0.000000e+00> : vector<16x16xf32>
    %81 = tpu.matmul %80, %69, %cst_34 {dimension_numbers = #tpu.dot_dimension_numbers<[1], [0], [0], [1], [0, 0, 1, 1], [], []>} : vector<16x16xbf16>, vector<16x16xbf16>, vector<16x16xf32> -> vector<16x16xf32>
    %82 = tpu.reciprocal %79 {approx = true} : vector<16x1xf32> -> vector<16x1xf32>
    %83 = vector.broadcast %82 : vector<16x1xf32> to vector<16x16xf32>
    %84 = arith.mulf %81, %83 : vector<16x16xf32>
    %85 = arith.truncf %84 : vector<16x16xf32> to vector<16x16xbf16>
    %c0_35 = arith.constant 0 : index
    %c16 = arith.constant 16 : index
    %86 = vector.load %arg17[%c0_35, %c16] : memref<32x32xbf16, #tpu.memory_space<vmem>>, vector<16x16xbf16>
    tpu.vector_store %arg17[%c0_35, %c16], %85 {strides = array<i32>} : memref<32x32xbf16, #tpu.memory_space<vmem>>, vector<16x16xbf16>,
    %87 = vector.extract_strided_slice %42 {offsets = [16, 0], sizes = [16, 16], strides = [1, 1]} : vector<32x32xbf16> to vector<16x16xbf16>
    %88 = vector.extract_strided_slice %44 {offsets = [16, 0], sizes = [16, 16], strides = [1, 1]} : vector<32x32xbf16> to vector<16x16xbf16>
    %89 = vector.extract_strided_slice %46 {offsets = [16, 0], sizes = [16, 16], strides = [1, 1]} : vector<32x32xbf16> to vector<16x16xbf16>
    %cst_36 = arith.constant dense<0.000000e+00> : vector<16x16xf32>
    %90 = tpu.matmul %87, %88, %cst_36 {dimension_numbers = #tpu.dot_dimension_numbers<[1], [1], [0], [0], [0, 0, 1, 0], [], []>} : vector<16x16xbf16>, vector<16x16xbf16>, vector<16x16xf32> -> vector<16x16xf32>
    %91 = vector.broadcast %3 : vector<1x16xf32> to vector<16x16xf32>
    %92 = arith.addf %90, %91 : vector<16x16xf32>
    %cst_37 = arith.constant dense<0xFF800000> : vector<16xf32>
    %93 = vector.multi_reduction <maximumf>, %92, %cst_37 [1] : vector<16x16xf32> to vector<16xf32>
    %94 = vector.shape_cast %93 : vector<16xf32> to vector<16x1xf32>
    %95 = vector.broadcast %94 : vector<16x1xf32> to vector<16x16xf32>
    %96 = arith.subf %92, %95 : vector<16x16xf32>
    %97 = math.exp %96 : vector<16x16xf32>
    %cst_38 = arith.constant dense<0.000000e+00> : vector<16xf32>
    %98 = vector.multi_reduction <add>, %97, %cst_38 [1] : vector<16x16xf32> to vector<16xf32>
    %99 = vector.shape_cast %98 : vector<16xf32> to vector<16x1xf32>
    %100 = arith.truncf %97 : vector<16x16xf32> to vector<16x16xbf16>
    %cst_39 = arith.constant dense<0.000000e+00> : vector<16x16xf32>
    %101 = tpu.matmul %100, %89, %cst_39 {dimension_numbers = #tpu.dot_dimension_numbers<[1], [0], [0], [1], [0, 0, 1, 1], [], []>} : vector<16x16xbf16>, vector<16x16xbf16>, vector<16x16xf32> -> vector<16x16xf32>
    %102 = tpu.reciprocal %99 {approx = true} : vector<16x1xf32> -> vector<16x1xf32>
    %103 = vector.broadcast %102 : vector<16x1xf32> to vector<16x16xf32>
    %104 = arith.mulf %101, %103 : vector<16x16xf32>
    %105 = arith.truncf %104 : vector<16x16xf32> to vector<16x16xbf16>
    %c16_40 = arith.constant 16 : index
    %c0_41 = arith.constant 0 : index
    %106 = vector.load %arg17[%c16_40, %c0_41] : memref<32x32xbf16, #tpu.memory_space<vmem>>, vector<16x16xbf16>
    tpu.vector_store %arg17[%c16_40, %c0_41], %105 {strides = array<i32>} : memref<32x32xbf16, #tpu.memory_space<vmem>>, vector<16x16xbf16>,
    %107 = vector.extract_strided_slice %42 {offsets = [16, 16], sizes = [16, 16], strides = [1, 1]} : vector<32x32xbf16> to vector<16x16xbf16>
    %108 = vector.extract_strided_slice %44 {offsets = [16, 16], sizes = [16, 16], strides = [1, 1]} : vector<32x32xbf16> to vector<16x16xbf16>
    %109 = vector.extract_strided_slice %46 {offsets = [16, 16], sizes = [16, 16], strides = [1, 1]} : vector<32x32xbf16> to vector<16x16xbf16>
    %cst_42 = arith.constant dense<0.000000e+00> : vector<16x16xf32>
    %110 = tpu.matmul %107, %108, %cst_42 {dimension_numbers = #tpu.dot_dimension_numbers<[1], [1], [0], [0], [0, 0, 1, 0], [], []>} : vector<16x16xbf16>, vector<16x16xbf16>, vector<16x16xf32> -> vector<16x16xf32>
    %111 = vector.broadcast %3 : vector<1x16xf32> to vector<16x16xf32>
    %112 = arith.addf %110, %111 : vector<16x16xf32>
    %cst_43 = arith.constant dense<0xFF800000> : vector<16xf32>
    %113 = vector.multi_reduction <maximumf>, %112, %cst_43 [1] : vector<16x16xf32> to vector<16xf32>
    %114 = vector.shape_cast %113 : vector<16xf32> to vector<16x1xf32>
    %115 = vector.broadcast %114 : vector<16x1xf32> to vector<16x16xf32>
    %116 = arith.subf %112, %115 : vector<16x16xf32>
    %117 = math.exp %116 : vector<16x16xf32>
    %cst_44 = arith.constant dense<0.000000e+00> : vector<16xf32>
    %118 = vector.multi_reduction <add>, %117, %cst_44 [1] : vector<16x16xf32> to vector<16xf32>
    %119 = vector.shape_cast %118 : vector<16xf32> to vector<16x1xf32>
    %120 = arith.truncf %117 : vector<16x16xf32> to vector<16x16xbf16>
    %cst_45 = arith.constant dense<0.000000e+00> : vector<16x16xf32>
    %121 = tpu.matmul %120, %109, %cst_45 {dimension_numbers = #tpu.dot_dimension_numbers<[1], [0], [0], [1], [0, 0, 1, 1], [], []>} : vector<16x16xbf16>, vector<16x16xbf16>, vector<16x16xf32> -> vector<16x16xf32>
    %122 = tpu.reciprocal %119 {approx = true} : vector<16x1xf32> -> vector<16x1xf32>
    %123 = vector.broadcast %122 : vector<16x1xf32> to vector<16x16xf32>
    %124 = arith.mulf %121, %123 : vector<16x16xf32>
    %125 = arith.truncf %124 : vector<16x16xf32> to vector<16x16xbf16>
    %c16_46 = arith.constant 16 : index
    %c16_47 = arith.constant 16 : index
    %126 = vector.load %arg17[%c16_46, %c16_47] : memref<32x32xbf16, #tpu.memory_space<vmem>>, vector<16x16xbf16>
    tpu.vector_store %arg17[%c16_46, %c16_47], %125 {strides = array<i32>} : memref<32x32xbf16, #tpu.memory_space<vmem>>, vector<16x16xbf16>,
    %c0_48 = arith.constant 0 : index
    %c0_49 = arith.constant 0 : index
    %127 = vector.load %arg17[%c0_48, %c0_49] : memref<32x32xbf16, #tpu.memory_space<vmem>>, vector<32x32xbf16>
    %c0_50 = arith.constant 0 : index
    %c0_51 = arith.constant 0 : index
    %128 = vector.load %arg9[%c0_50, %c0_51] : memref<32x32xbf16, #tpu.memory_space<vmem>>, vector<32x32xbf16>
    %cst_52 = arith.constant dense<0.000000e+00> : vector<32x32xf32>
    %129 = tpu.matmul %127, %128, %cst_52 {dimension_numbers = #tpu.dot_dimension_numbers<[1], [0], [0], [1], [0, 0, 1, 1], [], []>} : vector<32x32xbf16>, vector<32x32xbf16>, vector<32x32xf32> -> vector<32x32xf32>
    %130 = vector.extract_strided_slice %129 {offsets = [0, 0], sizes = [16, 32], strides = [1, 1]} : vector<32x32xf32> to vector<16x32xf32>
    %131 = arith.addf %1, %130 : vector<16x32xf32>
    %132 = vector.extract_strided_slice %129 {offsets = [16, 0], sizes = [16, 32], strides = [1, 1]} : vector<32x32xf32> to vector<16x32xf32>
    %133 = arith.addf %131, %132 : vector<16x32xf32>
    %134 = vector.broadcast %5 : vector<16x1xf32> to vector<16x32xf32>
    %135 = arith.mulf %133, %134 : vector<16x32xf32>
    %c0_53 = arith.constant 0 : index
    %c0_54 = arith.constant 0 : index
    %136 = vector.load %arg10[%c0_53, %c0_54] : memref<1x32xf32, #tpu.memory_space<vmem>>, vector<1x32xf32>
    %c0_55 = arith.constant 0 : index
    %c0_56 = arith.constant 0 : index
    %137 = vector.load %arg11[%c0_55, %c0_56] : memref<1x32xf32, #tpu.memory_space<vmem>>, vector<1x32xf32>
    %cst_57 = arith.constant dense<0.000000e+00> : vector<16xf32>
    %138 = vector.multi_reduction <add>, %135, %cst_57 [1] : vector<16x32xf32> to vector<16xf32>
    %139 = vector.shape_cast %138 : vector<16xf32> to vector<16x1xf32>
    %cst_58 = arith.constant 3.200000e+01 : f32
    %140 = vector.broadcast %cst_58 : f32 to vector<16x1xf32>
    %141 = arith.divf %139, %140 : vector<16x1xf32>
    %142 = vector.broadcast %141 : vector<16x1xf32> to vector<16x32xf32>
    %143 = arith.subf %135, %142 : vector<16x32xf32>
    %144 = arith.mulf %143, %143 : vector<16x32xf32>
    %cst_59 = arith.constant dense<0.000000e+00> : vector<16xf32>
    %145 = vector.multi_reduction <add>, %144, %cst_59 [1] : vector<16x32xf32> to vector<16xf32>
    %146 = vector.shape_cast %145 : vector<16xf32> to vector<16x1xf32>
    %cst_60 = arith.constant 3.200000e+01 : f32
    %147 = vector.broadcast %cst_60 : f32 to vector<16x1xf32>
    %148 = arith.divf %146, %147 : vector<16x1xf32>
    %cst_61 = arith.constant 9.99999974E-6 : f32
    %149 = vector.broadcast %cst_61 : f32 to vector<16x1xf32>
    %150 = arith.addf %148, %149 : vector<16x1xf32>
    %151 = math.rsqrt %150 : vector<16x1xf32>
    %152 = vector.broadcast %151 : vector<16x1xf32> to vector<16x32xf32>
    %153 = arith.mulf %143, %152 : vector<16x32xf32>
    %154 = vector.broadcast %136 : vector<1x32xf32> to vector<16x32xf32>
    %155 = arith.mulf %153, %154 : vector<16x32xf32>
    %156 = vector.broadcast %137 : vector<1x32xf32> to vector<16x32xf32>
    %157 = arith.addf %155, %156 : vector<16x32xf32>
    %158 = tpu.iota {dimensions = array<i32: 0>} : vector<16x1xi32>
    %c4_i32 = arith.constant 4 : i32
    %159 = tpu.dynamic_rotate %157 by %c4_i32 dim 0 : vector<16x32xf32>, i32 -> vector<16x32xf32>
    %c4_i32_62 = arith.constant 4 : i32
    %160 = vector.broadcast %c4_i32_62 : i32 to vector<16x1xi32>
    %161 = arith.cmpi sge, %158, %160 : vector<16x1xi32>
    %cst_63 = arith.constant 0.000000e+00 : f32
    %162 = vector.shape_cast %161 : vector<16x1xi1> to vector<16x1xi1>
    %163 = vector.broadcast %162 : vector<16x1xi1> to vector<16x32xi1>
    %164 = vector.broadcast %cst_63 : f32 to vector<16x32xf32>
    %165 = arith.select %163, %159, %164 : vector<16x32xi1>, vector<16x32xf32>
    %166 = arith.truncf %165 : vector<16x32xf32> to vector<16x32xbf16>
    %c0_64 = arith.constant 0 : index
    %c0_65 = arith.constant 0 : index
    %c0_66 = arith.constant 0 : index
    %167 = vector.load %arg12[%c0_64, %c0_65, %c0_66] : memref<9x32x128xbf16, #tpu.memory_space<vmem>>, vector<1x32x128xbf16>
    %168 = vector.shape_cast %167 : vector<1x32x128xbf16> to vector<32x128xbf16>
    %cst_67 = arith.constant dense<0.000000e+00> : vector<16x128xf32>
    %169 = tpu.matmul %166, %168, %cst_67 {dimension_numbers = #tpu.dot_dimension_numbers<[1], [0], [0], [1], [0, 0, 1, 1], [], []>} : vector<16x32xbf16>, vector<32x128xbf16>, vector<16x128xf32> -> vector<16x128xf32>
    %c3_i32 = arith.constant 3 : i32
    %170 = tpu.dynamic_rotate %157 by %c3_i32 dim 0 : vector<16x32xf32>, i32 -> vector<16x32xf32>
    %c3_i32_68 = arith.constant 3 : i32
    %171 = vector.broadcast %c3_i32_68 : i32 to vector<16x1xi32>
    %172 = arith.cmpi sge, %158, %171 : vector<16x1xi32>
    %cst_69 = arith.constant 0.000000e+00 : f32
    %173 = vector.shape_cast %172 : vector<16x1xi1> to vector<16x1xi1>
    %174 = vector.broadcast %173 : vector<16x1xi1> to vector<16x32xi1>
    %175 = vector.broadcast %cst_69 : f32 to vector<16x32xf32>
    %176 = arith.select %174, %170, %175 : vector<16x32xi1>, vector<16x32xf32>
    %177 = arith.truncf %176 : vector<16x32xf32> to vector<16x32xbf16>
    %c1 = arith.constant 1 : index
    %c0_70 = arith.constant 0 : index
    %c0_71 = arith.constant 0 : index
    %178 = vector.load %arg12[%c1, %c0_70, %c0_71] : memref<9x32x128xbf16, #tpu.memory_space<vmem>>, vector<1x32x128xbf16>
    %179 = vector.shape_cast %178 : vector<1x32x128xbf16> to vector<32x128xbf16>
    %cst_72 = arith.constant dense<0.000000e+00> : vector<16x128xf32>
    %180 = tpu.matmul %177, %179, %cst_72 {dimension_numbers = #tpu.dot_dimension_numbers<[1], [0], [0], [1], [0, 0, 1, 1], [], []>} : vector<16x32xbf16>, vector<32x128xbf16>, vector<16x128xf32> -> vector<16x128xf32>
    %181 = arith.addf %169, %180 : vector<16x128xf32>
    %c2_i32 = arith.constant 2 : i32
    %182 = tpu.dynamic_rotate %157 by %c2_i32 dim 0 : vector<16x32xf32>, i32 -> vector<16x32xf32>
    %c2_i32_73 = arith.constant 2 : i32
    %183 = vector.broadcast %c2_i32_73 : i32 to vector<16x1xi32>
    %184 = arith.cmpi sge, %158, %183 : vector<16x1xi32>
    %cst_74 = arith.constant 0.000000e+00 : f32
    %185 = vector.shape_cast %184 : vector<16x1xi1> to vector<16x1xi1>
    %186 = vector.broadcast %185 : vector<16x1xi1> to vector<16x32xi1>
    %187 = vector.broadcast %cst_74 : f32 to vector<16x32xf32>
    %188 = arith.select %186, %182, %187 : vector<16x32xi1>, vector<16x32xf32>
    %189 = arith.truncf %188 : vector<16x32xf32> to vector<16x32xbf16>
    %c2 = arith.constant 2 : index
    %c0_75 = arith.constant 0 : index
    %c0_76 = arith.constant 0 : index
    %190 = vector.load %arg12[%c2, %c0_75, %c0_76] : memref<9x32x128xbf16, #tpu.memory_space<vmem>>, vector<1x32x128xbf16>
    %191 = vector.shape_cast %190 : vector<1x32x128xbf16> to vector<32x128xbf16>
    %cst_77 = arith.constant dense<0.000000e+00> : vector<16x128xf32>
    %192 = tpu.matmul %189, %191, %cst_77 {dimension_numbers = #tpu.dot_dimension_numbers<[1], [0], [0], [1], [0, 0, 1, 1], [], []>} : vector<16x32xbf16>, vector<32x128xbf16>, vector<16x128xf32> -> vector<16x128xf32>
    %193 = arith.addf %181, %192 : vector<16x128xf32>
    %c1_i32 = arith.constant 1 : i32
    %194 = tpu.dynamic_rotate %157 by %c1_i32 dim 0 : vector<16x32xf32>, i32 -> vector<16x32xf32>
    %c1_i32_78 = arith.constant 1 : i32
    %195 = vector.broadcast %c1_i32_78 : i32 to vector<16x1xi32>
    %196 = arith.cmpi sge, %158, %195 : vector<16x1xi32>
    %cst_79 = arith.constant 0.000000e+00 : f32
    %197 = vector.shape_cast %196 : vector<16x1xi1> to vector<16x1xi1>
    %198 = vector.broadcast %197 : vector<16x1xi1> to vector<16x32xi1>
    %199 = vector.broadcast %cst_79 : f32 to vector<16x32xf32>
    %200 = arith.select %198, %194, %199 : vector<16x32xi1>, vector<16x32xf32>
    %201 = arith.truncf %200 : vector<16x32xf32> to vector<16x32xbf16>
    %c3 = arith.constant 3 : index
    %c0_80 = arith.constant 0 : index
    %c0_81 = arith.constant 0 : index
    %202 = vector.load %arg12[%c3, %c0_80, %c0_81] : memref<9x32x128xbf16, #tpu.memory_space<vmem>>, vector<1x32x128xbf16>
    %203 = vector.shape_cast %202 : vector<1x32x128xbf16> to vector<32x128xbf16>
    %cst_82 = arith.constant dense<0.000000e+00> : vector<16x128xf32>
    %204 = tpu.matmul %201, %203, %cst_82 {dimension_numbers = #tpu.dot_dimension_numbers<[1], [0], [0], [1], [0, 0, 1, 1], [], []>} : vector<16x32xbf16>, vector<32x128xbf16>, vector<16x128xf32> -> vector<16x128xf32>
    %205 = arith.addf %193, %204 : vector<16x128xf32>
    %206 = arith.truncf %157 : vector<16x32xf32> to vector<16x32xbf16>
    %c4 = arith.constant 4 : index
    %c0_83 = arith.constant 0 : index
    %c0_84 = arith.constant 0 : index
    %207 = vector.load %arg12[%c4, %c0_83, %c0_84] : memref<9x32x128xbf16, #tpu.memory_space<vmem>>, vector<1x32x128xbf16>
    %208 = vector.shape_cast %207 : vector<1x32x128xbf16> to vector<32x128xbf16>
    %cst_85 = arith.constant dense<0.000000e+00> : vector<16x128xf32>
    %209 = tpu.matmul %206, %208, %cst_85 {dimension_numbers = #tpu.dot_dimension_numbers<[1], [0], [0], [1], [0, 0, 1, 1], [], []>} : vector<16x32xbf16>, vector<32x128xbf16>, vector<16x128xf32> -> vector<16x128xf32>
    %210 = arith.addf %205, %209 : vector<16x128xf32>
    %c15_i32 = arith.constant 15 : i32
    %211 = tpu.dynamic_rotate %157 by %c15_i32 dim 0 : vector<16x32xf32>, i32 -> vector<16x32xf32>
    %c15_i32_86 = arith.constant 15 : i32
    %212 = vector.broadcast %c15_i32_86 : i32 to vector<16x1xi32>
    %213 = arith.cmpi slt, %158, %212 : vector<16x1xi32>
    %cst_87 = arith.constant 0.000000e+00 : f32
    %214 = vector.shape_cast %213 : vector<16x1xi1> to vector<16x1xi1>
    %215 = vector.broadcast %214 : vector<16x1xi1> to vector<16x32xi1>
    %216 = vector.broadcast %cst_87 : f32 to vector<16x32xf32>
    %217 = arith.select %215, %211, %216 : vector<16x32xi1>, vector<16x32xf32>
    %218 = arith.truncf %217 : vector<16x32xf32> to vector<16x32xbf16>
    %c5 = arith.constant 5 : index
    %c0_88 = arith.constant 0 : index
    %c0_89 = arith.constant 0 : index
    %219 = vector.load %arg12[%c5, %c0_88, %c0_89] : memref<9x32x128xbf16, #tpu.memory_space<vmem>>, vector<1x32x128xbf16>
    %220 = vector.shape_cast %219 : vector<1x32x128xbf16> to vector<32x128xbf16>
    %cst_90 = arith.constant dense<0.000000e+00> : vector<16x128xf32>
    %221 = tpu.matmul %218, %220, %cst_90 {dimension_numbers = #tpu.dot_dimension_numbers<[1], [0], [0], [1], [0, 0, 1, 1], [], []>} : vector<16x32xbf16>, vector<32x128xbf16>, vector<16x128xf32> -> vector<16x128xf32>
    %222 = arith.addf %210, %221 : vector<16x128xf32>
    %c14_i32 = arith.constant 14 : i32
    %223 = tpu.dynamic_rotate %157 by %c14_i32 dim 0 : vector<16x32xf32>, i32 -> vector<16x32xf32>
    %c14_i32_91 = arith.constant 14 : i32
    %224 = vector.broadcast %c14_i32_91 : i32 to vector<16x1xi32>
    %225 = arith.cmpi slt, %158, %224 : vector<16x1xi32>
    %cst_92 = arith.constant 0.000000e+00 : f32
    %226 = vector.shape_cast %225 : vector<16x1xi1> to vector<16x1xi1>
    %227 = vector.broadcast %226 : vector<16x1xi1> to vector<16x32xi1>
    %228 = vector.broadcast %cst_92 : f32 to vector<16x32xf32>
    %229 = arith.select %227, %223, %228 : vector<16x32xi1>, vector<16x32xf32>
    %230 = arith.truncf %229 : vector<16x32xf32> to vector<16x32xbf16>
    %c6 = arith.constant 6 : index
    %c0_93 = arith.constant 0 : index
    %c0_94 = arith.constant 0 : index
    %231 = vector.load %arg12[%c6, %c0_93, %c0_94] : memref<9x32x128xbf16, #tpu.memory_space<vmem>>, vector<1x32x128xbf16>
    %232 = vector.shape_cast %231 : vector<1x32x128xbf16> to vector<32x128xbf16>
    %cst_95 = arith.constant dense<0.000000e+00> : vector<16x128xf32>
    %233 = tpu.matmul %230, %232, %cst_95 {dimension_numbers = #tpu.dot_dimension_numbers<[1], [0], [0], [1], [0, 0, 1, 1], [], []>} : vector<16x32xbf16>, vector<32x128xbf16>, vector<16x128xf32> -> vector<16x128xf32>
    %234 = arith.addf %222, %233 : vector<16x128xf32>
    %c13_i32 = arith.constant 13 : i32
    %235 = tpu.dynamic_rotate %157 by %c13_i32 dim 0 : vector<16x32xf32>, i32 -> vector<16x32xf32>
    %c13_i32_96 = arith.constant 13 : i32
    %236 = vector.broadcast %c13_i32_96 : i32 to vector<16x1xi32>
    %237 = arith.cmpi slt, %158, %236 : vector<16x1xi32>
    %cst_97 = arith.constant 0.000000e+00 : f32
    %238 = vector.shape_cast %237 : vector<16x1xi1> to vector<16x1xi1>
    %239 = vector.broadcast %238 : vector<16x1xi1> to vector<16x32xi1>
    %240 = vector.broadcast %cst_97 : f32 to vector<16x32xf32>
    %241 = arith.select %239, %235, %240 : vector<16x32xi1>, vector<16x32xf32>
    %242 = arith.truncf %241 : vector<16x32xf32> to vector<16x32xbf16>
    %c7 = arith.constant 7 : index
    %c0_98 = arith.constant 0 : index
    %c0_99 = arith.constant 0 : index
    %243 = vector.load %arg12[%c7, %c0_98, %c0_99] : memref<9x32x128xbf16, #tpu.memory_space<vmem>>, vector<1x32x128xbf16>
    %244 = vector.shape_cast %243 : vector<1x32x128xbf16> to vector<32x128xbf16>
    %cst_100 = arith.constant dense<0.000000e+00> : vector<16x128xf32>
    %245 = tpu.matmul %242, %244, %cst_100 {dimension_numbers = #tpu.dot_dimension_numbers<[1], [0], [0], [1], [0, 0, 1, 1], [], []>} : vector<16x32xbf16>, vector<32x128xbf16>, vector<16x128xf32> -> vector<16x128xf32>
    %246 = arith.addf %234, %245 : vector<16x128xf32>
    %c12_i32 = arith.constant 12 : i32
    %247 = tpu.dynamic_rotate %157 by %c12_i32 dim 0 : vector<16x32xf32>, i32 -> vector<16x32xf32>
    %c12_i32_101 = arith.constant 12 : i32
    %248 = vector.broadcast %c12_i32_101 : i32 to vector<16x1xi32>
    %249 = arith.cmpi slt, %158, %248 : vector<16x1xi32>
    %cst_102 = arith.constant 0.000000e+00 : f32
    %250 = vector.shape_cast %249 : vector<16x1xi1> to vector<16x1xi1>
    %251 = vector.broadcast %250 : vector<16x1xi1> to vector<16x32xi1>
    %252 = vector.broadcast %cst_102 : f32 to vector<16x32xf32>
    %253 = arith.select %251, %247, %252 : vector<16x32xi1>, vector<16x32xf32>
    %254 = arith.truncf %253 : vector<16x32xf32> to vector<16x32xbf16>
    %c8 = arith.constant 8 : index
    %c0_103 = arith.constant 0 : index
    %c0_104 = arith.constant 0 : index
    %255 = vector.load %arg12[%c8, %c0_103, %c0_104] : memref<9x32x128xbf16, #tpu.memory_space<vmem>>, vector<1x32x128xbf16>
    %256 = vector.shape_cast %255 : vector<1x32x128xbf16> to vector<32x128xbf16>
    %cst_105 = arith.constant dense<0.000000e+00> : vector<16x128xf32>
    %257 = tpu.matmul %254, %256, %cst_105 {dimension_numbers = #tpu.dot_dimension_numbers<[1], [0], [0], [1], [0, 0, 1, 1], [], []>} : vector<16x32xbf16>, vector<32x128xbf16>, vector<16x128xf32> -> vector<16x128xf32>
    %258 = arith.addf %246, %257 : vector<16x128xf32>
    %c0_106 = arith.constant 0 : index
    %c0_107 = arith.constant 0 : index
    %259 = vector.load %arg13[%c0_106, %c0_107] : memref<1x128xf32, #tpu.memory_space<vmem>>, vector<1x128xf32>
    %260 = vector.broadcast %259 : vector<1x128xf32> to vector<16x128xf32>
    %261 = arith.addf %258, %260 : vector<16x128xf32>
    %cst_108 = arith.constant 0.333333343 : f32
    %262 = vector.broadcast %cst_108 : f32 to vector<16x128xf32>
    %263 = arith.mulf %261, %262 : vector<16x128xf32>
    %cst_109 = arith.constant 5.000000e-01 : f32
    %264 = vector.broadcast %cst_109 : f32 to vector<16x128xf32>
    %265 = arith.mulf %264, %263 : vector<16x128xf32>
    %cst_110 = arith.constant 4.471500e-02 : f32
    %266 = vector.broadcast %cst_110 : f32 to vector<16x128xf32>
    %267 = arith.mulf %266, %263 : vector<16x128xf32>
    %268 = arith.mulf %267, %263 : vector<16x128xf32>
    %269 = arith.mulf %268, %263 : vector<16x128xf32>
    %270 = arith.addf %263, %269 : vector<16x128xf32>
    %cst_111 = arith.constant 0.797884583 : f32
    %271 = vector.broadcast %cst_111 : f32 to vector<16x128xf32>
    %272 = arith.mulf %271, %270 : vector<16x128xf32>
    %273 = math.tanh %272 : vector<16x128xf32>
    %cst_112 = arith.constant 1.000000e+00 : f32
    %274 = vector.broadcast %cst_112 : f32 to vector<16x128xf32>
    %275 = arith.addf %274, %273 : vector<16x128xf32>
    %276 = arith.mulf %265, %275 : vector<16x128xf32>
    %277 = arith.truncf %276 : vector<16x128xf32> to vector<16x128xbf16>
    %c0_113 = arith.constant 0 : index
    %c0_114 = arith.constant 0 : index
    %278 = vector.load %arg14[%c0_113, %c0_114] : memref<128x32xbf16, #tpu.memory_space<vmem>>, vector<128x32xbf16>
    %cst_115 = arith.constant dense<0.000000e+00> : vector<16x32xf32>
    %279 = tpu.matmul %277, %278, %cst_115 {dimension_numbers = #tpu.dot_dimension_numbers<[1], [0], [0], [1], [0, 0, 1, 1], [], []>} : vector<16x128xbf16>, vector<128x32xbf16>, vector<16x32xf32> -> vector<16x32xf32>
    %c0_116 = arith.constant 0 : index
    %c0_117 = arith.constant 0 : index
    %280 = vector.load %arg15[%c0_116, %c0_117] : memref<1x32xf32, #tpu.memory_space<vmem>>, vector<1x32xf32>
    %281 = vector.broadcast %280 : vector<1x32xf32> to vector<16x32xf32>
    %282 = arith.addf %279, %281 : vector<16x32xf32>
    %283 = arith.addf %135, %282 : vector<16x32xf32>
    %284 = vector.broadcast %5 : vector<16x1xf32> to vector<16x32xf32>
    %285 = arith.mulf %283, %284 : vector<16x32xf32>
    %c0_118 = arith.constant 0 : index
    %c0_119 = arith.constant 0 : index
    %c0_120 = arith.constant 0 : index
    %286 = vector.load %arg16[%c0_118, %c0_119, %c0_120] : memref<1x16x32xf32, #tpu.memory_space<vmem>>, vector<1x16x32xf32>
    %287 = vector.shape_cast %286 : vector<1x16x32xf32> to vector<16x32xf32>
    %288 = vector.shape_cast %285 : vector<16x32xf32> to vector<1x16x32xf32>
    tpu.vector_store %arg16[%c0_118, %c0_119, %c0_120], %288 {strides = array<i32>} : memref<1x16x32xf32, #tpu.memory_space<vmem>>, vector<1x16x32xf32>,
    return
  }
  func.func @transform_0(%arg0: i32) -> (i32, i32, i32) {
    %c0_i32 = arith.constant 0 : i32
    %c0_i32_0 = arith.constant 0 : i32
    %c0_i32_1 = arith.constant 0 : i32
    return %arg0, %c0_i32, %c0_i32_0 : i32, i32, i32
  }
  func.func @transform_1(%arg0: i32) -> (i32, i32, i32) {
    %c0_i32 = arith.constant 0 : i32
    %c0_i32_0 = arith.constant 0 : i32
    %c0_i32_1 = arith.constant 0 : i32
    return %arg0, %c0_i32, %c0_i32_0 : i32, i32, i32
  }
  func.func @transform_2(%arg0: i32) -> (i32, i32, i32) {
    %c0_i32 = arith.constant 0 : i32
    %c0_i32_0 = arith.constant 0 : i32
    %c0_i32_1 = arith.constant 0 : i32
    return %arg0, %c0_i32, %c0_i32_0 : i32, i32, i32
  }
  func.func @transform_3(%arg0: i32) -> (i32, i32, i32) {
    %c0_i32 = arith.constant 0 : i32
    %c0_i32_0 = arith.constant 0 : i32
    %c0_i32_1 = arith.constant 0 : i32
    return %arg0, %c0_i32, %c0_i32_0 : i32, i32, i32
  }
  func.func @transform_4(%arg0: i32) -> (i32, i32, i32) {
    %c0_i32 = arith.constant 0 : i32
    %c0_i32_0 = arith.constant 0 : i32
    %c0_i32_1 = arith.constant 0 : i32
    return %arg0, %c0_i32, %c0_i32_0 : i32, i32, i32
  }
  func.func @transform_5(%arg0: i32) -> (i32, i32) {
    %c0_i32 = arith.constant 0 : i32
    %c0_i32_0 = arith.constant 0 : i32
    %c0_i32_1 = arith.constant 0 : i32
    return %c0_i32, %c0_i32_0 : i32, i32
  }
  func.func @transform_6(%arg0: i32) -> (i32, i32) {
    %c0_i32 = arith.constant 0 : i32
    %c0_i32_0 = arith.constant 0 : i32
    %c0_i32_1 = arith.constant 0 : i32
    return %c0_i32, %c0_i32_0 : i32, i32
  }
  func.func @transform_7(%arg0: i32) -> (i32, i32) {
    %c0_i32 = arith.constant 0 : i32
    %c0_i32_0 = arith.constant 0 : i32
    %c0_i32_1 = arith.constant 0 : i32
    return %c0_i32, %c0_i32_0 : i32, i32
  }
  func.func @transform_8(%arg0: i32) -> (i32, i32) {
    %c0_i32 = arith.constant 0 : i32
    %c0_i32_0 = arith.constant 0 : i32
    %c0_i32_1 = arith.constant 0 : i32
    return %c0_i32, %c0_i32_0 : i32, i32
  }
  func.func @transform_9(%arg0: i32) -> (i32, i32) {
    %c0_i32 = arith.constant 0 : i32
    %c0_i32_0 = arith.constant 0 : i32
    %c0_i32_1 = arith.constant 0 : i32
    return %c0_i32, %c0_i32_0 : i32, i32
  }
  func.func @transform_10(%arg0: i32) -> (i32, i32) {
    %c0_i32 = arith.constant 0 : i32
    %c0_i32_0 = arith.constant 0 : i32
    %c0_i32_1 = arith.constant 0 : i32
    return %c0_i32, %c0_i32_0 : i32, i32
  }
  func.func @transform_11(%arg0: i32) -> (i32, i32, i32) {
    %c0_i32 = arith.constant 0 : i32
    %c0_i32_0 = arith.constant 0 : i32
    %c0_i32_1 = arith.constant 0 : i32
    %c0_i32_2 = arith.constant 0 : i32
    return %c0_i32, %c0_i32_0, %c0_i32_1 : i32, i32, i32
  }
  func.func @transform_12(%arg0: i32) -> (i32, i32) {
    %c0_i32 = arith.constant 0 : i32
    %c0_i32_0 = arith.constant 0 : i32
    %c0_i32_1 = arith.constant 0 : i32
    return %c0_i32, %c0_i32_0 : i32, i32
  }
  func.func @transform_13(%arg0: i32) -> (i32, i32) {
    %c0_i32 = arith.constant 0 : i32
    %c0_i32_0 = arith.constant 0 : i32
    %c0_i32_1 = arith.constant 0 : i32
    return %c0_i32, %c0_i32_0 : i32, i32
  }
  func.func @transform_14(%arg0: i32) -> (i32, i32) {
    %c0_i32 = arith.constant 0 : i32
    %c0_i32_0 = arith.constant 0 : i32
    %c0_i32_1 = arith.constant 0 : i32
    return %c0_i32, %c0_i32_0 : i32, i32
  }
  func.func @transform_15(%arg0: i32) -> (i32, i32, i32) {
    %c0_i32 = arith.constant 0 : i32
    %c0_i32_0 = arith.constant 0 : i32
    %c0_i32_1 = arith.constant 0 : i32
    return %arg0, %c0_i32, %c0_i32_0 : i32, i32, i32
  }
}

module attributes {stable_mosaic.version = 11 : i64} {
  func.func @_enc_sa_cond_kernel(%arg0: i32, %arg1: memref<1x16x32xf32, #tpu.memory_space<vmem>>, %arg2: memref<1x16x32xbf16, #tpu.memory_space<vmem>>, %arg3: memref<1x16x32xbf16, #tpu.memory_space<vmem>>, %arg4: memref<1x1x16xf32, #tpu.memory_space<vmem>>, %arg5: memref<1x16x1xf32, #tpu.memory_space<vmem>>, %arg6: memref<1x32xf32, #tpu.memory_space<vmem>>, %arg7: memref<1x32xf32, #tpu.memory_space<vmem>>, %arg8: memref<32x96xbf16, #tpu.memory_space<vmem>>, %arg9: memref<32x32xbf16, #tpu.memory_space<vmem>>, %arg10: memref<1x32xf32, #tpu.memory_space<vmem>>, %arg11: memref<1x32xf32, #tpu.memory_space<vmem>>, %arg12: memref<9x32x128xbf16, #tpu.memory_space<vmem>>, %arg13: memref<1x128xf32, #tpu.memory_space<vmem>>, %arg14: memref<128x32xbf16, #tpu.memory_space<vmem>>, %arg15: memref<1x32xf32, #tpu.memory_space<vmem>>, %arg16: memref<1x16x32xf32, #tpu.memory_space<vmem>>, %arg17: memref<32x32xbf16, #tpu.memory_space<vmem>>) attributes {dimension_semantics = [#tpu.dimension_semantics<parallel>], iteration_bounds = array<i64: 2>, scalar_prefetch = 0 : i64, scratch_operands = 1 : i64, tpu.core_type = #tpu.core_type<tc>, window_params = [{transform_indices = @transform_0, window_bounds = array<i64: 1, 16, 32>}, {transform_indices = @transform_1, window_bounds = array<i64: 1, 16, 32>}, {transform_indices = @transform_2, window_bounds = array<i64: 1, 16, 32>}, {transform_indices = @transform_3, window_bounds = array<i64: 1, 1, 16>}, {transform_indices = @transform_4, window_bounds = array<i64: 1, 16, 1>}, {pipeline_mode = #tpu.pipeline_mode<synchronous>, transform_indices = @transform_5, window_bounds = array<i64: 1, 32>}, {pipeline_mode = #tpu.pipeline_mode<synchronous>, transform_indices = @transform_6, window_bounds = array<i64: 1, 32>}, {pipeline_mode = #tpu.pipeline_mode<synchronous>, transform_indices = @transform_7, window_bounds = array<i64: 32, 96>}, {pipeline_mode = #tpu.pipeline_mode<synchronous>, transform_indices = @transform_8, window_bounds = array<i64: 32, 32>}, {pipeline_mode = #tpu.pipeline_mode<synchronous>, transform_indices = @transform_9, window_bounds = array<i64: 1, 32>}, {pipeline_mode = #tpu.pipeline_mode<synchronous>, transform_indices = @transform_10, window_bounds = array<i64: 1, 32>}, {pipeline_mode = #tpu.pipeline_mode<synchronous>, transform_indices = @transform_11, window_bounds = array<i64: 9, 32, 128>}, {pipeline_mode = #tpu.pipeline_mode<synchronous>, transform_indices = @transform_12, window_bounds = array<i64: 1, 128>}, {pipeline_mode = #tpu.pipeline_mode<synchronous>, transform_indices = @transform_13, window_bounds = array<i64: 128, 32>}, {pipeline_mode = #tpu.pipeline_mode<synchronous>, transform_indices = @transform_14, window_bounds = array<i64: 1, 32>}, {transform_indices = @transform_15, window_bounds = array<i64: 1, 16, 32>}]} {
    %c0 = arith.constant 0 : index
    %c0_0 = arith.constant 0 : index
    %c0_1 = arith.constant 0 : index
    %0 = vector.load %arg1[%c0, %c0_0, %c0_1] : memref<1x16x32xf32, #tpu.memory_space<vmem>>, vector<1x16x32xf32>
    %1 = vector.shape_cast %0 : vector<1x16x32xf32> to vector<16x32xf32>
    %c0_2 = arith.constant 0 : index
    %c0_3 = arith.constant 0 : index
    %c0_4 = arith.constant 0 : index
    %2 = vector.load %arg4[%c0_2, %c0_3, %c0_4] : memref<1x1x16xf32, #tpu.memory_space<vmem>>, vector<1x1x16xf32>
    %3 = vector.shape_cast %2 : vector<1x1x16xf32> to vector<1x16xf32>
    %c0_5 = arith.constant 0 : index
    %c0_6 = arith.constant 0 : index
    %c0_7 = arith.constant 0 : index
    %4 = vector.load %arg5[%c0_5, %c0_6, %c0_7] : memref<1x16x1xf32, #tpu.memory_space<vmem>>, vector<1x16x1xf32>
    %5 = vector.shape_cast %4 : vector<1x16x1xf32> to vector<16x1xf32>
    %c0_8 = arith.constant 0 : index
    %c0_9 = arith.constant 0 : index
    %6 = vector.load %arg6[%c0_8, %c0_9] : memref<1x32xf32, #tpu.memory_space<vmem>>, vector<1x32xf32>
    %c0_10 = arith.constant 0 : index
    %c0_11 = arith.constant 0 : index
    %7 = vector.load %arg7[%c0_10, %c0_11] : memref<1x32xf32, #tpu.memory_space<vmem>>, vector<1x32xf32>
    %cst = arith.constant dense<0.000000e+00> : vector<16xf32>
    %8 = vector.multi_reduction <add>, %1, %cst [1] : vector<16x32xf32> to vector<16xf32>
    %9 = vector.shape_cast %8 : vector<16xf32> to vector<16x1xf32>
    %cst_12 = arith.constant 3.200000e+01 : f32
    %10 = vector.broadcast %cst_12 : f32 to vector<16x1xf32>
    %11 = arith.divf %9, %10 : vector<16x1xf32>
    %12 = vector.broadcast %11 : vector<16x1xf32> to vector<16x32xf32>
    %13 = arith.subf %1, %12 : vector<16x32xf32>
    %14 = arith.mulf %13, %13 : vector<16x32xf32>
    %cst_13 = arith.constant dense<0.000000e+00> : vector<16xf32>
    %15 = vector.multi_reduction <add>, %14, %cst_13 [1] : vector<16x32xf32> to vector<16xf32>
    %16 = vector.shape_cast %15 : vector<16xf32> to vector<16x1xf32>
    %cst_14 = arith.constant 3.200000e+01 : f32
    %17 = vector.broadcast %cst_14 : f32 to vector<16x1xf32>
    %18 = arith.divf %16, %17 : vector<16x1xf32>
    %cst_15 = arith.constant 9.99999974E-6 : f32
    %19 = vector.broadcast %cst_15 : f32 to vector<16x1xf32>
    %20 = arith.addf %18, %19 : vector<16x1xf32>
    %21 = math.rsqrt %20 : vector<16x1xf32>
    %22 = vector.broadcast %21 : vector<16x1xf32> to vector<16x32xf32>
    %23 = arith.mulf %13, %22 : vector<16x32xf32>
    %24 = vector.broadcast %6 : vector<1x32xf32> to vector<16x32xf32>
    %25 = arith.mulf %23, %24 : vector<16x32xf32>
    %26 = vector.broadcast %7 : vector<1x32xf32> to vector<16x32xf32>
    %27 = arith.addf %25, %26 : vector<16x32xf32>
    %c0_16 = arith.constant 0 : index
    %c0_17 = arith.constant 0 : index
    %c0_18 = arith.constant 0 : index
    %28 = vector.load %arg2[%c0_16, %c0_17, %c0_18] : memref<1x16x32xbf16, #tpu.memory_space<vmem>>, vector<1x16x32xbf16>
    %29 = vector.shape_cast %28 : vector<1x16x32xbf16> to vector<16x32xbf16>
    %30 = arith.extf %29 : vector<16x32xbf16> to vector<16x32xf32>
    %31 = arith.addf %27, %30 : vector<16x32xf32>
    %32 = arith.truncf %31 : vector<16x32xf32> to vector<16x32xbf16>
    %c0_19 = arith.constant 0 : index
    %c0_20 = arith.constant 0 : index
    %c0_21 = arith.constant 0 : index
    %33 = vector.load %arg3[%c0_19, %c0_20, %c0_21] : memref<1x16x32xbf16, #tpu.memory_space<vmem>>, vector<1x16x32xbf16>
    %34 = vector.shape_cast %33 : vector<1x16x32xbf16> to vector<16x32xbf16>
    %35 = arith.extf %34 : vector<16x32xbf16> to vector<16x32xf32>
    %36 = arith.addf %27, %35 : vector<16x32xf32>
    %37 = arith.truncf %36 : vector<16x32xf32> to vector<16x32xbf16>
    %38 = tpu.concatenate %32, %37 in 0 : vector<16x32xbf16>, vector<16x32xbf16> -> vector<32x32xbf16>
    %c0_22 = arith.constant 0 : index
    %c0_23 = arith.constant 0 : index
    %39 = vector.load %arg8[%c0_22, %c0_23] : memref<32x96xbf16, #tpu.memory_space<vmem>>, vector<32x96xbf16>
    %cst_24 = arith.constant dense<0.000000e+00> : vector<32x96xf32>
    %40 = tpu.matmul %38, %39, %cst_24 {dimension_numbers = #tpu.dot_dimension_numbers<[1], [0], [0], [1], [0, 0, 1, 1], [], []>} : vector<32x32xbf16>, vector<32x96xbf16>, vector<32x96xf32> -> vector<32x96xf32>
    %41 = vector.extract_strided_slice %40 {offsets = [0, 0], sizes = [32, 32], strides = [1, 1]} : vector<32x96xf32> to vector<32x32xf32>
    %42 = arith.truncf %41 : vector<32x32xf32> to vector<32x32xbf16>
    %43 = vector.extract_strided_slice %40 {offsets = [0, 32], sizes = [32, 32], strides = [1, 1]} : vector<32x96xf32> to vector<32x32xf32>
    %44 = arith.truncf %43 : vector<32x32xf32> to vector<32x32xbf16>
    %45 = vector.extract_strided_slice %40 {offsets = [0, 64], sizes = [32, 32], strides = [1, 1]} : vector<32x96xf32> to vector<32x32xf32>
    %46 = arith.truncf %45 : vector<32x32xf32> to vector<32x32xbf16>
    %47 = vector.extract_strided_slice %42 {offsets = [0, 0], sizes = [16, 16], strides = [1, 1]} : vector<32x32xbf16> to vector<16x16xbf16>
    %48 = vector.extract_strided_slice %44 {offsets = [0, 0], sizes = [16, 16], strides = [1, 1]} : vector<32x32xbf16> to vector<16x16xbf16>
    %49 = vector.extract_strided_slice %46 {offsets = [0, 0], sizes = [16, 16], strides = [1, 1]} : vector<32x32xbf16> to vector<16x16xbf16>
    %cst_25 = arith.constant dense<0.000000e+00> : vector<16x16xf32>
    %50 = tpu.matmul %47, %48, %cst_25 {dimension_numbers = #tpu.dot_dimension_numbers<[1], [1], [0], [0], [0, 0, 1, 0], [], []>} : vector<16x16xbf16>, vector<16x16xbf16>, vector<16x16xf32> -> vector<16x16xf32>
    %51 = vector.broadcast %3 : vector<1x16xf32> to vector<16x16xf32>
    %52 = arith.addf %50, %51 : vector<16x16xf32>
    %cst_26 = arith.constant dense<0xFF800000> : vector<16xf32>
    %53 = vector.multi_reduction <maximumf>, %52, %cst_26 [1] : vector<16x16xf32> to vector<16xf32>
    %54 = vector.shape_cast %53 : vector<16xf32> to vector<16x1xf32>
    %55 = vector.broadcast %54 : vector<16x1xf32> to vector<16x16xf32>
    %56 = arith.subf %52, %55 : vector<16x16xf32>
    %57 = math.exp %56 : vector<16x16xf32>
    %cst_27 = arith.constant dense<0.000000e+00> : vector<16xf32>
    %58 = vector.multi_reduction <add>, %57, %cst_27 [1] : vector<16x16xf32> to vector<16xf32>
    %59 = vector.shape_cast %58 : vector<16xf32> to vector<16x1xf32>
    %60 = arith.truncf %57 : vector<16x16xf32> to vector<16x16xbf16>
    %cst_28 = arith.constant dense<0.000000e+00> : vector<16x16xf32>
    %61 = tpu.matmul %60, %49, %cst_28 {dimension_numbers = #tpu.dot_dimension_numbers<[1], [0], [0], [1], [0, 0, 1, 1], [], []>} : vector<16x16xbf16>, vector<16x16xbf16>, vector<16x16xf32> -> vector<16x16xf32>
    %62 = tpu.reciprocal %59 {approx = true} : vector<16x1xf32> -> vector<16x1xf32>
    %63 = vector.broadcast %62 : vector<16x1xf32> to vector<16x16xf32>
    %64 = arith.mulf %61, %63 : vector<16x16xf32>
    %65 = arith.truncf %64 : vector<16x16xf32> to vector<16x16xbf16>
    %c0_29 = arith.constant 0 : index
    %c0_30 = arith.constant 0 : index
    %66 = vector.load %arg17[%c0_29, %c0_30] : memref<32x32xbf16, #tpu.memory_space<vmem>>, vector<16x16xbf16>
    tpu.vector_store %arg17[%c0_29, %c0_30], %65 {strides = array<i32>} : memref<32x32xbf16, #tpu.memory_space<vmem>>, vector<16x16xbf16>,
    %67 = vector.extract_strided_slice %42 {offsets = [0, 16], sizes = [16, 16], strides = [1, 1]} : vector<32x32xbf16> to vector<16x16xbf16>
    %68 = vector.extract_strided_slice %44 {offsets = [0, 16], sizes = [16, 16], strides = [1, 1]} : vector<32x32xbf16> to vector<16x16xbf16>
    %69 = vector.extract_strided_slice %46 {offsets = [0, 16], sizes = [16, 16], strides = [1, 1]} : vector<32x32xbf16> to vector<16x16xbf16>
    %cst_31 = arith.constant dense<0.000000e+00> : vector<16x16xf32>
    %70 = tpu.matmul %67, %68, %cst_31 {dimension_numbers = #tpu.dot_dimension_numbers<[1], [1], [0], [0], [0, 0, 1, 0], [], []>} : vector<16x16xbf16>, vector<16x16xbf16>, vector<16x16xf32> -> vector<16x16xf32>
    %71 = vector.broadcast %3 : vector<1x16xf32> to vector<16x16xf32>
    %72 = arith.addf %70, %71 : vector<16x16xf32>
    %cst_32 = arith.constant dense<0xFF800000> : vector<16xf32>
    %73 = vector.multi_reduction <maximumf>, %72, %cst_32 [1] : vector<16x16xf32> to vector<16xf32>
    %74 = vector.shape_cast %73 : vector<16xf32> to vector<16x1xf32>
    %75 = vector.broadcast %74 : vector<16x1xf32> to vector<16x16xf32>
    %76 = arith.subf %72, %75 : vector<16x16xf32>
    %77 = math.exp %76 : vector<16x16xf32>
    %cst_33 = arith.constant dense<0.000000e+00> : vector<16xf32>
    %78 = vector.multi_reduction <add>, %77, %cst_33 [1] : vector<16x16xf32> to vector<16xf32>
    %79 = vector.shape_cast %78 : vector<16xf32> to vector<16x1xf32>
    %80 = arith.truncf %77 : vector<16x16xf32> to vector<16x16xbf16>
    %cst_34 = arith.constant dense<0.000000e+00> : vector<16x16xf32>
    %81 = tpu.matmul %80, %69, %cst_34 {dimension_numbers = #tpu.dot_dimension_numbers<[1], [0], [0], [1], [0, 0, 1, 1], [], []>} : vector<16x16xbf16>, vector<16x16xbf16>, vector<16x16xf32> -> vector<16x16xf32>
    %82 = tpu.reciprocal %79 {approx = true} : vector<16x1xf32> -> vector<16x1xf32>
    %83 = vector.broadcast %82 : vector<16x1xf32> to vector<16x16xf32>
    %84 = arith.mulf %81, %83 : vector<16x16xf32>
    %85 = arith.truncf %84 : vector<16x16xf32> to vector<16x16xbf16>
    %c0_35 = arith.constant 0 : index
    %c16 = arith.constant 16 : index
    %86 = vector.load %arg17[%c0_35, %c16] : memref<32x32xbf16, #tpu.memory_space<vmem>>, vector<16x16xbf16>
    tpu.vector_store %arg17[%c0_35, %c16], %85 {strides = array<i32>} : memref<32x32xbf16, #tpu.memory_space<vmem>>, vector<16x16xbf16>,
    %87 = vector.extract_strided_slice %42 {offsets = [16, 0], sizes = [16, 16], strides = [1, 1]} : vector<32x32xbf16> to vector<16x16xbf16>
    %88 = vector.extract_strided_slice %44 {offsets = [16, 0], sizes = [16, 16], strides = [1, 1]} : vector<32x32xbf16> to vector<16x16xbf16>
    %89 = vector.extract_strided_slice %46 {offsets = [16, 0], sizes = [16, 16], strides = [1, 1]} : vector<32x32xbf16> to vector<16x16xbf16>
    %cst_36 = arith.constant dense<0.000000e+00> : vector<16x16xf32>
    %90 = tpu.matmul %87, %88, %cst_36 {dimension_numbers = #tpu.dot_dimension_numbers<[1], [1], [0], [0], [0, 0, 1, 0], [], []>} : vector<16x16xbf16>, vector<16x16xbf16>, vector<16x16xf32> -> vector<16x16xf32>
    %91 = vector.broadcast %3 : vector<1x16xf32> to vector<16x16xf32>
    %92 = arith.addf %90, %91 : vector<16x16xf32>
    %cst_37 = arith.constant dense<0xFF800000> : vector<16xf32>
    %93 = vector.multi_reduction <maximumf>, %92, %cst_37 [1] : vector<16x16xf32> to vector<16xf32>
    %94 = vector.shape_cast %93 : vector<16xf32> to vector<16x1xf32>
    %95 = vector.broadcast %94 : vector<16x1xf32> to vector<16x16xf32>
    %96 = arith.subf %92, %95 : vector<16x16xf32>
    %97 = math.exp %96 : vector<16x16xf32>
    %cst_38 = arith.constant dense<0.000000e+00> : vector<16xf32>
    %98 = vector.multi_reduction <add>, %97, %cst_38 [1] : vector<16x16xf32> to vector<16xf32>
    %99 = vector.shape_cast %98 : vector<16xf32> to vector<16x1xf32>
    %100 = arith.truncf %97 : vector<16x16xf32> to vector<16x16xbf16>
    %cst_39 = arith.constant dense<0.000000e+00> : vector<16x16xf32>
    %101 = tpu.matmul %100, %89, %cst_39 {dimension_numbers = #tpu.dot_dimension_numbers<[1], [0], [0], [1], [0, 0, 1, 1], [], []>} : vector<16x16xbf16>, vector<16x16xbf16>, vector<16x16xf32> -> vector<16x16xf32>
    %102 = tpu.reciprocal %99 {approx = true} : vector<16x1xf32> -> vector<16x1xf32>
    %103 = vector.broadcast %102 : vector<16x1xf32> to vector<16x16xf32>
    %104 = arith.mulf %101, %103 : vector<16x16xf32>
    %105 = arith.truncf %104 : vector<16x16xf32> to vector<16x16xbf16>
    %c16_40 = arith.constant 16 : index
    %c0_41 = arith.constant 0 : index
    %106 = vector.load %arg17[%c16_40, %c0_41] : memref<32x32xbf16, #tpu.memory_space<vmem>>, vector<16x16xbf16>
    tpu.vector_store %arg17[%c16_40, %c0_41], %105 {strides = array<i32>} : memref<32x32xbf16, #tpu.memory_space<vmem>>, vector<16x16xbf16>,
    %107 = vector.extract_strided_slice %42 {offsets = [16, 16], sizes = [16, 16], strides = [1, 1]} : vector<32x32xbf16> to vector<16x16xbf16>
    %108 = vector.extract_strided_slice %44 {offsets = [16, 16], sizes = [16, 16], strides = [1, 1]} : vector<32x32xbf16> to vector<16x16xbf16>
    %109 = vector.extract_strided_slice %46 {offsets = [16, 16], sizes = [16, 16], strides = [1, 1]} : vector<32x32xbf16> to vector<16x16xbf16>
    %cst_42 = arith.constant dense<0.000000e+00> : vector<16x16xf32>
    %110 = tpu.matmul %107, %108, %cst_42 {dimension_numbers = #tpu.dot_dimension_numbers<[1], [1], [0], [0], [0, 0, 1, 0], [], []>} : vector<16x16xbf16>, vector<16x16xbf16>, vector<16x16xf32> -> vector<16x16xf32>
    %111 = vector.broadcast %3 : vector<1x16xf32> to vector<16x16xf32>
    %112 = arith.addf %110, %111 : vector<16x16xf32>
    %cst_43 = arith.constant dense<0xFF800000> : vector<16xf32>
    %113 = vector.multi_reduction <maximumf>, %112, %cst_43 [1] : vector<16x16xf32> to vector<16xf32>
    %114 = vector.shape_cast %113 : vector<16xf32> to vector<16x1xf32>
    %115 = vector.broadcast %114 : vector<16x1xf32> to vector<16x16xf32>
    %116 = arith.subf %112, %115 : vector<16x16xf32>
    %117 = math.exp %116 : vector<16x16xf32>
    %cst_44 = arith.constant dense<0.000000e+00> : vector<16xf32>
    %118 = vector.multi_reduction <add>, %117, %cst_44 [1] : vector<16x16xf32> to vector<16xf32>
    %119 = vector.shape_cast %118 : vector<16xf32> to vector<16x1xf32>
    %120 = arith.truncf %117 : vector<16x16xf32> to vector<16x16xbf16>
    %cst_45 = arith.constant dense<0.000000e+00> : vector<16x16xf32>
    %121 = tpu.matmul %120, %109, %cst_45 {dimension_numbers = #tpu.dot_dimension_numbers<[1], [0], [0], [1], [0, 0, 1, 1], [], []>} : vector<16x16xbf16>, vector<16x16xbf16>, vector<16x16xf32> -> vector<16x16xf32>
    %122 = tpu.reciprocal %119 {approx = true} : vector<16x1xf32> -> vector<16x1xf32>
    %123 = vector.broadcast %122 : vector<16x1xf32> to vector<16x16xf32>
    %124 = arith.mulf %121, %123 : vector<16x16xf32>
    %125 = arith.truncf %124 : vector<16x16xf32> to vector<16x16xbf16>
    %c16_46 = arith.constant 16 : index
    %c16_47 = arith.constant 16 : index
    %126 = vector.load %arg17[%c16_46, %c16_47] : memref<32x32xbf16, #tpu.memory_space<vmem>>, vector<16x16xbf16>
    tpu.vector_store %arg17[%c16_46, %c16_47], %125 {strides = array<i32>} : memref<32x32xbf16, #tpu.memory_space<vmem>>, vector<16x16xbf16>,
    %c0_48 = arith.constant 0 : index
    %c0_49 = arith.constant 0 : index
    %127 = vector.load %arg17[%c0_48, %c0_49] : memref<32x32xbf16, #tpu.memory_space<vmem>>, vector<32x32xbf16>
    %c0_50 = arith.constant 0 : index
    %c0_51 = arith.constant 0 : index
    %128 = vector.load %arg9[%c0_50, %c0_51] : memref<32x32xbf16, #tpu.memory_space<vmem>>, vector<32x32xbf16>
    %cst_52 = arith.constant dense<0.000000e+00> : vector<32x32xf32>
    %129 = tpu.matmul %127, %128, %cst_52 {dimension_numbers = #tpu.dot_dimension_numbers<[1], [0], [0], [1], [0, 0, 1, 1], [], []>} : vector<32x32xbf16>, vector<32x32xbf16>, vector<32x32xf32> -> vector<32x32xf32>
    %130 = vector.extract_strided_slice %129 {offsets = [0, 0], sizes = [16, 32], strides = [1, 1]} : vector<32x32xf32> to vector<16x32xf32>
    %131 = arith.addf %1, %130 : vector<16x32xf32>
    %132 = vector.extract_strided_slice %129 {offsets = [16, 0], sizes = [16, 32], strides = [1, 1]} : vector<32x32xf32> to vector<16x32xf32>
    %133 = arith.addf %131, %132 : vector<16x32xf32>
    %134 = vector.broadcast %5 : vector<16x1xf32> to vector<16x32xf32>
    %135 = arith.mulf %133, %134 : vector<16x32xf32>
    %c0_53 = arith.constant 0 : index
    %c0_54 = arith.constant 0 : index
    %136 = vector.load %arg10[%c0_53, %c0_54] : memref<1x32xf32, #tpu.memory_space<vmem>>, vector<1x32xf32>
    %c0_55 = arith.constant 0 : index
    %c0_56 = arith.constant 0 : index
    %137 = vector.load %arg11[%c0_55, %c0_56] : memref<1x32xf32, #tpu.memory_space<vmem>>, vector<1x32xf32>
    %cst_57 = arith.constant dense<0.000000e+00> : vector<16xf32>
    %138 = vector.multi_reduction <add>, %135, %cst_57 [1] : vector<16x32xf32> to vector<16xf32>
    %139 = vector.shape_cast %138 : vector<16xf32> to vector<16x1xf32>
    %cst_58 = arith.constant 3.200000e+01 : f32
    %140 = vector.broadcast %cst_58 : f32 to vector<16x1xf32>
    %141 = arith.divf %139, %140 : vector<16x1xf32>
    %142 = vector.broadcast %141 : vector<16x1xf32> to vector<16x32xf32>
    %143 = arith.subf %135, %142 : vector<16x32xf32>
    %144 = arith.mulf %143, %143 : vector<16x32xf32>
    %cst_59 = arith.constant dense<0.000000e+00> : vector<16xf32>
    %145 = vector.multi_reduction <add>, %144, %cst_59 [1] : vector<16x32xf32> to vector<16xf32>
    %146 = vector.shape_cast %145 : vector<16xf32> to vector<16x1xf32>
    %cst_60 = arith.constant 3.200000e+01 : f32
    %147 = vector.broadcast %cst_60 : f32 to vector<16x1xf32>
    %148 = arith.divf %146, %147 : vector<16x1xf32>
    %cst_61 = arith.constant 9.99999974E-6 : f32
    %149 = vector.broadcast %cst_61 : f32 to vector<16x1xf32>
    %150 = arith.addf %148, %149 : vector<16x1xf32>
    %151 = math.rsqrt %150 : vector<16x1xf32>
    %152 = vector.broadcast %151 : vector<16x1xf32> to vector<16x32xf32>
    %153 = arith.mulf %143, %152 : vector<16x32xf32>
    %154 = vector.broadcast %136 : vector<1x32xf32> to vector<16x32xf32>
    %155 = arith.mulf %153, %154 : vector<16x32xf32>
    %156 = vector.broadcast %137 : vector<1x32xf32> to vector<16x32xf32>
    %157 = arith.addf %155, %156 : vector<16x32xf32>
    %158 = tpu.iota {dimensions = array<i32: 0>} : vector<16x1xi32>
    %c4_i32 = arith.constant 4 : i32
    %159 = tpu.dynamic_rotate %157 by %c4_i32 dim 0 : vector<16x32xf32>, i32 -> vector<16x32xf32>
    %c4_i32_62 = arith.constant 4 : i32
    %160 = vector.broadcast %c4_i32_62 : i32 to vector<16x1xi32>
    %161 = arith.cmpi sge, %158, %160 : vector<16x1xi32>
    %cst_63 = arith.constant 0.000000e+00 : f32
    %162 = vector.shape_cast %161 : vector<16x1xi1> to vector<16x1xi1>
    %163 = vector.broadcast %162 : vector<16x1xi1> to vector<16x32xi1>
    %164 = vector.broadcast %cst_63 : f32 to vector<16x32xf32>
    %165 = arith.select %163, %159, %164 : vector<16x32xi1>, vector<16x32xf32>
    %166 = arith.truncf %165 : vector<16x32xf32> to vector<16x32xbf16>
    %c0_64 = arith.constant 0 : index
    %c0_65 = arith.constant 0 : index
    %c0_66 = arith.constant 0 : index
    %167 = vector.load %arg12[%c0_64, %c0_65, %c0_66] : memref<9x32x128xbf16, #tpu.memory_space<vmem>>, vector<1x32x128xbf16>
    %168 = vector.shape_cast %167 : vector<1x32x128xbf16> to vector<32x128xbf16>
    %cst_67 = arith.constant dense<0.000000e+00> : vector<16x128xf32>
    %169 = tpu.matmul %166, %168, %cst_67 {dimension_numbers = #tpu.dot_dimension_numbers<[1], [0], [0], [1], [0, 0, 1, 1], [], []>} : vector<16x32xbf16>, vector<32x128xbf16>, vector<16x128xf32> -> vector<16x128xf32>
    %c3_i32 = arith.constant 3 : i32
    %170 = tpu.dynamic_rotate %157 by %c3_i32 dim 0 : vector<16x32xf32>, i32 -> vector<16x32xf32>
    %c3_i32_68 = arith.constant 3 : i32
    %171 = vector.broadcast %c3_i32_68 : i32 to vector<16x1xi32>
    %172 = arith.cmpi sge, %158, %171 : vector<16x1xi32>
    %cst_69 = arith.constant 0.000000e+00 : f32
    %173 = vector.shape_cast %172 : vector<16x1xi1> to vector<16x1xi1>
    %174 = vector.broadcast %173 : vector<16x1xi1> to vector<16x32xi1>
    %175 = vector.broadcast %cst_69 : f32 to vector<16x32xf32>
    %176 = arith.select %174, %170, %175 : vector<16x32xi1>, vector<16x32xf32>
    %177 = arith.truncf %176 : vector<16x32xf32> to vector<16x32xbf16>
    %c1 = arith.constant 1 : index
    %c0_70 = arith.constant 0 : index
    %c0_71 = arith.constant 0 : index
    %178 = vector.load %arg12[%c1, %c0_70, %c0_71] : memref<9x32x128xbf16, #tpu.memory_space<vmem>>, vector<1x32x128xbf16>
    %179 = vector.shape_cast %178 : vector<1x32x128xbf16> to vector<32x128xbf16>
    %cst_72 = arith.constant dense<0.000000e+00> : vector<16x128xf32>
    %180 = tpu.matmul %177, %179, %cst_72 {dimension_numbers = #tpu.dot_dimension_numbers<[1], [0], [0], [1], [0, 0, 1, 1], [], []>} : vector<16x32xbf16>, vector<32x128xbf16>, vector<16x128xf32> -> vector<16x128xf32>
    %181 = arith.addf %169, %180 : vector<16x128xf32>
    %c2_i32 = arith.constant 2 : i32
    %182 = tpu.dynamic_rotate %157 by %c2_i32 dim 0 : vector<16x32xf32>, i32 -> vector<16x32xf32>
    %c2_i32_73 = arith.constant 2 : i32
    %183 = vector.broadcast %c2_i32_73 : i32 to vector<16x1xi32>
    %184 = arith.cmpi sge, %158, %183 : vector<16x1xi32>
    %cst_74 = arith.constant 0.000000e+00 : f32
    %185 = vector.shape_cast %184 : vector<16x1xi1> to vector<16x1xi1>
    %186 = vector.broadcast %185 : vector<16x1xi1> to vector<16x32xi1>
    %187 = vector.broadcast %cst_74 : f32 to vector<16x32xf32>
    %188 = arith.select %186, %182, %187 : vector<16x32xi1>, vector<16x32xf32>
    %189 = arith.truncf %188 : vector<16x32xf32> to vector<16x32xbf16>
    %c2 = arith.constant 2 : index
    %c0_75 = arith.constant 0 : index
    %c0_76 = arith.constant 0 : index
    %190 = vector.load %arg12[%c2, %c0_75, %c0_76] : memref<9x32x128xbf16, #tpu.memory_space<vmem>>, vector<1x32x128xbf16>
    %191 = vector.shape_cast %190 : vector<1x32x128xbf16> to vector<32x128xbf16>
    %cst_77 = arith.constant dense<0.000000e+00> : vector<16x128xf32>
    %192 = tpu.matmul %189, %191, %cst_77 {dimension_numbers = #tpu.dot_dimension_numbers<[1], [0], [0], [1], [0, 0, 1, 1], [], []>} : vector<16x32xbf16>, vector<32x128xbf16>, vector<16x128xf32> -> vector<16x128xf32>
    %193 = arith.addf %181, %192 : vector<16x128xf32>
    %c1_i32 = arith.constant 1 : i32
    %194 = tpu.dynamic_rotate %157 by %c1_i32 dim 0 : vector<16x32xf32>, i32 -> vector<16x32xf32>
    %c1_i32_78 = arith.constant 1 : i32
    %195 = vector.broadcast %c1_i32_78 : i32 to vector<16x1xi32>
    %196 = arith.cmpi sge, %158, %195 : vector<16x1xi32>
    %cst_79 = arith.constant 0.000000e+00 : f32
    %197 = vector.shape_cast %196 : vector<16x1xi1> to vector<16x1xi1>
    %198 = vector.broadcast %197 : vector<16x1xi1> to vector<16x32xi1>
    %199 = vector.broadcast %cst_79 : f32 to vector<16x32xf32>
    %200 = arith.select %198, %194, %199 : vector<16x32xi1>, vector<16x32xf32>
    %201 = arith.truncf %200 : vector<16x32xf32> to vector<16x32xbf16>
    %c3 = arith.constant 3 : index
    %c0_80 = arith.constant 0 : index
    %c0_81 = arith.constant 0 : index
    %202 = vector.load %arg12[%c3, %c0_80, %c0_81] : memref<9x32x128xbf16, #tpu.memory_space<vmem>>, vector<1x32x128xbf16>
    %203 = vector.shape_cast %202 : vector<1x32x128xbf16> to vector<32x128xbf16>
    %cst_82 = arith.constant dense<0.000000e+00> : vector<16x128xf32>
    %204 = tpu.matmul %201, %203, %cst_82 {dimension_numbers = #tpu.dot_dimension_numbers<[1], [0], [0], [1], [0, 0, 1, 1], [], []>} : vector<16x32xbf16>, vector<32x128xbf16>, vector<16x128xf32> -> vector<16x128xf32>
    %205 = arith.addf %193, %204 : vector<16x128xf32>
    %206 = arith.truncf %157 : vector<16x32xf32> to vector<16x32xbf16>
    %c4 = arith.constant 4 : index
    %c0_83 = arith.constant 0 : index
    %c0_84 = arith.constant 0 : index
    %207 = vector.load %arg12[%c4, %c0_83, %c0_84] : memref<9x32x128xbf16, #tpu.memory_space<vmem>>, vector<1x32x128xbf16>
    %208 = vector.shape_cast %207 : vector<1x32x128xbf16> to vector<32x128xbf16>
    %cst_85 = arith.constant dense<0.000000e+00> : vector<16x128xf32>
    %209 = tpu.matmul %206, %208, %cst_85 {dimension_numbers = #tpu.dot_dimension_numbers<[1], [0], [0], [1], [0, 0, 1, 1], [], []>} : vector<16x32xbf16>, vector<32x128xbf16>, vector<16x128xf32> -> vector<16x128xf32>
    %210 = arith.addf %205, %209 : vector<16x128xf32>
    %c15_i32 = arith.constant 15 : i32
    %211 = tpu.dynamic_rotate %157 by %c15_i32 dim 0 : vector<16x32xf32>, i32 -> vector<16x32xf32>
    %c15_i32_86 = arith.constant 15 : i32
    %212 = vector.broadcast %c15_i32_86 : i32 to vector<16x1xi32>
    %213 = arith.cmpi slt, %158, %212 : vector<16x1xi32>
    %cst_87 = arith.constant 0.000000e+00 : f32
    %214 = vector.shape_cast %213 : vector<16x1xi1> to vector<16x1xi1>
    %215 = vector.broadcast %214 : vector<16x1xi1> to vector<16x32xi1>
    %216 = vector.broadcast %cst_87 : f32 to vector<16x32xf32>
    %217 = arith.select %215, %211, %216 : vector<16x32xi1>, vector<16x32xf32>
    %218 = arith.truncf %217 : vector<16x32xf32> to vector<16x32xbf16>
    %c5 = arith.constant 5 : index
    %c0_88 = arith.constant 0 : index
    %c0_89 = arith.constant 0 : index
    %219 = vector.load %arg12[%c5, %c0_88, %c0_89] : memref<9x32x128xbf16, #tpu.memory_space<vmem>>, vector<1x32x128xbf16>
    %220 = vector.shape_cast %219 : vector<1x32x128xbf16> to vector<32x128xbf16>
    %cst_90 = arith.constant dense<0.000000e+00> : vector<16x128xf32>
    %221 = tpu.matmul %218, %220, %cst_90 {dimension_numbers = #tpu.dot_dimension_numbers<[1], [0], [0], [1], [0, 0, 1, 1], [], []>} : vector<16x32xbf16>, vector<32x128xbf16>, vector<16x128xf32> -> vector<16x128xf32>
    %222 = arith.addf %210, %221 : vector<16x128xf32>
    %c14_i32 = arith.constant 14 : i32
    %223 = tpu.dynamic_rotate %157 by %c14_i32 dim 0 : vector<16x32xf32>, i32 -> vector<16x32xf32>
    %c14_i32_91 = arith.constant 14 : i32
    %224 = vector.broadcast %c14_i32_91 : i32 to vector<16x1xi32>
    %225 = arith.cmpi slt, %158, %224 : vector<16x1xi32>
    %cst_92 = arith.constant 0.000000e+00 : f32
    %226 = vector.shape_cast %225 : vector<16x1xi1> to vector<16x1xi1>
    %227 = vector.broadcast %226 : vector<16x1xi1> to vector<16x32xi1>
    %228 = vector.broadcast %cst_92 : f32 to vector<16x32xf32>
    %229 = arith.select %227, %223, %228 : vector<16x32xi1>, vector<16x32xf32>
    %230 = arith.truncf %229 : vector<16x32xf32> to vector<16x32xbf16>
    %c6 = arith.constant 6 : index
    %c0_93 = arith.constant 0 : index
    %c0_94 = arith.constant 0 : index
    %231 = vector.load %arg12[%c6, %c0_93, %c0_94] : memref<9x32x128xbf16, #tpu.memory_space<vmem>>, vector<1x32x128xbf16>
    %232 = vector.shape_cast %231 : vector<1x32x128xbf16> to vector<32x128xbf16>
    %cst_95 = arith.constant dense<0.000000e+00> : vector<16x128xf32>
    %233 = tpu.matmul %230, %232, %cst_95 {dimension_numbers = #tpu.dot_dimension_numbers<[1], [0], [0], [1], [0, 0, 1, 1], [], []>} : vector<16x32xbf16>, vector<32x128xbf16>, vector<16x128xf32> -> vector<16x128xf32>
    %234 = arith.addf %222, %233 : vector<16x128xf32>
    %c13_i32 = arith.constant 13 : i32
    %235 = tpu.dynamic_rotate %157 by %c13_i32 dim 0 : vector<16x32xf32>, i32 -> vector<16x32xf32>
    %c13_i32_96 = arith.constant 13 : i32
    %236 = vector.broadcast %c13_i32_96 : i32 to vector<16x1xi32>
    %237 = arith.cmpi slt, %158, %236 : vector<16x1xi32>
    %cst_97 = arith.constant 0.000000e+00 : f32
    %238 = vector.shape_cast %237 : vector<16x1xi1> to vector<16x1xi1>
    %239 = vector.broadcast %238 : vector<16x1xi1> to vector<16x32xi1>
    %240 = vector.broadcast %cst_97 : f32 to vector<16x32xf32>
    %241 = arith.select %239, %235, %240 : vector<16x32xi1>, vector<16x32xf32>
    %242 = arith.truncf %241 : vector<16x32xf32> to vector<16x32xbf16>
    %c7 = arith.constant 7 : index
    %c0_98 = arith.constant 0 : index
    %c0_99 = arith.constant 0 : index
    %243 = vector.load %arg12[%c7, %c0_98, %c0_99] : memref<9x32x128xbf16, #tpu.memory_space<vmem>>, vector<1x32x128xbf16>
    %244 = vector.shape_cast %243 : vector<1x32x128xbf16> to vector<32x128xbf16>
    %cst_100 = arith.constant dense<0.000000e+00> : vector<16x128xf32>
    %245 = tpu.matmul %242, %244, %cst_100 {dimension_numbers = #tpu.dot_dimension_numbers<[1], [0], [0], [1], [0, 0, 1, 1], [], []>} : vector<16x32xbf16>, vector<32x128xbf16>, vector<16x128xf32> -> vector<16x128xf32>
    %246 = arith.addf %234, %245 : vector<16x128xf32>
    %c12_i32 = arith.constant 12 : i32
    %247 = tpu.dynamic_rotate %157 by %c12_i32 dim 0 : vector<16x32xf32>, i32 -> vector<16x32xf32>
    %c12_i32_101 = arith.constant 12 : i32
    %248 = vector.broadcast %c12_i32_101 : i32 to vector<16x1xi32>
    %249 = arith.cmpi slt, %158, %248 : vector<16x1xi32>
    %cst_102 = arith.constant 0.000000e+00 : f32
    %250 = vector.shape_cast %249 : vector<16x1xi1> to vector<16x1xi1>
    %251 = vector.broadcast %250 : vector<16x1xi1> to vector<16x32xi1>
    %252 = vector.broadcast %cst_102 : f32 to vector<16x32xf32>
    %253 = arith.select %251, %247, %252 : vector<16x32xi1>, vector<16x32xf32>
    %254 = arith.truncf %253 : vector<16x32xf32> to vector<16x32xbf16>
    %c8 = arith.constant 8 : index
    %c0_103 = arith.constant 0 : index
    %c0_104 = arith.constant 0 : index
    %255 = vector.load %arg12[%c8, %c0_103, %c0_104] : memref<9x32x128xbf16, #tpu.memory_space<vmem>>, vector<1x32x128xbf16>
    %256 = vector.shape_cast %255 : vector<1x32x128xbf16> to vector<32x128xbf16>
    %cst_105 = arith.constant dense<0.000000e+00> : vector<16x128xf32>
    %257 = tpu.matmul %254, %256, %cst_105 {dimension_numbers = #tpu.dot_dimension_numbers<[1], [0], [0], [1], [0, 0, 1, 1], [], []>} : vector<16x32xbf16>, vector<32x128xbf16>, vector<16x128xf32> -> vector<16x128xf32>
    %258 = arith.addf %246, %257 : vector<16x128xf32>
    %c0_106 = arith.constant 0 : index
    %c0_107 = arith.constant 0 : index
    %259 = vector.load %arg13[%c0_106, %c0_107] : memref<1x128xf32, #tpu.memory_space<vmem>>, vector<1x128xf32>
    %260 = vector.broadcast %259 : vector<1x128xf32> to vector<16x128xf32>
    %261 = arith.addf %258, %260 : vector<16x128xf32>
    %cst_108 = arith.constant 0.333333343 : f32
    %262 = vector.broadcast %cst_108 : f32 to vector<16x128xf32>
    %263 = arith.mulf %261, %262 : vector<16x128xf32>
    %cst_109 = arith.constant 5.000000e-01 : f32
    %264 = vector.broadcast %cst_109 : f32 to vector<16x128xf32>
    %265 = arith.mulf %264, %263 : vector<16x128xf32>
    %cst_110 = arith.constant 4.471500e-02 : f32
    %266 = vector.broadcast %cst_110 : f32 to vector<16x128xf32>
    %267 = arith.mulf %266, %263 : vector<16x128xf32>
    %268 = arith.mulf %267, %263 : vector<16x128xf32>
    %269 = arith.mulf %268, %263 : vector<16x128xf32>
    %270 = arith.addf %263, %269 : vector<16x128xf32>
    %cst_111 = arith.constant 0.797884583 : f32
    %271 = vector.broadcast %cst_111 : f32 to vector<16x128xf32>
    %272 = arith.mulf %271, %270 : vector<16x128xf32>
    %273 = math.tanh %272 : vector<16x128xf32>
    %cst_112 = arith.constant 1.000000e+00 : f32
    %274 = vector.broadcast %cst_112 : f32 to vector<16x128xf32>
    %275 = arith.addf %274, %273 : vector<16x128xf32>
    %276 = arith.mulf %265, %275 : vector<16x128xf32>
    %277 = arith.truncf %276 : vector<16x128xf32> to vector<16x128xbf16>
    %c0_113 = arith.constant 0 : index
    %c0_114 = arith.constant 0 : index
    %278 = vector.load %arg14[%c0_113, %c0_114] : memref<128x32xbf16, #tpu.memory_space<vmem>>, vector<128x32xbf16>
    %cst_115 = arith.constant dense<0.000000e+00> : vector<16x32xf32>
    %279 = tpu.matmul %277, %278, %cst_115 {dimension_numbers = #tpu.dot_dimension_numbers<[1], [0], [0], [1], [0, 0, 1, 1], [], []>} : vector<16x128xbf16>, vector<128x32xbf16>, vector<16x32xf32> -> vector<16x32xf32>
    %c0_116 = arith.constant 0 : index
    %c0_117 = arith.constant 0 : index
    %280 = vector.load %arg15[%c0_116, %c0_117] : memref<1x32xf32, #tpu.memory_space<vmem>>, vector<1x32xf32>
    %281 = vector.broadcast %280 : vector<1x32xf32> to vector<16x32xf32>
    %282 = arith.addf %279, %281 : vector<16x32xf32>
    %283 = arith.addf %135, %282 : vector<16x32xf32>
    %284 = vector.broadcast %5 : vector<16x1xf32> to vector<16x32xf32>
    %285 = arith.mulf %283, %284 : vector<16x32xf32>
    %c0_118 = arith.constant 0 : index
    %c0_119 = arith.constant 0 : index
    %c0_120 = arith.constant 0 : index
    %286 = vector.load %arg16[%c0_118, %c0_119, %c0_120] : memref<1x16x32xf32, #tpu.memory_space<vmem>>, vector<1x16x32xf32>
    %287 = vector.shape_cast %286 : vector<1x16x32xf32> to vector<16x32xf32>
    %288 = vector.shape_cast %285 : vector<16x32xf32> to vector<1x16x32xf32>
    tpu.vector_store %arg16[%c0_118, %c0_119, %c0_120], %288 {strides = array<i32>} : memref<1x16x32xf32, #tpu.memory_space<vmem>>, vector<1x16x32xf32>,
    return
  }
  func.func @transform_0(%arg0: i32) -> (i32, i32, i32) {
    %c0_i32 = arith.constant 0 : i32
    %c0_i32_0 = arith.constant 0 : i32
    %c0_i32_1 = arith.constant 0 : i32
    return %arg0, %c0_i32, %c0_i32_0 : i32, i32, i32
  }
  func.func @transform_1(%arg0: i32) -> (i32, i32, i32) {
    %c0_i32 = arith.constant 0 : i32
    %c0_i32_0 = arith.constant 0 : i32
    %c0_i32_1 = arith.constant 0 : i32
    return %arg0, %c0_i32, %c0_i32_0 : i32, i32, i32
  }
  func.func @transform_2(%arg0: i32) -> (i32, i32, i32) {
    %c0_i32 = arith.constant 0 : i32
    %c0_i32_0 = arith.constant 0 : i32
    %c0_i32_1 = arith.constant 0 : i32
    return %arg0, %c0_i32, %c0_i32_0 : i32, i32, i32
  }
  func.func @transform_3(%arg0: i32) -> (i32, i32, i32) {
    %c0_i32 = arith.constant 0 : i32
    %c0_i32_0 = arith.constant 0 : i32
    %c0_i32_1 = arith.constant 0 : i32
    return %arg0, %c0_i32, %c0_i32_0 : i32, i32, i32
  }
  func.func @transform_4(%arg0: i32) -> (i32, i32, i32) {
    %c0_i32 = arith.constant 0 : i32
    %c0_i32_0 = arith.constant 0 : i32
    %c0_i32_1 = arith.constant 0 : i32
    return %arg0, %c0_i32, %c0_i32_0 : i32, i32, i32
  }
  func.func @transform_5(%arg0: i32) -> (i32, i32) {
    %c0_i32 = arith.constant 0 : i32
    %c0_i32_0 = arith.constant 0 : i32
    %c0_i32_1 = arith.constant 0 : i32
    return %c0_i32, %c0_i32_0 : i32, i32
  }
  func.func @transform_6(%arg0: i32) -> (i32, i32) {
    %c0_i32 = arith.constant 0 : i32
    %c0_i32_0 = arith.constant 0 : i32
    %c0_i32_1 = arith.constant 0 : i32
    return %c0_i32, %c0_i32_0 : i32, i32
  }
  func.func @transform_7(%arg0: i32) -> (i32, i32) {
    %c0_i32 = arith.constant 0 : i32
    %c0_i32_0 = arith.constant 0 : i32
    %c0_i32_1 = arith.constant 0 : i32
    return %c0_i32, %c0_i32_0 : i32, i32
  }
  func.func @transform_8(%arg0: i32) -> (i32, i32) {
    %c0_i32 = arith.constant 0 : i32
    %c0_i32_0 = arith.constant 0 : i32
    %c0_i32_1 = arith.constant 0 : i32
    return %c0_i32, %c0_i32_0 : i32, i32
  }
  func.func @transform_9(%arg0: i32) -> (i32, i32) {
    %c0_i32 = arith.constant 0 : i32
    %c0_i32_0 = arith.constant 0 : i32
    %c0_i32_1 = arith.constant 0 : i32
    return %c0_i32, %c0_i32_0 : i32, i32
  }
  func.func @transform_10(%arg0: i32) -> (i32, i32) {
    %c0_i32 = arith.constant 0 : i32
    %c0_i32_0 = arith.constant 0 : i32
    %c0_i32_1 = arith.constant 0 : i32
    return %c0_i32, %c0_i32_0 : i32, i32
  }
  func.func @transform_11(%arg0: i32) -> (i32, i32, i32) {
    %c0_i32 = arith.constant 0 : i32
    %c0_i32_0 = arith.constant 0 : i32
    %c0_i32_1 = arith.constant 0 : i32
    %c0_i32_2 = arith.constant 0 : i32
    return %c0_i32, %c0_i32_0, %c0_i32_1 : i32, i32, i32
  }
  func.func @transform_12(%arg0: i32) -> (i32, i32) {
    %c0_i32 = arith.constant 0 : i32
    %c0_i32_0 = arith.constant 0 : i32
    %c0_i32_1 = arith.constant 0 : i32
    return %c0_i32, %c0_i32_0 : i32, i32
  }
  func.func @transform_13(%arg0: i32) -> (i32, i32) {
    %c0_i32 = arith.constant 0 : i32
    %c0_i32_0 = arith.constant 0 : i32
    %c0_i32_1 = arith.constant 0 : i32
    return %c0_i32, %c0_i32_0 : i32, i32
  }
  func.func @transform_14(%arg0: i32) -> (i32, i32) {
    %c0_i32 = arith.constant 0 : i32
    %c0_i32_0 = arith.constant 0 : i32
    %c0_i32_1 = arith.constant 0 : i32
    return %c0_i32, %c0_i32_0 : i32, i32
  }
  func.func @transform_15(%arg0: i32) -> (i32, i32, i32) {
    %c0_i32 = arith.constant 0 : i32
    %c0_i32_0 = arith.constant 0 : i32
    %c0_i32_1 = arith.constant 0 : i32
    return %arg0, %c0_i32, %c0_i32_0 : i32, i32, i32
  }
}

</mosaic_0001>

<bundles_post_ra>
// kernel: tpu_custom_call.1
= control target key start
LH: loop header
LB: loop body
LE: loop exit
PB: predicated region body
PF: predicated region fallthrough
CT: control target
= control target key end

     0   :  { %s4282_s0 = inlined_call_operand.hbm [shape: f32[2,16,32], index: 0, kind: input, shape index: {}]   ;;  %s4283_s1 = inlined_call_operand.hbm [shape: bf16[2,16,32], index: 1, kind: input, shape index: {}]   ;;  %s4284_s2 = inlined_call_operand.hbm [shape: bf16[2,16,32], index: 2, kind: input, shape index: {}]   ;;  %s4285_s3 = inlined_call_operand.vmem [shape: f32[2,1,16], index: 3, kind: input, shape index: {}]   ;;  %s4286_s4 = inlined_call_operand.vmem [shape: f32[2,16,1], index: 4, kind: input, shape index: {}]   ;;  %s4287_s5 = inlined_call_operand.vmem [shape: f32[1,32], index: 5, kind: input, shape index: {}]   ;;  %s4288_s6 = inlined_call_operand.hbm [shape: f32[1,32], index: 6, kind: input, shape index: {}]   ;;  %s4289_s7 = inlined_call_operand.hbm [shape: bf16[32,96], index: 7, kind: input, shape index: {}]   ;;  %s4290_s8 = inlined_call_operand.hbm [shape: bf16[32,32], index: 8, kind: input, shape index: {}]   ;;  %s4291_s9 = inlined_call_operand.hbm [shape: f32[1,32], index: 9, kind: input, shape index: {}]   ;;  %s4292_s10 = inlined_call_operand.hbm [shape: f32[1,32], index: 10, kind: input, shape index: {}]   ;;  %s4293_s11 = inlined_call_operand.vmem [shape: bf16[9,32,128], index: 11, kind: input, shape index: {}]   ;;  %s4294_s12 = inlined_call_operand.hbm [shape: f32[1,128], index: 12, kind: input, shape index: {}]   ;;  %s4295_s13 = inlined_call_operand.vmem [shape: bf16[128,32], index: 13, kind: input, shape index: {}]   ;;  %s4296_s14 = inlined_call_operand.vmem [shape: f32[1,32], index: 14, kind: input, shape index: {}]   ;;  %s4297_s15 = inlined_call_operand.hbm [shape: f32[2,16,32], index: 15, kind: output, shape index: {}]  }
   0x1   :  { %4331 = sst [smem:[#allocation34_spill]] %s4283_s1 }
   0x2   :  { %4332 = sst [smem:[#allocation35_spill]] %s4285_s3 }
   0x3   :  { %4333 = sst [smem:[#allocation36_spill]] %s4286_s4 }
   0x4   :  { %4334 = sst [smem:[#allocation37_spill]] %s4287_s5 }
   0x5   :  { %4335 = sst [smem:[#allocation38_spill]] %s4288_s6 }
   0x6   :  { %4336 = sst [smem:[#allocation39_spill]] %s4290_s8 }
   0x7   :  { %4337 = sst [smem:[#allocation40_spill]] %s4292_s10 }
   0x8   :  { %4338 = sst [smem:[#allocation41_spill]] %s4293_s11 }
   0x9   :  { %4339 = sst [smem:[#allocation42_spill]] %s4295_s13 }
   0xa   :  { %4340 = sst [smem:[#allocation43_spill]] %s4296_s14 }
   0xb   :  { %4341 = sst [smem:[#allocation44_spill]] %s4297_s15 }
   0xc   :  { %20 = vsyncpa [#allocation4], 0 }
   0xd   :  { %22 = vsyncpa [#allocation4 + $0x1], 0 }
   0xe   :  { %23 = vsyncpa [#allocation7], 0 }
   0xf   :  { %25 = vsyncpa [#allocation7 + $0x1], 0 }
  0x10   :  { %26 = vsyncpa [#allocation10], 0 }
  0x11   :  { %27 = vsyncpa [#allocation13], 0 }
  0x12   :  { %28 = vsyncpa [#allocation16], 0 }
  0x13   :  { %29 = vsyncpa [#allocation5], 0 }
  0x14   :  { %31 = vsyncpa [#allocation5 + $0x1], 0  ;;  %s3520_s18 = smov 0   ;;  %s3522_s19 = smov 0  }
  0x15   :  { %s3524_s20 = smov 0   ;;  %s3526_s21 = smov 0  }
  0x16 LB: > { %4342 = sst [smem:[#allocation25_spill]] %s3401_s18  ;;  %s3415_s22 = smov [#allocation9]   ;;  %s3413_s21 = sphi %s3526_s21, %s4396_s21   ;;  %s3409_s20 = sphi %s3524_s20, %s4399_s20   ;;  %s3405_s19 = sphi %s3522_s19, %s4398_s19   ;;  %s3401_s18 = sphi %s3520_s18, %s4397_s18  }
  0x17   : > { %4343 = sst [smem:[#allocation26_spill]] %s3405_s19  ;;  %s424_s23 = sshll.u32 %s3415_s22, 4  ;;  %s3546_s23 = int_to_ptr.vmem [resolvable:$true] %s424_s23 }
  0x18   : > { %4344 = sst [smem:[#allocation27_spill]] %s3409_s20  ;;  %s3541_s24 = sadd.s32 4294967295, %s3413_s21  }
  0x19   : > { %4345 = sst [smem:[#allocation28_spill]] %s3541_s24  ;;  %p2511_p0 = scmp.ge.s32.totalorder %s3413_s21, 1 }
  0x1a   : > { %p4311_p1 = scmp.eq.s32.totalorder %s3541_s24, 0  ;;  %p408_p2 = scmp.lt.s32.totalorder %s3413_s21, 3 }
  0x1b   : > { %s3416_s26 = smov [#allocation12]   ;;  %s3417_s29 = smov [#allocation15]  }
  0x1c   : > { %p3548_p3 = pnand %p2511_p0, %p408_p2  ;;  %s447_s27 = sshll.u32 %s3416_s26, 4  ;;  %s3561_s27 = int_to_ptr.vmem [resolvable:$true] %s447_s27 }
  0x1d   : > { %s472_s30 = sshll.u32 %s3417_s29, 4  ;;  %s4348_s6 = sld [smem:[#allocation38_spill]]  ;;  %s3563_s30 = int_to_ptr.vmem [resolvable:$true] %s472_s30 }
  0x1e   : > { %s4346_s25 = scalar_select %p3548_p3, 1, 0 }
  0x1f   : > { %p2897_p5 = pneg %p3548_p3 }
  0x21   : > { %p3557_p6 = pnand %p2897_p5, %p4311_p1 }
  0x23   : > { %s4347_s28 = scalar_select %p3557_p6, 1, 0 }
  0x24   : > { %s3073_s22 = scalar_lea.hbm %s4348_s6, 16  ;;  %p3573_p8 = pneg %p3557_p6 }
  0x25   : > { %p3074_p7 = scmp.ne.s32.totalorder %s4348_s6, %s3073_s22  ;;  %p3080_p11 = scmp.lt.u32.totalorder %s3073_s22, %s4348_s6 }
  0x26   : > { %s4349_s26 = scalar_select %p3573_p8, 1, 0 }
  0x27   : > { %p3076_p9 = pnand %p3573_p8, %p3074_p7 }
  0x29   : > { %p3077_p10 = pneg %p3076_p9 }
  0x2b   : > { %p3082_p12 = pnand %p3080_p11, %p3077_p10 }
  0x2d   : > { %3085 = shalt.err (!%p3082_p12)
}
  0x2e   : > { %s3086_s14 = scalar_lea.vmem %s3546_s23, 16  ;;  %s3093_s15 = scalar_lea.vmem %s3546_s23, 32 }
  0x2f   : > { %p3087_p13 = scmp.ne.s32.totalorder %s3546_s23, %s3086_s14  ;;  %p3094_p5 = scmp.lt.s32.totalorder %s3546_s23, %s3546_s23 }
  0x30   : > { %p3095_p7 = scmp.lt.s32.totalorder %s3093_s15, %s3086_s14 }
  0x31   : > { %p3089_p0 = pnand %p3087_p13, %p3573_p8 }
  0x32   : > { %p3096_p9 = por %p3095_p7, %p3094_p5 }
  0x33   : > { %p3090_p2 = pneg %p3089_p0 }
  0x35   : > { %p3097_p4 = pnand %p3096_p9, %p3090_p2 }
  0x37   : > { %3100 = shalt.err (!%p3097_p4)
}
  0x38   : > { %2900 = dma.hbm_to_vmem [thread:$0]  (!%p3557_p6), %s4348_s6, 16, %s3546_s23, [#allocation10]  }
  0x39   : > { %s4350_s8 = sld [smem:[#allocation39_spill]] }
  0x3f   : > { %s3101_s29 = scalar_lea.hbm %s4350_s8, 256 }
  0x40   : > { %p3102_p10 = scmp.ne.s32.totalorder %s4350_s8, %s3101_s29  ;;  %p3108_p4 = scmp.lt.u32.totalorder %s3101_s29, %s4350_s8 }
  0x42   : > { %p3104_p11 = pnand %p3102_p10, %p3573_p8 }
  0x44   : > { %p3105_p12 = pneg %p3104_p11 }
  0x46   : > { %p3110_p13 = pnand %p3108_p4, %p3105_p12 }
  0x48   : > { %3113 = shalt.err (!%p3110_p13)
}
  0x49   : > { %s3114_s23 = scalar_lea.vmem %s3561_s27, 256  ;;  %p3122_p7 = scmp.lt.s32.totalorder %s3561_s27, %s3561_s27 }
  0x4a   : > { %p3115_p0 = scmp.ne.s32.totalorder %s3561_s27, %s3114_s23  ;;  %p3123_p9 = scmp.lt.s32.totalorder %s3114_s23, %s3114_s23 }
  0x4c   : > { %p3117_p2 = pnand %p3115_p0, %p3573_p8  ;;  %p3124_p10 = por %p3123_p9, %p3122_p7 }
  0x4e   : > { %p3118_p5 = pneg %p3117_p2 }
  0x50   : > { %p3125_p11 = pnand %p3124_p10, %p3118_p5 }
  0x52   : > { %3128 = shalt.err (!%p3125_p11)
}
  0x53   : > { %s4302_s4 = smov 64   ;;  %s4304_s11 = smov 4  }
  0x54   : > { %2906 = dma.hbm_to_vmem [thread:$0]  (!%p3557_p6), %s4350_s8, 256, %s3561_s27, [#allocation13], %s4302_s4, %s4302_s4, %s4304_s11  }
  0x55   : > { %s4351_s10 = sld [smem:[#allocation40_spill]] }
  0x5b   : > { %s3129_s29 = scalar_lea.hbm %s4351_s10, 16 }
  0x5c   : > { %p3130_p12 = scmp.ne.s32.totalorder %s4351_s10, %s3129_s29  ;;  %p3136_p0 = scmp.lt.u32.totalorder %s3129_s29, %s4351_s10 }
  0x5e   : > { %p3132_p4 = pnand %p3130_p12, %p3573_p8 }
  0x60   : > { %p3133_p13 = pneg %p3132_p4 }
  0x62   : > { %p3138_p2 = pnand %p3136_p0, %p3133_p13 }
  0x64   : > { %3141 = shalt.err (!%p3138_p2)
}
  0x65   : > { %s3142_s27 = scalar_lea.vmem %s3563_s30, 16  ;;  %s3149_s13 = scalar_lea.vmem %s3563_s30, 32 }
  0x66   : > { %p3143_p5 = scmp.ne.s32.totalorder %s3563_s30, %s3142_s27  ;;  %p3150_p10 = scmp.lt.s32.totalorder %s3563_s30, %s3563_s30 }
  0x67   : > { %p3151_p11 = scmp.lt.s32.totalorder %s3149_s13, %s3142_s27 }
  0x68   : > { %p3145_p7 = pnand %p3143_p5, %p3573_p8 }
  0x69   : > { %p3152_p12 = por %p3151_p11, %p3150_p10 }
  0x6a   : > { %p3146_p9 = pneg %p3145_p7 }
  0x6c   : > { %p3153_p4 = pnand %p3152_p12, %p3146_p9 }
  0x6e   : > { %3156 = shalt.err (!%p3153_p4)
}
  0x6f   : > { %2912 = dma.hbm_to_vmem [thread:$0]  (!%p3557_p6), %s4351_s10, 16, %s3563_s30, [#allocation16]  }
  0x70   : > { %s2510_s17 = sadd.s32 4294967294, %s3413_s21   ;;  %s3647_s22 = sadd.s32 1, %s3413_s21  }
  0x71   : > { %4352 = sst [smem:[#allocation29_spill]] %s3647_s22  ;;  %s44_s29 = sadd.s32 1, %s3409_s20 }
  0x72   : > { %s41_s14 = ssub.s32 %s3413_s21, %s3647_s22  ;;  %p51_p13 = scmp.ne.s32.totalorder %s3409_s20, %s3405_s19 }
  0x73   : > { %p42_p0 = scmp.eq.s32.totalorder %s41_s14, 0  ;;  %p52_p2 = scmp.eq.s32.totalorder %s3413_s21, 0 }
  0x74   : > { %p57_p5 = scmp.ne.s32.totalorder %s3405_s19, %s3401_s18  ;;  %p395_p7 = scmp.eq.s32.totalorder %s3541_s24, 1 }
  0x75   : > { %s3659_s15 = scalar_select %p42_p0, %s3409_s20, %s44_s29  }
  0x76   : > { %p53_p9 = por %p52_p2, %p51_p13  ;;  %p3663_p10 = por %p4311_p1, %p57_p5 }
  0x77   : > { %4353 = sst [smem:[#allocation30_spill]] %s3659_s15  ;;  %p3667_p11 = por %p395_p7, %p51_p13 }
  0x78   : > { %s4354_s30 = scalar_select %p3663_p10, 1, 0 }
  0x79   : > { %s4356_s23 = scalar_select %p3667_p11, 1, 0 }
  0x7a   : > { %4355 = sst [smem:[#allocation31_spill]] %s4354_s30  ;;  %p401_p12 = scmp.eq.s32.totalorder %s2510_s17, 1 }
  0x7b   : > { %4357 = sst [smem:[#allocation32_spill]] %s4356_s23  ;;  %p2936_p4 = scmp.lt.s32.totalorder %s3413_s21, 2 }
  0x7c   : > { %s3673_s27 = sand.u32 1, %s3409_s20   ;;  %p3675_p3 = por %p401_p12, %p57_p5 }
  0x7d   : > { %s524_s6 = sand.u32 1, %s3413_s21   ;;  %p3680_p0 = pnand %p2936_p4, %p53_p9 }
  0x7e   : > { %s4358_s13 = scalar_select %p3675_p3, 1, 0 }
  0x7f   : > { %s4360_s16 = scalar_select %p3680_p0, 1, 0 }
  0x80   : > { %4359 = sst [smem:[#allocation33_spill]] %s4358_s13  ;;  %s4309_s29 = sshll.u32 %s3673_s27, 3 }
  0x81   : > { %s4310_s14 = sshll.u32 %s3413_s21, 7  ;;  %s4361_s1 = sld [smem:[#allocation34_spill]] }
  0x82   : > { %s528_s8 = scalar_lea.vmem [#allocation6], %s4309_s29  ;;  %s3697_s15 = scalar_lea.sflag [#allocation7], %s524_s6 }
  0x83   : > { %s535_s10 = sshll.u32 %s528_s8, 4  ;;  %p3703_p2 = pneg %p3680_p0  ;;  %s3695_s10 = int_to_ptr.vmem [resolvable:$true] %s535_s10 }
  0x85   : > { %s4362_s22 = scalar_select %p3703_p2, 1, 0 }
  0x87   : > { %s3691_s11 = scalar_lea.hbm %s4361_s1, %s4310_s14  ;;  %s3162_s29 = scalar_lea.hbm %s4361_s1, 256 }
  0x88   : > { %s3157_s20 = scalar_lea.hbm %s3691_s11, 128  ;;  %p3163_p9 = scmp.lt.u32.totalorder %s3691_s11, %s4361_s1 }
  0x89   : > { %p3158_p13 = scmp.ne.s32.totalorder %s3691_s11, %s3157_s20  ;;  %p3164_p12 = scmp.lt.u32.totalorder %s3162_s29, %s3157_s20 }
  0x8a   : > { %p3166_p1 = scmp.lt.u32.totalorder %s3157_s20, %s3691_s11 }
  0x8b   : > { %p3160_p5 = pnand %p3703_p2, %p3158_p13  ;;  %p3165_p4 = por %p3164_p12, %p3163_p9 }
  0x8d   : > { %p3161_p7 = pneg %p3160_p5  ;;  %p3167_p3 = por %p3166_p1, %p3165_p4 }
  0x8f   : > { %p3168_p11 = pnand %p3167_p3, %p3161_p7 }
  0x91   : > { %3171 = shalt.err (!%p3168_p11)
}
  0x92   : > { %s3172_s6 = scalar_lea.vmem %s3695_s10, 128  ;;  %s3420_s4 = smov [#allocation6]  }
  0x93   : > { %p3173_p13 = scmp.ne.s32.totalorder %s3695_s10, %s3172_s6  ;;  %s3177_s17 = sshll.u32 %s3420_s4, 4  ;;  %s3178_s17 = int_to_ptr.vmem [resolvable:$false] %s3177_s17 }
  0x94   : > { %s3179_s14 = scalar_lea.vmem %s3178_s17, 256  ;;  %p3180_p6 = scmp.lt.s32.totalorder %s3695_s10, %s3178_s17 }
  0x95   : > { %p3175_p5 = pnand %p3173_p13, %p3703_p2  ;;  %p3181_p8 = scmp.lt.s32.totalorder %s3179_s14, %s3172_s6 }
  0x97   : > { %p3176_p10 = pneg %p3175_p5  ;;  %p3182_p9 = por %p3181_p8, %p3180_p6 }
  0x99   : > { %p3183_p12 = pnand %p3182_p9, %p3176_p10 }
  0x9b   : > { %3186 = shalt.err (!%p3183_p12)
}
  0x9c   : > { %s4363_s20 = smov 4   ;;  %s4364_s29 = smov 64  }
  0x9d   : > { %2922 = dma.hbm_to_vmem [thread:$0]  (!%p3680_p0), %s3691_s11, 128, %s3695_s10, %s3697_s15, %s4364_s29, %s4364_s29, %s4363_s20  }
  0x9e   : > { %s4365_s8 = sshll.u32 %s3413_s21, 7  ;;  %s4366_s17 = sshll.u32 %s3673_s27, 3 }
  0x9f   : > { %s3735_s6 = scalar_lea.hbm %s4284_s2, %s4365_s8  ;;  %s549_s14 = scalar_lea.vmem [#allocation8], %s4366_s17 }
  0xa0   : > { %s556_s13 = sshll.u32 %s549_s14, 4  ;;  %s3421_s18 = smov [#allocation11]   ;;  %s3739_s13 = int_to_ptr.vmem [resolvable:$true] %s556_s13 }
  0xa1   : > { %s434_s23 = sshll.u32 %s3421_s18, 4  ;;  %s3422_s3 = smov [#allocation14]   ;;  %s435_s23 = int_to_ptr.vmem [resolvable:$true] %s434_s23 }
  0xa2   : > { %s461_s5 = sshll.u32 %s3422_s3, 4  ;;  %s3187_s10 = scalar_lea.hbm %s4289_s7, 256  ;;  %s462_s5 = int_to_ptr.vmem [resolvable:$true] %s461_s5 }
  0xa3   : > { %p3188_p1 = scmp.ne.s32.totalorder %s4289_s7, %s3187_s10  ;;  %p4367_p3 = scmp.ne.s32.totalorder %s4349_s26, 0 }
  0xa4   : > { %p3194_p10 = scmp.lt.u32.totalorder %s3187_s10, %s4289_s7 }
  0xa5   : > { %p3190_p6 = pnand %p3188_p1, %p4367_p3 }
  0xa7   : > { %p3191_p8 = pneg %p3190_p6 }
  0xa9   : > { %p3196_p11 = pnand %p3194_p10, %p3191_p8 }
  0xab   : > { %3199 = shalt.err (!%p3196_p11)
}
  0xac   : > { %s3200_s18 = scalar_lea.vmem %s435_s23, 256  ;;  %p3208_p5 = scmp.lt.s32.totalorder %s435_s23, %s435_s23 }
  0xad   : > { %p3201_p7 = scmp.ne.s32.totalorder %s435_s23, %s3200_s18  ;;  %p3209_p9 = scmp.lt.s32.totalorder %s3200_s18, %s3200_s18 }
  0xaf   : > { %p3203_p4 = pnand %p3201_p7, %p4367_p3  ;;  %p3210_p12 = por %p3209_p9, %p3208_p5 }
  0xb1   : > { %p3204_p13 = pneg %p3203_p4 }
  0xb3   : > { %p3211_p0 = pnand %p3210_p12, %p3204_p13 }
  0xb5   : > { %3214 = shalt.err (!%p3211_p0)
}
  0xb6   : > { %p4368_p1 = scmp.ne.s32.totalorder %s4347_s28, 0  ;;  %s3215_s4 = scalar_lea.hbm %s4291_s9, 16 }
  0xb7   : > { %p3216_p6 = scmp.ne.s32.totalorder %s4291_s9, %s3215_s4  ;;  %p3222_p10 = scmp.lt.u32.totalorder %s3215_s4, %s4291_s9 }
  0xb8   : > { %2903 = dma.hbm_to_vmem [thread:$0]  (!%p4368_p1), %s4289_s7, 256, %s435_s23, [#allocation10], %s4364_s29, %s4364_s29, %s4363_s20  }
  0xb9   : > { %p3218_p0 = pnand %p3216_p6, %p4367_p3 }
  0xbb   : > { %p3219_p8 = pneg %p3218_p0 }
  0xbd   : > { %p3224_p11 = pnand %p3222_p10, %p3219_p8 }
  0xbf   : > { %3227 = shalt.err (!%p3224_p11)
}
  0xc0   : > { %s3228_s1 = scalar_lea.vmem %s462_s5, 16  ;;  %s3235_s23 = scalar_lea.vmem %s462_s5, 32 }
  0xc1   : > { %p3229_p7 = scmp.ne.s32.totalorder %s462_s5, %s3228_s1  ;;  %p3236_p5 = scmp.lt.s32.totalorder %s462_s5, %s462_s5 }
  0xc2   : > { %p3237_p9 = scmp.lt.s32.totalorder %s3235_s23, %s3228_s1 }
  0xc3   : > { %p3231_p4 = pnand %p3229_p7, %p4367_p3 }
  0xc4   : > { %p3238_p12 = por %p3237_p9, %p3236_p5 }
  0xc5   : > { %p3232_p13 = pneg %p3231_p4 }
  0xc7   : > { %p3239_p2 = pnand %p3238_p12, %p3232_p13 }
  0xc9   : > { %3242 = shalt.err (!%p3239_p2)
}
  0xca   : > { %2909 = dma.hbm_to_vmem [thread:$0]  (!%p4368_p1), %s4291_s9, 16, %s462_s5, [#allocation13]  }
  0xcb   : > { %s3423_s3 = smov [#allocation17]   ;;  %s2519_s24 = sshll.u32 %s3673_s27, 4 }
  0xcc   : > { %s486_s19 = sshll.u32 %s3423_s3, 4  ;;  %s3243_s17 = scalar_lea.hbm %s4294_s12, 16  ;;  %s487_s19 = int_to_ptr.vmem [resolvable:$true] %s486_s19 }
  0xcd   : > { %p3244_p2 = scmp.ne.s32.totalorder %s4294_s12, %s3243_s17  ;;  %p3250_p8 = scmp.lt.u32.totalorder %s3243_s17, %s4294_s12 }
  0xcf   : > { %p3246_p6 = pnand %p3244_p2, %p4367_p3 }
  0xd1   : > { %p3247_p0 = pneg %p3246_p6 }
  0xd3   : > { %p3252_p10 = pnand %p3250_p8, %p3247_p0 }
  0xd5   : > { %3255 = shalt.err (!%p3252_p10)
}
  0xd6   : > { %s3256_s5 = scalar_lea.vmem %s487_s19, 16  ;;  %s3263_s23 = scalar_lea.vmem %s487_s19, 32 }
  0xd7   : > { %p3257_p11 = scmp.ne.s32.totalorder %s487_s19, %s3256_s5  ;;  %p3264_p13 = scmp.lt.s32.totalorder %s487_s19, %s487_s19 }
  0xd8   : > { %p3265_p5 = scmp.lt.s32.totalorder %s3263_s23, %s3256_s5 }
  0xd9   : > { %p3259_p7 = pnand %p3257_p11, %p4367_p3 }
  0xda   : > { %p3266_p9 = por %p3265_p5, %p3264_p13 }
  0xdb   : > { %p3260_p4 = pneg %p3259_p7 }
  0xdd   : > { %p3267_p12 = pnand %p3266_p9, %p3260_p4 }
  0xdf   : > { %3270 = shalt.err (!%p3267_p12)
}
  0xe0   : > { %2915 = dma.hbm_to_vmem [thread:$0]  (!%p4368_p1), %s4294_s12, 16, %s487_s19, [#allocation16]  }
  0xe1   : > { %s2636_s3 = sshll.u32 %s3413_s21, 8  ;;  %s507_s17 = scalar_lea.vmem [#allocation3], %s2519_s24 }
  0xe2   : > { %s3803_s4 = scalar_lea.hbm %s4282_s0, %s2636_s3  ;;  %s514_s14 = sshll.u32 %s507_s17, 4  ;;  %s3805_s14 = int_to_ptr.vmem [resolvable:$true] %s514_s14 }
  0xe3   : > { %s504_s28 = scalar_lea.sflag [#allocation4], %s3673_s27  ;;  %s3271_s10 = scalar_lea.hbm %s3803_s4, 256 }
  0xe4   : > { %p3272_p3 = scmp.ne.s32.totalorder %s3803_s4, %s3271_s10  ;;  %p4369_p2 = scmp.ne.s32.totalorder %s4362_s22, 0 }
  0xe5   : > { %s3276_s1 = scalar_lea.hbm %s4282_s0, 512  ;;  %p3277_p0 = scmp.lt.u32.totalorder %s3803_s4, %s4282_s0 }
  0xe6   : > { %p3274_p6 = pnand %p3272_p3, %p4369_p2  ;;  %p3278_p8 = scmp.lt.u32.totalorder %s3276_s1, %s3271_s10 }
  0xe7   : > { %p3280_p11 = scmp.lt.u32.totalorder %s3271_s10, %s3803_s4 }
  0xe8   : > { %p3275_p1 = pneg %p3274_p6  ;;  %p3279_p10 = por %p3278_p8, %p3277_p0 }
  0xea   : > { %p3281_p7 = por %p3280_p11, %p3279_p10 }
  0xec   : > { %p3282_p4 = pnand %p3281_p7, %p3275_p1 }
  0xee   : > { %3285 = shalt.err (!%p3282_p4)
}
  0xef   : > { %s3286_s24 = scalar_lea.vmem %s3805_s14, 256  ;;  %s3424_s8 = smov [#allocation3]  }
  0xf0   : > { %p3287_p13 = scmp.ne.s32.totalorder %s3805_s14, %s3286_s24  ;;  %s3291_s18 = sshll.u32 %s3424_s8, 4  ;;  %s3292_s18 = int_to_ptr.vmem [resolvable:$false] %s3291_s18 }
  0xf1   : > { %s3293_s3 = scalar_lea.vmem %s3292_s18, 512  ;;  %p3294_p12 = scmp.lt.s32.totalorder %s3805_s14, %s3292_s18 }
  0xf2   : > { %p3289_p5 = pnand %p3287_p13, %p4369_p2  ;;  %p3295_p3 = scmp.lt.s32.totalorder %s3293_s3, %s3286_s24 }
  0xf4   : > { %p3290_p9 = pneg %p3289_p5  ;;  %p3296_p6 = por %p3295_p3, %p3294_p12 }
  0xf6   : > { %p3297_p0 = pnand %p3296_p6, %p3290_p9 }
  0xf8   : > { %3300 = shalt.err (!%p3297_p0)
}
  0xf9   : > { %s3425_s30 = smov 128   ;;  %s3426_s26 = smov 8  }
  0xfa   : > { %p4370_p1 = scmp.ne.s32.totalorder %s4360_s16, 0  ;;  %s3301_s17 = scalar_lea.hbm %s3735_s6, 128 }
  0xfb   : > { %p3302_p8 = scmp.ne.s32.totalorder %s3735_s6, %s3301_s17  ;;  %s3306_s11 = scalar_lea.hbm %s4284_s2, 256 }
  0xfc   : > { %2919 = dma.hbm_to_vmem [thread:$0]  (!%p4370_p1), %s3803_s4, 256, %s3805_s14, %s504_s28, %s3425_s30, %s3425_s30, %s3426_s26  }
  0xfd   : > { %p3304_p10 = pnand %p3302_p8, %p4369_p2  ;;  %p3307_p7 = scmp.lt.u32.totalorder %s3735_s6, %s4284_s2 }
  0xfe   : > { %p3308_p4 = scmp.lt.u32.totalorder %s3306_s11, %s3301_s17  ;;  %p3310_p5 = scmp.lt.u32.totalorder %s3301_s17, %s3735_s6 }
  0xff   : > { %p3305_p11 = pneg %p3304_p10 }
 0x100   : > { %p3309_p13 = por %p3308_p4, %p3307_p7 }
 0x102   : > { %p3311_p9 = por %p3310_p5, %p3309_p13 }
 0x104   : > { %p3312_p12 = pnand %p3311_p9, %p3305_p11 }
 0x106   : > { %3315 = shalt.err (!%p3312_p12)
}
 0x107   : > { %s3316_s27 = scalar_lea.vmem %s3739_s13, 128  ;;  %s3427_s4 = smov [#allocation8]  }
 0x108   : > { %p3317_p3 = scmp.ne.s32.totalorder %s3739_s13, %s3316_s27  ;;  %s3321_s14 = sshll.u32 %s3427_s4, 4  ;;  %s3322_s14 = int_to_ptr.vmem [resolvable:$false] %s3321_s14 }
 0x109   : > { %s3323_s28 = scalar_lea.vmem %s3322_s14, 256  ;;  %p3324_p8 = scmp.lt.s32.totalorder %s3739_s13, %s3322_s14 }
 0x10a   : > { %p3319_p6 = pnand %p3317_p3, %p4369_p2  ;;  %p3325_p10 = scmp.lt.s32.totalorder %s3323_s28, %s3316_s27 }
 0x10c   : > { %p3320_p0 = pneg %p3319_p6  ;;  %p3326_p7 = por %p3325_p10, %p3324_p8 }
 0x10e   : > { %p3327_p4 = pnand %p3326_p7, %p3320_p0 }
 0x110   : > { %3330 = shalt.err (!%p3327_p4)
}
 0x111   : > { %2925 = dma.hbm_to_vmem [thread:$0]  (!%p4370_p1), %s3735_s6, 128, %s3739_s13, %s3697_s15, %s4364_s29, %s4364_s29, %s4363_s20  }
 0x112   : > { %p4371_p2 = scmp.ne.s32.totalorder %s4346_s25, 0 }
 0x113   : > { %s4372_s22 = sld [smem:[#allocation26_spill]] (!%p4371_p2)  ;;  %s4373_s23 = sld [smem:[#allocation31_spill]] (!%p4371_p2) }
 0x114   : > { %582 = sbr.rel (%p4371_p2) target bundleno = 2804 (0xaf4), region = 80 }
 0x119   : > { %s3859_s24 = sand.u32 (!%p4371_p2), 1, %s4372_s22   ;;  %p4374_p11 = scmp.ne.s32.totalorder (!%p4371_p2), %s4373_s23, 0 }
 0x11a   : > { %s2529_s8 = sshll.u32 (!%p4371_p2), %s3859_s24, 4  ;;  %s585_s18 = scalar_lea.sflag (!%p4371_p2), [#allocation4], %s3859_s24 }
 0x11b   : > { %s588_s16 = scalar_lea.vmem [#allocation3], %s2529_s8 }
 0x11c   : > { %3376 = dma.done.wait (%p4374_p11), %s585_s18, 256  }
 0x11d   : > { %3378 = vsyncadd (%p4374_p11), %s585_s18, 4294967040  ;;  %s4375_s15 = sld [smem:[#allocation28_spill]]  ;;  %s2530_s13 = sshll.u32 %s3859_s24, 3 }
 0x11e   : > { %s3871_s29 = scalar_lea.vmem [#allocation6], %s2530_s13 }
 0x123   : > { %s593_s25 = sand.u32 1, %s4375_s15  }
 0x124   : > { %s594_s20 = scalar_lea.sflag [#allocation7], %s593_s25 }
 0x125   : > { %3380 = dma.done.wait (%p4374_p11), %s594_s20, 256  }
 0x126   : > { %3382 = vsyncadd (%p4374_p11), %s594_s20, 4294967040  ;;  %s3877_s6 = scalar_lea.vmem [#allocation8], %s2530_s13  ;;  %p4376_p1 = scmp.eq.s32.totalorder %s4375_s15, 0 }
 0x128   : > { %3384 = dma.done.wait (%p4376_p1), [#allocation10], 272   ;;  %p4377_p13 = pmov %p4376_p1 }
 0x129   : > { %p4378_p5 = pmov %p4376_p1 }
 0x12a   : > { %3386 = vsyncadd (%p4377_p13), [#allocation10], 4294967024 }
 0x12b   : > { %3388 = dma.done.wait (%p4378_p5), [#allocation13], 272   ;;  %p4379_p9 = pmov %p4376_p1 }
 0x12c   : > { %p4380_p12 = pmov %p4376_p1 }
 0x12d   : > { %3390 = vsyncadd (%p4379_p9), [#allocation13], 4294967024 }
 0x12e   : > { %3392 = dma.done.wait (%p4380_p12), [#allocation16], 32   ;;  %p4381_p3 = pmov %p4376_p1 }
 0x12f   : > { %vm711_vm0 = vcmask 261120   ;;  %v3891_v0 = vld [vmem:[%s588_s16] sm:$0xff]  ;;  %v3893_v1 = vld [vmem:[%s588_s16 + $0x8] sm:$0xff]  ;;  %s4382_s26 = sld [smem:[#allocation37_spill]]  ;;  %v3428_v44 = vmov 0.0   ;;  %vm3429_vm1 = vmmov 0  }
 0x130   : > { %3394 = vsyncadd (%p4381_p3), [#allocation16], 4294967264  ;;  %v712_v2 = vsel %vm711_vm0, %v3891_v0, 0.0  ;;  %v715_v3 = vsel %vm711_vm0, %v3893_v1, 0.0  ;;  %v2999_v14 = vld [vmem:[#allocation11] sm:$0xff]   ;;  %v3000_v15 = vld [vmem:[#allocation11 + $0x8] sm:$0xff]   ;;  %2729 = vmatprep.subr.bf16.mxu1 %v3428_v44  ;;  %2731 = vmatprep.mubr.msk.bf16.mxu1 %vm3429_vm1, %v3428_v44 }
 0x131   : > { %713 = vadd.xlane.f32.xlu0 %v712_v2  ;;  %2709 = vmatprep.subr.bf16.mxu0 %v2999_v14  ;;  %v2642_v26 = vld [vmem:[%s3871_s29] sm:$0xff]   ;;  %v2646_v27 = vld [vmem:[%s3877_s6] sm:$0xff]   ;;  %s3430_s17 = smov 80   ;;  %s3431_s10 = smov 96   ;;  %vm851_vm2 = vcmask 130048   ;;  %vm1097_vm3 = vcmask 261248  }
 0x132   : > { %2710 = vmatpush3.bf16.msra.mxu0 %v2999_v14  ;;  %v2542_v29 = vld [vmem:[#allocation9] ss:$0 sm:$0xff]  ;;  %v2643_v31 = vunpack.c.l.bf16 %v2642_v26  ;;  %v2647_v32 = vunpack.c.l.bf16 %v2646_v27  ;;  %v2644_v35 = vunpack.c.h.bf16 %v2642_v26  ;;  %v2648_v36 = vunpack.c.h.bf16 %v2646_v27  ;;  %s3432_s19 = smov 112   ;;  %p695_p6 = scmp.lt.s32.totalorder %s4375_s15, 1 }
 0x133   : > { %2711 = vmatprep.subr.bf16.mxu0 %v3000_v15  ;;  %s4383_s27 = sld [smem:[#allocation35_spill]]  ;;  %s3433_s14 = smov 48  }
 0x134   : > { %s3947_s11 = scalar_select %p695_p6, %s4375_s15, 1 }
 0x135   : > { %716 = vadd.xlane.f32.xlu0 %v715_v3  ;;  %v2541_v23 = vld [vmem:[%s4382_s26] ss:$0 sm:$0xff]  ;;  %s3434_s28 = smov 64   ;;  %s3435_s22 = smov 16  }
 0x136   : > { %2712 = vmatpush3.bf16.msra.mxu0 %v3000_v15  ;;  %s2639_s23 = sshll.u32 %s3947_s11, 4  ;;  %s4384_s25 = sld [smem:[#allocation36_spill]] }
 0x137   : > { %2717 = vmatprep.subr.bf16.mxu0 %v3428_v44  ;;  %s4385_s6 = sld [smem:[#allocation41_spill]]  ;;  %s4386_s18 = sld [smem:[#allocation42_spill]] }
 0x138   : > { %s4390_s29 = sld [smem:[#allocation44_spill]]  ;;  %s3437_s30 = smov [#allocation18]  }
 0x139   : > { %s697_s4 = scalar_lea.vmem %s4383_s27, %s3947_s11  ;;  %s3335_s26 = sshll.u32 %s3437_s30, 4  ;;  %s3336_s26 = int_to_ptr.vmem [resolvable:$false] %s3335_s26 }
 0x13a   : > { %v2547_v61 = vld [vmem:[%s697_s4] ss:$0 sm:$0xff] }
 0x13c   : > { %s702_s13 = scalar_lea.vmem %s4384_s25, %s2639_s23  ;;  %s2640_s23 = sshll.u32 %s4375_s15, 8 }
 0x13d   : > { %s4387_s16 = smov %s4386_s18 }
 0x13e   : > { %s4233_s3 = scalar_lea.hbm %s4390_s29, %s2640_s23 }
 0x1be   : > { %v714_v4 = vpop.xlane.xlu0 %713 }
 0x1bf   : > { %v719_v5 = vmul.f32 0.03125, %v714_v4 }
 0x1c1   : > { %v721_v6 = vsub.f32 %v3891_v0, %v719_v5 }
 0x1c2   : > { %v717_v7 = vpop.xlane.xlu0 %716 }
 0x1c3   : > { %v720_v8 = vmul.f32 0.03125, %v717_v7  ;;  %v723_v9 = vmul.f32 %v721_v6, %v721_v6 }
 0x1c5   : > { %v722_v10 = vsub.f32 %v3893_v1, %v720_v8  ;;  %v725_v11 = vsel %vm711_vm0, %v723_v9, 0.0 }
 0x1c6   : > { %726 = vadd.xlane.f32.xlu1 %v725_v11 }
 0x1c7   : > { %v724_v12 = vmul.f32 %v722_v10, %v722_v10 }
 0x1c9   : > { %v728_v13 = vsel %vm711_vm0, %v724_v12, 0.0 }
 0x1ca   : > { %729 = vadd.xlane.f32.xlu1 %v728_v13 }
 0x253   : > { %v727_v16 = vpop.xlane.xlu1 %726 }
 0x254   : > { %v731_v17 = vmul.f32 0.03125, %v727_v16 }
 0x256   : > { %v733_v18 = vadd.f32 1e-05, %v731_v17 }
 0x257   : > { %v730_v19 = vpop.xlane.xlu1 %729 }
 0x258   : > { %3029 = vrsqrt.f32 %v733_v18  ;;  %v732_v20 = vmul.f32 0.03125, %v730_v19 }
 0x25a   : > { %v734_v21 = vadd.f32 1e-05, %v732_v20 }
 0x25c   : > { %3031 = vrsqrt.f32 %v734_v21 }
 0x262   : > { %v3030_v22 = vpop.eup %3029 }
 0x263   : > { %v737_v24 = vmul.f32 %v3030_v22, %v721_v6 }
 0x265   : > { %v745_v25 = vmul.f32 %v2541_v23, %v737_v24 }
 0x266   : > { %v3032_v28 = vpop.eup %3031 }
 0x267   : > { %v738_v30 = vmul.f32 %v3032_v28, %v722_v10  ;;  %v753_v34 = vadd.f32 %v2542_v29, %v745_v25 }
 0x269   : > { %v746_v33 = vmul.f32 %v2541_v23, %v738_v30  ;;  %v759_v38 = vadd.f32 %v2643_v31, %v753_v34  ;;  %v766_v40 = vadd.f32 %v2647_v32, %v753_v34 }
 0x26b   : > { %v754_v37 = vadd.f32 %v2542_v29, %v746_v33 }
 0x26d   : > { %v760_v39 = vadd.f32 %v2644_v35, %v754_v37  ;;  %v767_v41 = vadd.f32 %v2648_v36, %v754_v37 }
 0x26f   : > { %v761_v42 = vpack.c.bf16 %v760_v39, %v759_v38  ;;  %v768_v43 = vpack.c.bf16 %v767_v41, %v766_v40 }
 0x271   : > { %2713 = vmatprep.mubr.msk.bf16.mxu0 %vm711_vm0, %v761_v42 }
 0x272   : > { %2714 = vmatmul.mubr.msk.bf16.vlgmr.msra.gmra.mrb[0].mxu0 %vm711_vm0, %v768_v43 }
 0x273   : > { %2719 = vmatprep.mubr.msk.bf16.mxu0 %vm3429_vm1, %v3428_v44 }
 0x345   : > { %v2715_v45 = vpop.f32.mrb[0].mxu0 }
 0x346   : > { %v825_v46 = vpop.f32.mrb[1].mxu0 }
 0x347   : > { %v2716_v47 = vpop.f32.mrb[2].mxu0 }
 0x348   : > { %v3916_v48 = vpack.c.bf16 %v2716_v47, %v2715_v45  ;;  %v828_v49 = vpop.f32.mrb[3].mxu0 }
 0x349   : > { %v3918_v50 = vpack.c.bf16 %v828_v49, %v825_v46 }
 0x34b   : > { %973 = vrot.lane.b32.xlu1 %v3918_v50, %s3430_s17  ;;  %849 = vrot.lane.b32.xlu0 %v3918_v50, %s3431_s10 }
 0x34f   : > { %971 = vrot.lane.b32.xlu1 %v3918_v50, %s3432_s19  ;;  %1223 = vrot.lane.b32.xlu0 %v3916_v48, %s3430_s17  ;;  %s3337_s17 = scalar_lea.vmem %s3336_s26, 512 }
 0x353   : > { %1100 = vrot.lane.b32.xlu1 %v3916_v48, %s3431_s10 }
 0x357   : > { %1221 = vrot.lane.b32.xlu1 %v3916_v48, %s3432_s19 }
 0x3bd   : > { %v974_v51 = vpop.permute.xlu1 %973  ;;  %v850_v52 = vpop.permute.xlu0 %849 }
 0x3be   : > { %v856_v53 = vsel %vm851_vm2, %v850_v52, 0  ;;  %v979_v54 = vsel %vm851_vm2, %v974_v51, 0 }
 0x3bf   : > { %2718 = vmatpush3.bf16.xpose.msra.mxu0 %v856_v53  ;;  %2730 = vmatpush3.bf16.xpose.msra.mxu1 %v979_v54 }
 0x3c0   : > { %2741 = vmatprep.subr.bf16.mxu1 %v3428_v44  ;;  %2723 = vmatprep.subr.bf16.mxu0 %v3428_v44 }
 0x3c1   : > { %v972_v55 = vpop.permute.xlu1 %971  ;;  %v1224_v58 = vpop.permute.xlu0 %1223 }
 0x3c2   : > { %v1229_v59 = vsel %vm851_vm2, %v1224_v58, 0 }
 0x3c5   : > { %v1101_v56 = vpop.permute.xlu1 %1100 }
 0x3c6   : > { %v1106_v57 = vsel %vm851_vm2, %v1101_v56, 0  ;;  %2720 = vmatmul.mubr.msk.bf16.vlgmr.msra.gmra.mrb[4].mxu0 %vm851_vm2, %v3918_v50  ;;  %2732 = vmatmul.mubr.msk.bf16.vlgmr.msra.gmra.mrb[0].mxu1 %vm851_vm2, %v972_v55 }
 0x3c7   : > { %2742 = vmatpush3.bf16.xpose.msra.mxu1 %v1106_v57  ;;  %2743 = vmatprep.mubr.msk.bf16.mxu1 %vm3429_vm1, %v3428_v44 }
 0x3c8   : > { %2753 = vmatprep.subr.bf16.mxu1 %v3428_v44  ;;  %2725 = vmatprep.mubr.msk.bf16.mxu0 %vm3429_vm1, %v3428_v44 }
 0x3c9   : > { %v1222_v60 = vpop.permute.xlu1 %1221 }
 0x3ce   : > { %2744 = vmatmul.mubr.msk.bf16.vlgmr.msra.gmra.mrb[4].mxu1 %vm851_vm2, %v3916_v48 }
 0x3cf   : > { %2754 = vmatpush3.bf16.xpose.msra.mxu1 %v1229_v59  ;;  %2755 = vmatprep.mubr.msk.bf16.mxu1 %vm3429_vm1, %v3428_v44 }
 0x3d6   : > { %2756 = vmatmul.mubr.msk.bf16.vlgmr.msra.gmra.mrb[8].mxu1 %vm851_vm2, %v1222_v60 }
 0x499   : > { %v892_v62 = vpop.f32.mrb[4].mxu0  ;;  %v1015_v63 = vpop.f32.mrb[0].mxu1 }
 0x49a   : > { %v893_v2 = vadd.f32 %v2547_v61, %v892_v62  ;;  %v2721_v3 = vpop.f32.mrb[5].mxu0  ;;  %v2733_v4 = vpop.f32.mrb[1].mxu1  ;;  %v1016_v7 = vadd.f32 %v2547_v61, %v1015_v63 }
 0x49b   : > { %v895_v5 = vpop.f32.mrb[6].mxu0  ;;  %v1018_v6 = vpop.f32.mrb[2].mxu1 }
 0x49c   : > { %v896_v8 = vadd.f32 %v2547_v61, %v895_v5  ;;  %v2722_v9 = vpop.f32.mrb[7].mxu0  ;;  %v2734_v10 = vpop.f32.mrb[3].mxu1  ;;  %v899_v11 = vsel %vm851_vm2, %v893_v2, -inf  ;;  %v1019_v13 = vadd.f32 %v2547_v61, %v1018_v6  ;;  %v1022_v14 = vsel %vm851_vm2, %v1016_v7, -inf }
 0x49d   : > { %900 = vmax.xlane.f32.xlu0 %v899_v11 }
 0x49e   : > { %v902_v12 = vsel %vm851_vm2, %v896_v8, -inf  ;;  %v1025_v21 = vsel %vm851_vm2, %v1019_v13, -inf }
 0x49f   : > { %903 = vmax.xlane.f32.xlu1 %v902_v12 }
 0x4a1   : > { %v1142_v15 = vpop.f32.mrb[4].mxu1  ;;  %1023 = vmax.xlane.f32.xlu0 %v1022_v14 }
 0x4a2   : > { %v2745_v16 = vpop.f32.mrb[5].mxu1  ;;  %v1143_v18 = vadd.f32 %v2547_v61, %v1142_v15 }
 0x4a3   : > { %v1145_v17 = vpop.f32.mrb[6].mxu1 }
 0x4a4   : > { %v1146_v19 = vadd.f32 %v2547_v61, %v1145_v17  ;;  %v2746_v20 = vpop.f32.mrb[7].mxu1  ;;  %v1149_v23 = vsel %vm851_vm2, %v1143_v18, -inf }
 0x4a5   : > { %1026 = vmax.xlane.f32.xlu0 %v1025_v21 }
 0x4a6   : > { %v1152_v22 = vsel %vm851_vm2, %v1146_v19, -inf }
 0x4a7   : > { %1153 = vmax.xlane.f32.xlu1 %v1152_v22 }
 0x4a9   : > { %1150 = vmax.xlane.f32.xlu0 %v1149_v23  ;;  %v1265_v24 = vpop.f32.mrb[8].mxu1 }
 0x4aa   : > { %v1266_v25 = vadd.f32 %v2547_v61, %v1265_v24  ;;  %v2757_v26 = vpop.f32.mrb[9].mxu1 }
 0x4ab   : > { %v1268_v27 = vpop.f32.mrb[10].mxu1 }
 0x4ac   : > { %v3959_v28 = vadd.f32 %v2547_v61, %v1268_v27  ;;  %v2758_v29 = vpop.f32.mrb[11].mxu1  ;;  %v1272_v30 = vsel %vm851_vm2, %v1266_v25, -inf }
 0x4ad   : > { %1273 = vmax.xlane.f32.xlu0 %v1272_v30 }
 0x4ae   : > { %v1275_v31 = vsel %vm851_vm2, %v3959_v28, -inf }
 0x4b8   : > { %1041 = vrot.lane.b32.xlu1 %v3918_v50, %s3433_s14 }
 0x4bc   : > { %1168 = vrot.lane.b32.xlu1 %v3916_v48, %s3434_s28 }
 0x4c3   : > { %918 = vrot.lane.b32.xlu0 %v3918_v50, %s3434_s28  ;;  %s4388_s28 = sld [smem:[#allocation43_spill]] }
 0x4e0   : > { %1276 = vmax.xlane.f32.xlu1 %v1275_v31 }
 0x4f1   : > { %1291 = vrot.lane.b32.xlu1 %v3916_v48, %s3433_s14 }
 0x52a   : > { %v901_v32 = vpop.xlane.xlu0 %900 }
 0x52b   : > { %v905_v34 = vsub.f32 %v893_v2, %v901_v32 }
 0x52c   : > { %v904_v33 = vpop.xlane.xlu1 %903 }
 0x52d   : > { %v906_v35 = vsub.f32 %v896_v8, %v904_v33  ;;  %v907_v39 = vmul.f32 1.442695, %v905_v34 }
 0x52e   : > { %v1024_v36 = vpop.xlane.xlu0 %1023 }
 0x52f   : > { %v909_v37 = vmul.f32 1.442695, %v906_v35  ;;  %v1028_v38 = vsub.f32 %v1016_v7, %v1024_v36 }
 0x531   : > { %v1030_v40 = vmul.f32 1.442695, %v1028_v38  ;;  %3033 = vpow2.f32 %v909_v37 }
 0x532   : > { %v1027_v41 = vpop.xlane.xlu0 %1026 }
 0x533   : > { %3035 = vpow2.f32 %v1030_v40  ;;  %v1029_v42 = vsub.f32 %v1019_v13, %v1027_v41 }
 0x534   : > { %v1154_v43 = vpop.xlane.xlu1 %1153  ;;  %3037 = vpow2.f32 %v907_v39 }
 0x535   : > { %v1032_v45 = vmul.f32 1.442695, %v1029_v42  ;;  %v1156_v46 = vsub.f32 %v1146_v19, %v1154_v43 }
 0x536   : > { %v1151_v47 = vpop.xlane.xlu0 %1150 }
 0x537   : > { %3039 = vpow2.f32 %v1032_v45  ;;  %v1159_v48 = vmul.f32 1.442695, %v1156_v46  ;;  %v1155_v50 = vsub.f32 %v1143_v18, %v1151_v47 }
 0x538   : > { %v1042_v61 = vpop.permute.xlu1 %1041 }
 0x539   : > { %3041 = vpow2.f32 %v1159_v48  ;;  %v1157_v58 = vmul.f32 1.442695, %v1155_v50 }
 0x53a   : > { %v1274_v49 = vpop.xlane.xlu0 %1273 }
 0x53b   : > { %v1278_v51 = vsub.f32 %v1266_v25, %v1274_v49  ;;  %v3034_v52 = vpop.eup %3033 }
 0x53c   : > { %v914_v63 = vsel %vm851_vm2, %v3034_v52, 0.0  ;;  %v1169_v5 = vpop.permute.xlu1 %1168 }
 0x53d   : > { %v3036_v53 = vpop.eup %3035  ;;  %v1280_v54 = vmul.f32 1.442695, %v1278_v51 }
 0x53e   : > { %v919_v55 = vpop.permute.xlu0 %918  ;;  %v1034_v56 = vsel %vm851_vm2, %v3036_v53, 0.0  ;;  %v3038_v57 = vpop.eup %3037 }
 0x53f   : > { %3043 = vpow2.f32 %v1280_v54  ;;  %1035 = vadd.xlane.f32.xlu0 %v1034_v56  ;;  %2724 = vmatpush3.bf16.msra.mxu0 %v919_v55  ;;  %v917_v59 = vpack.c.bf16 %v3034_v52, %v3038_v57  ;;  %v911_v17 = vsel %vm851_vm2, %v3038_v57, 0.0  ;;  %v3001_v55 = vld [vmem:[#allocation12] sm:$0xff]   ;;  %v3002_v56 = vld [vmem:[#allocation12 + $0x8] sm:$0xff]  }
 0x540   : > { %2735 = vmatprep.subr.bf16.mxu0 %v3428_v44  ;;  %3045 = vpow2.f32 %v1157_v58  ;;  %2765 = vmatprep.subr.bf16.mxu1 %v3001_v55 }
 0x541   : > { %v3040_v60 = vpop.eup %3039  ;;  %2766 = vmatpush3.bf16.msra.mxu1 %v3001_v55 }
 0x542   : > { %2726 = vmatmul.mubr.msk.bf16.vlgmr.msra.gmra.mrb[8].mxu0 %vm851_vm2, %v917_v59  ;;  %v1037_v62 = vsel %vm851_vm2, %v3040_v60, 0.0  ;;  %v1040_v3 = vpack.c.bf16 %v3040_v60, %v3036_v53  ;;  %2767 = vmatprep.subr.bf16.mxu1 %v3002_v56 }
 0x543   : > { %1038 = vadd.xlane.f32.xlu1 %v1037_v62  ;;  %2736 = vmatpush3.bf16.msra.mxu0 %v1042_v61  ;;  %v3042_v2 = vpop.eup %3041 }
 0x544   : > { %2737 = vmatprep.mubr.msk.bf16.mxu0 %vm3429_vm1, %v3428_v44  ;;  %2747 = vmatprep.subr.bf16.mxu0 %v3428_v44  ;;  %v1164_v6 = vsel %vm851_vm2, %v3042_v2, 0.0 }
 0x545   : > { %2768 = vmatpush3.bf16.msra.mxu1 %v3002_v56 }
 0x546   : > { %2781 = vmatprep.subr.bf16.mxu1 %v3428_v44 }
 0x547   : > { %915 = vadd.xlane.f32.xlu1 %v914_v63 }
 0x549   : > { %v3044_v4 = vpop.eup %3043 }
 0x54a   : > { %2738 = vmatmul.mubr.msk.bf16.vlgmr.msra.gmra.mrb[12].mxu0 %vm851_vm2, %v1040_v3  ;;  %v1284_v7 = vsel %vm851_vm2, %v3044_v4, 0.0  ;;  %v3046_v8 = vpop.eup %3045  ;;  %v3436_v3 = vmov 0  }
 0x54b   : > { %2748 = vmatpush3.bf16.msra.mxu0 %v1169_v5  ;;  %1165 = vadd.xlane.f32.xlu1 %v1164_v6  ;;  %v1167_v9 = vpack.c.bf16 %v3042_v2, %v3046_v8  ;;  %v1161_v18 = vsel %vm851_vm2, %v3046_v8, 0.0  ;;  %v707_v5 = vld [vmem:[%s702_s13] sm:$0xff]  ;;  %v708_v6 = vld [vmem:[%s702_s13 + $0x8] sm:$0xff] }
 0x54c   : > { %1285 = vadd.xlane.f32.xlu0 %v1284_v7  ;;  %2749 = vmatprep.mubr.msk.bf16.mxu0 %vm3429_vm1, %v3428_v44 }
 0x54d   : > { %2759 = vmatprep.subr.bf16.mxu0 %v3428_v44  ;;  %2997 = vset.pattern.permute.xlu1 %v3436_v3 }
 0x54e   : > { %2998 = vset.pattern.permute.xlu0 %v3436_v3 }
 0x552   : > { %2750 = vmatmul.mubr.msk.bf16.vlgmr.msra.gmra.mrb[16].mxu0 %vm851_vm2, %v1167_v9 }
 0x553   : > { %2761 = vmatprep.mubr.msk.bf16.mxu0 %vm3429_vm1, %v3428_v44 }
 0x56d   : > { %v1277_v10 = vpop.xlane.xlu1 %1276 }
 0x56e   : > { %v1279_v11 = vsub.f32 %v3959_v28, %v1277_v10 }
 0x570   : > { %v1282_v12 = vmul.f32 1.442695, %v1279_v11 }
 0x571   : > { %v1292_v13 = vpop.permute.xlu1 %1291 }
 0x572   : > { %3047 = vpow2.f32 %v1282_v12  ;;  %2760 = vmatpush3.bf16.msra.mxu0 %v1292_v13 }
 0x573   : > { %2773 = vmatprep.subr.bf16.mxu0 %v3428_v44 }
 0x57c   : > { %v3048_v14 = vpop.eup %3047 }
 0x57d   : > { %v1287_v15 = vsel %vm851_vm2, %v3048_v14, 0.0  ;;  %v1290_v16 = vpack.c.bf16 %v3048_v14, %v3044_v4 }
 0x57e   : > { %1288 = vadd.xlane.f32.xlu0 %v1287_v15 }
 0x57f   : > { %2762 = vmatmul.mubr.msk.bf16.vlgmr.msra.gmra.mrb[20].mxu0 %vm851_vm2, %v1290_v16 }
 0x580   : > { %2777 = vmatprep.mubr.msk.bf16.mxu0 %vm3429_vm1, %v3428_v44 }
 0x582   : > { %912 = vadd.xlane.f32.xlu0 %v911_v17 }
 0x586   : > { %1162 = vadd.xlane.f32.xlu0 %v1161_v18 }
 0x5cc   : > { %v1036_v19 = vpop.xlane.xlu0 %1035 }
 0x5d0   : > { %v1039_v20 = vpop.xlane.xlu1 %1038 }
 0x5d4   : > { %v916_v23 = vpop.xlane.xlu1 %915 }
 0x5d5   : > { %3049 = vrcp.f32 %v916_v23 }
 0x5d8   : > { %v1166_v30 = vpop.xlane.xlu1 %1165 }
 0x5d9   : > { %v1286_v21 = vpop.xlane.xlu0 %1285 }
 0x5df   : > { %v3050_v29 = vpop.eup %3049 }
 0x60b   : > { %v1289_v22 = vpop.xlane.xlu0 %1288 }
 0x60f   : > { %v913_v24 = vpop.xlane.xlu0 %912 }
 0x610   : > { %3051 = vrcp.f32 %v913_v24 }
 0x611   : > { %3053 = vrcp.f32 %v1036_v19 }
 0x612   : > { %3055 = vrcp.f32 %v1039_v20 }
 0x613   : > { %v1163_v32 = vpop.xlane.xlu0 %1162  ;;  %3057 = vrcp.f32 %v1166_v30 }
 0x614   : > { %3059 = vrcp.f32 %v1163_v32 }
 0x615   : > { %v958_v25 = vpop.f32.mrb[8].mxu0  ;;  %3061 = vrcp.f32 %v1286_v21 }
 0x616   : > { %v2727_v26 = vpop.f32.mrb[9].mxu0  ;;  %3063 = vrcp.f32 %v1289_v22 }
 0x617   : > { %v961_v27 = vpop.f32.mrb[10].mxu0 }
 0x618   : > { %v2728_v28 = vpop.f32.mrb[11].mxu0  ;;  %v968_v34 = vmul.f32 %v3050_v29, %v961_v27 }
 0x61a   : > { %v3052_v31 = vpop.eup %3051 }
 0x61b   : > { %v967_v33 = vmul.f32 %v3052_v31, %v958_v25  ;;  %v3054_v37 = vpop.eup %3053 }
 0x61c   : > { %v3056_v39 = vpop.eup %3055 }
 0x61d   : > { %v969_v35 = vpack.c.bf16 %v968_v34, %v967_v33  ;;  %v1081_v36 = vpop.f32.mrb[12].mxu0  ;;  %v3058_v47 = vpop.eup %3057  ;;  %v3003_v33 = vld [vmem:[%s4385_s6 + $0x10] sm:$0xff]   ;;  %v3004_v34 = vld [vmem:[%s4385_s6] sm:$0xff]  }
 0x61e   : > { %v2739_v38 = vpop.f32.mrb[13].mxu0  ;;  %v1090_v41 = vmul.f32 %v3054_v37, %v1081_v36  ;;  %v3060_v49 = vpop.eup %3059  ;;  %2774 = vmatpush3.bf16.msra.mxu0 %v3003_v33  ;;  %v3006_v36 = vld [vmem:[%s4385_s6 + $0x8] sm:$0xff]  }
 0x61f   : > { %970 = vst.msk [vmem:[#allocation2] sm:$0xff] %vm851_vm2, %v969_v35  ;;  %v1084_v40 = vpop.f32.mrb[14].mxu0  ;;  %v3062_v57 = vpop.eup %3061  ;;  %v3005_v35 = vld [vmem:[%s4385_s6 + $0x18] sm:$0xff]   ;;  %2775 = vmatprep.subr.bf16.mxu0 %v3428_v44 }
 0x620   : > { %v1091_v42 = vmul.f32 %v3056_v39, %v1084_v40  ;;  %v2740_v43 = vpop.f32.mrb[15].mxu0  ;;  %v3064_v61 = vpop.eup %3063 }
 0x622   : > { %v1092_v45 = vpack.c.bf16 %v1091_v42, %v1090_v41  ;;  %2776 = vmatpush3.bf16.msra.mxu0 %v3005_v35 }
 0x623   : > { %2789 = vmatprep.subr.bf16.mxu0 %v3428_v44 }
 0x624   : > { %1094 = vrot.lane.b32.xlu0 %v1092_v45, %s3435_s22  ;;  %v2560_v45 = vld [vmem:[#allocation14] ss:$0 sm:$0xff] }
 0x625   : > { %v1208_v46 = vpop.f32.mrb[16].mxu0 }
 0x626   : > { %v2751_v48 = vpop.f32.mrb[17].mxu0  ;;  %v1217_v51 = vmul.f32 %v3060_v49, %v1208_v46 }
 0x627   : > { %v1211_v50 = vpop.f32.mrb[18].mxu0 }
 0x628   : > { %v1218_v52 = vmul.f32 %v3058_v47, %v1211_v50  ;;  %v2752_v53 = vpop.f32.mrb[19].mxu0  ;;  %v1481_v47 = vlaneseq  ;;  %v2561_v50 = vld [vmem:[#allocation15] ss:$0 sm:$0xff] }
 0x62a   : > { %v1219_v54 = vpack.c.bf16 %v1218_v52, %v1217_v51  ;;  %v4042_v52 = vshrl.u32 %v1481_v47, 7 }
 0x62c   : > { %1220 = vst.msk [vmem:[#allocation2 + $0x8] sm:$0xff] %vm851_vm2, %v1219_v54  ;;  %vm1504_vm4 = vcmp.lt.s32.totalorder %v4042_v52, 3  ;;  %vm1507_vm5 = vcmp.ge.s32.totalorder %v4042_v52, 3  ;;  %vm1486_vm6 = vcmp.lt.s32.totalorder %v4042_v52, 4  ;;  %vm1489_vm7 = vcmp.ge.s32.totalorder %v4042_v52, 4 }
 0x62d   : > { %vm1635_vm8 = vcmp.lt.s32.totalorder %v4042_v52, 2  ;;  %vm1712_vm9 = vcmp.lt.s32.totalorder %v4042_v52, 1  ;;  %vm1638_vm10 = vcmp.ge.s32.totalorder %v4042_v52, 2  ;;  %vm1715_vm11 = vcmp.ge.s32.totalorder %v4042_v52, 1 }
 0x62e   : > { %vm1853_vm12 = vcmp.lt.s32.totalorder %v4042_v52, 7  ;;  %vm1930_vm14 = vcmp.lt.s32.totalorder %v4042_v52, 6  ;;  %vm2007_vm15 = vcmp.lt.s32.totalorder %v4042_v52, 5 }
 0x652   : > { %v1331_v58 = vpop.f32.mrb[20].mxu0 }
 0x653   : > { %v1340_v59 = vmul.f32 %v3062_v57, %v1331_v58  ;;  %v2763_v60 = vpop.f32.mrb[21].mxu0 }
 0x654   : > { %v1334_v62 = vpop.f32.mrb[22].mxu0 }
 0x655   : > { %v1341_v63 = vmul.f32 %v3064_v61, %v1334_v62  ;;  %v2764_v2 = vpop.f32.mrb[23].mxu0 }
 0x657   : > { %v1342_v4 = vpack.c.bf16 %v1341_v63, %v1340_v59 }
 0x659   : > { %1344 = vrot.lane.b32.xlu1 %v1342_v4, %s3435_s22  ;;  %s4389_s22 = sld [smem:[#allocation32_spill]] }
 0x65d   : > { %1427 = vperm.xlu1 %2997, %v707_v5  }
 0x65f   : > { %p4391_p8 = scmp.ne.s32.totalorder %s4389_s22, 0 }
 0x661   : > { %1432 = vperm.xlu1 %2997, %v708_v6   ;;  %v3007_v6 = vld [vmem:[%s4385_s6 + $0x20] sm:$0xff]  }
 0x696   : > { %v1095_v7 = vpop.permute.xlu0 %1094 }
 0x697   : > { %1098 = vst.msk [vmem:[#allocation2] sm:$0xff] %vm1097_vm3, %v1095_v7  ;;  %v3008_v7 = vld [vmem:[%s4385_s6 + $0x30] sm:$0xff]  }
 0x69e   : > { %v1348_v8 = vld [vmem:[#allocation2] sm:$0xff] }
 0x69f   : > { %2769 = vmatprep.mubr.msk.bf16.mxu1 %vm711_vm0, %v1348_v8 }
 0x6cb   : > { %v1345_v9 = vpop.permute.xlu1 %1344 }
 0x6cc   : > { %1347 = vst.msk [vmem:[#allocation2 + $0x8] sm:$0xff] %vm1097_vm3, %v1345_v9 }
 0x6d3   : > { %v1349_v10 = vld [vmem:[#allocation2 + $0x8] sm:$0xff] }
 0x6d4   : > { %2770 = vmatmul.mubr.msk.bf16.vlgmr.msra.gmra.mrb[12].mxu1 %vm711_vm0, %v1349_v10 }
 0x6d5   : > { %2785 = vmatprep.mubr.msk.bf16.mxu1 %vm3429_vm1, %v3428_v44  ;;  %2782 = vmatpush3.bf16.msra.mxu1 %v3004_v34 }
 0x6d6   : > { %2783 = vmatprep.subr.bf16.mxu1 %v3428_v44 }
 0x6d9   : > { %2784 = vmatpush3.bf16.msra.mxu1 %v3006_v36  ;;  %v3015_v36 = vld [vmem:[%s4385_s6 + $0x60] sm:$0xff]  }
 0x6da   : > { %2797 = vmatprep.subr.bf16.mxu1 %v3428_v44 }
 0x6dc   : > { %v4006_v13 = vpop.permute.xlu1 %1427 }
 0x6e0   : > { %v4013_v21 = vpop.permute.xlu1 %1432 }
 0x7a7   : > { %v2771_v11 = vpop.f32.mrb[12].mxu1 }
 0x7a8   : > { %v1406_v12 = vpop.f32.mrb[13].mxu1 }
 0x7a9   : > { %v1421_v14 = vadd.f32 %v1406_v12, %v3891_v0  ;;  %v2772_v15 = vpop.f32.mrb[14].mxu1 }
 0x7aa   : > { %v1409_v16 = vpop.f32.mrb[15].mxu1 }
 0x7ab   : > { %v1423_v17 = vadd.f32 %v2771_v11, %v1421_v14  ;;  %v1422_v18 = vadd.f32 %v1409_v16, %v3893_v1  ;;  %v3010_v16 = vld [vmem:[%s4385_s6 + $0x38] sm:$0xff]  }
 0x7ad   : > { %v4011_v19 = vmul.f32 %v4006_v13, %v1423_v17  ;;  %v1424_v20 = vadd.f32 %v2772_v15, %v1422_v18  ;;  %v3009_v15 = vld [vmem:[%s4385_s6 + $0x28] sm:$0xff]  }
 0x7af   : > { %v4016_v22 = vmul.f32 %v4013_v21, %v1424_v20  ;;  %v1439_v23 = vsel %vm711_vm0, %v4011_v19, 0.0 }
 0x7b0   : > { %1440 = vadd.xlane.f32.xlu0 %v1439_v23 }
 0x7b1   : > { %v1442_v0 = vsel %vm711_vm0, %v4016_v22, 0.0 }
 0x7b2   : > { %1443 = vadd.xlane.f32.xlu1 %v1442_v0  ;;  %v4099_v0 = vadd.s32 8, %v4042_v52  ;;  %v3020_v52 = vld [vmem:[%s4385_s6 + $0x88] sm:$0xff]  }
 0x7b4   : > { %vm1857_vm13 = vcmp.lt.s32.totalorder %v4099_v0, 15  ;;  %vm1934_vm2 = vcmp.lt.s32.totalorder %v4099_v0, 14  ;;  %vm2011_vm3 = vcmp.lt.s32.totalorder %v4099_v0, 13 }
 0x83d   : > { %v1441_v24 = vpop.xlane.xlu0 %1440 }
 0x83e   : > { %v1445_v25 = vmul.f32 0.03125, %v1441_v24 }
 0x83f   : > { %v1444_v1 = vpop.xlane.xlu1 %1443 }
 0x840   : > { %v1447_v26 = vsub.f32 %v4011_v19, %v1445_v25  ;;  %v1446_v27 = vmul.f32 0.03125, %v1444_v1  ;;  %v3011_v25 = vld [vmem:[%s4385_s6 + $0x40] sm:$0xff]   ;;  %v3012_v1 = vld [vmem:[%s4385_s6 + $0x50] sm:$0xff]  }
 0x842   : > { %v1448_v28 = vsub.f32 %v4016_v22, %v1446_v27  ;;  %v1449_v29 = vmul.f32 %v1447_v26, %v1447_v26 }
 0x844   : > { %v1451_v30 = vsel %vm711_vm0, %v1449_v29, 0.0  ;;  %v1450_v31 = vmul.f32 %v1448_v28, %v1448_v28 }
 0x845   : > { %1452 = vadd.xlane.f32.xlu0 %v1451_v30  ;;  %v3013_v30 = vld [vmem:[%s4385_s6 + $0x48] sm:$0xff]  }
 0x846   : > { %v1454_v32 = vsel %vm711_vm0, %v1450_v31, 0.0  ;;  %v3014_v31 = vld [vmem:[%s4385_s6 + $0x58] sm:$0xff]  }
 0x849   : > { %1455 = vadd.xlane.f32.xlu0 %v1454_v32 }
 0x8d2   : > { %v1453_v37 = vpop.xlane.xlu0 %1452 }
 0x8d3   : > { %v1457_v38 = vmul.f32 0.03125, %v1453_v37  ;;  %v3016_v37 = vld [vmem:[%s4385_s6 + $0x70] sm:$0xff]  }
 0x8d5   : > { %v1459_v39 = vadd.f32 1e-05, %v1457_v38 }
 0x8d6   : > { %v1456_v40 = vpop.xlane.xlu0 %1455 }
 0x8d7   : > { %3065 = vrsqrt.f32 %v1459_v39  ;;  %v1458_v41 = vmul.f32 0.03125, %v1456_v40 }
 0x8d9   : > { %v1460_v42 = vadd.f32 1e-05, %v1458_v41 }
 0x8db   : > { %3067 = vrsqrt.f32 %v1460_v42 }
 0x8e1   : > { %v3066_v43 = vpop.eup %3065 }
 0x8e2   : > { %v1463_v46 = vmul.f32 %v3066_v43, %v1447_v26 }
 0x8e4   : > { %v1471_v48 = vmul.f32 %v2560_v45, %v1463_v46  ;;  %v3018_v46 = vld [vmem:[%s4385_s6 + $0x78] sm:$0xff]  }
 0x8e5   : > { %v3068_v49 = vpop.eup %3067 }
 0x8e6   : > { %v1464_v51 = vmul.f32 %v3068_v49, %v1448_v28  ;;  %v4044_v53 = vadd.f32 %v2561_v50, %v1471_v48 }
 0x8e8   : > { %v1472_v54 = vmul.f32 %v2560_v45, %v1464_v51  ;;  %v1502_v56 = vrot.slane %v4044_v53, 5  ;;  %v1484_v58 = vrot.slane %v4044_v53, 4  ;;  %v1633_v10 = vrot.slane %v4044_v53, 6  ;;  %v3017_v45 = vld [vmem:[%s4385_s6 + $0x68] sm:$0xff]   ;;  %v3019_v51 = vld [vmem:[%s4385_s6 + $0x80] sm:$0xff]  }
 0x8e9   : > { %v1710_v11 = vrot.slane %v4044_v53, 7  ;;  %v1851_v28 = vrot.slane %v4044_v53, 1  ;;  %v1928_v40 = vrot.slane %v4044_v53, 2  ;;  %v2005_v41 = vrot.slane %v4044_v53, 3 }
 0x8ea   : > { %v4046_v55 = vadd.f32 %v2561_v50, %v1472_v54 }
 0x8ec   : > { %v1503_v57 = vrot.slane %v4046_v55, 5  ;;  %v1485_v59 = vrot.slane %v4046_v55, 4  ;;  %v1634_v60 = vrot.slane %v4046_v55, 6  ;;  %v1711_v61 = vrot.slane %v4046_v55, 7 }
 0x8ed   : > { %v1852_v24 = vrot.slane %v4046_v55, 1  ;;  %v1929_v34 = vrot.slane %v4046_v55, 2  ;;  %v2006_v35 = vrot.slane %v4046_v55, 3  ;;  %v1787_v38 = vpack.c.bf16 %v4046_v55, %v4044_v53 }
 0x8ee   : > { %v1505_v62 = vsel %vm1504_vm4, %v1502_v56, %v1503_v57  ;;  %v1506_v63 = vsel %vm1504_vm4, %v1503_v57, %v1502_v56  ;;  %v4058_v2 = vsel %vm1486_vm6, %v1484_v58, %v1485_v59  ;;  %v4060_v3 = vsel %vm1486_vm6, %v1485_v59, %v1484_v58  ;;  %v3021_v57 = vld [vmem:[%s4386_s18] sm:$0xff]   ;;  %v3022_v58 = vld [vmem:[%s4387_s16 + $0x8] sm:$0xff]   ;;  %v3023_v59 = vld [vmem:[%s4387_s16 + $0x10] sm:$0xff]   ;;  %s694_s18 = scalar_lea.vmem [#allocation18], %s2529_s8  ;;  %s2303_s8 = scalar_lea.sflag [#allocation5], %s3859_s24 }
 0x8ef   : > { %v1513_v4 = vsel %vm1507_vm5, %v1506_v63, 0.0  ;;  %v1495_v5 = vsel %vm1489_vm7, %v4060_v3, 0.0  ;;  %v1637_v12 = vsel %vm1635_vm8, %v1634_v60, %v1633_v10  ;;  %v1714_v14 = vsel %vm1712_vm9, %v1711_v61, %v1710_v11  ;;  %v3027_v63 = vld [vmem:[%s4387_s16 + $0x30] sm:$0xff]   ;;  %s2316_s25 = sshll.u32 %s694_s18, 4  ;;  %s4235_s25 = int_to_ptr.vmem [resolvable:$true] %s2316_s25 }
 0x8f0   : > { %v1515_v8 = vpack.c.bf16 %v1505_v62, %v1513_v4  ;;  %v1497_v9 = vpack.c.bf16 %v4058_v2, %v1495_v5  ;;  %v1636_v17 = vsel %vm1635_vm8, %v1633_v10, %v1634_v60  ;;  %v1644_v18 = vsel %vm1638_vm10, %v1637_v12, 0.0  ;;  %v3024_v60 = vld [vmem:[%s4387_s16 + $0x18] sm:$0xff]   ;;  %v3026_v62 = vld [vmem:[%s4387_s16 + $0x28] sm:$0xff]   ;;  %s3331_s15 = scalar_lea.vmem %s4235_s25, 256  ;;  %p3338_p4 = scmp.lt.s32.totalorder %s4235_s25, %s3336_s26 }
 0x8f1   : > { %v1713_v20 = vsel %vm1712_vm9, %v1710_v11, %v1711_v61  ;;  %v1721_v23 = vsel %vm1715_vm11, %v1714_v14, 0.0  ;;  %v1646_v26 = vpack.c.bf16 %v1636_v17, %v1644_v18  ;;  %v1855_v29 = vsel %vm1853_vm12, %v1852_v24, %v1851_v28  ;;  %v3025_v61 = vld [vmem:[%s4387_s16 + $0x20] sm:$0xff]   ;;  %p3332_p0 = scmp.ne.s32.totalorder %s4235_s25, %s3331_s15  ;;  %p3339_p2 = scmp.lt.s32.totalorder %s3337_s17, %s3331_s15 }
 0x8f2   : > { %2778 = vmatmul.mubr.msk.bf16.vlgmr.msra.gmra.mrb[24].mxu0 %vm711_vm0, %v1515_v8  ;;  %2786 = vmatmul.mubr.msk.bf16.vlgmr.msra.gmra.mrb[16].mxu1 %vm711_vm0, %v1497_v9  ;;  %v1723_v27 = vpack.c.bf16 %v1713_v20, %v1721_v23  ;;  %v1854_v32 = vsel %vm1853_vm12, %v1851_v28, %v1852_v24  ;;  %v1863_v33 = vsel %vm1857_vm13, %v1855_v29, 0.0  ;;  %v1932_v42 = vsel %vm1930_vm14, %v1929_v34, %v1928_v40 }
 0x8f3   : > { %2790 = vmatpush3.bf16.msra.mxu0 %v3007_v6  ;;  %2798 = vmatpush3.bf16.msra.mxu1 %v3008_v7  ;;  %v1864_v39 = vpack.c.bf16 %v1863_v33, %v1854_v32  ;;  %v2009_v43 = vsel %vm2007_vm15, %v2006_v35, %v2005_v41  ;;  %v1931_v47 = vsel %vm1930_vm14, %v1928_v40, %v1929_v34  ;;  %v1940_v48 = vsel %vm1934_vm2, %v1932_v42, 0.0  ;;  %p3333_p10 = pnand %p3332_p0, %p4391_p8  ;;  %p3340_p11 = por %p3339_p2, %p3338_p4 }
 0x8f4   : > { %2791 = vmatprep.subr.bf16.mxu0 %v3428_v44  ;;  %2799 = vmatprep.subr.bf16.mxu1 %v3428_v44  ;;  %v2008_v49 = vsel %vm2007_vm15, %v2005_v41, %v2006_v35  ;;  %v2017_v50 = vsel %vm2011_vm3, %v2009_v43, 0.0  ;;  %v1941_v53 = vpack.c.bf16 %v1940_v48, %v1931_v47  ;;  %vm2083_vm4 = vcmp.lt.s32.totalorder %v4099_v0, 12 }
 0x8f5   : > { %2793 = vmatprep.mubr.msk.bf16.mxu0 %vm3429_vm1, %v3428_v44  ;;  %2801 = vmatprep.mubr.msk.bf16.mxu1 %vm3429_vm1, %v3428_v44  ;;  %v2018_v54 = vpack.c.bf16 %v2017_v50, %v2008_v49  ;;  %v2089_v55 = vsel %vm2083_vm4, %v4060_v3, 0.0  ;;  %p3334_p7 = pneg %p3333_p10 }
 0x8f6   : > { %v2090_v56 = vpack.c.bf16 %v2089_v55, %v4058_v2  ;;  %v3028_v2 = vld [vmem:[%s4387_s16 + $0x38] sm:$0xff]  }
 0x8f7   : > { %2792 = vmatpush3.bf16.msra.mxu0 %v3009_v15  ;;  %2800 = vmatpush3.bf16.msra.mxu1 %v3010_v16  ;;  %p3341_p1 = pnand %p3340_p11, %p3334_p7 }
 0x8f8   : > { %2805 = vmatprep.subr.bf16.mxu0 %v3428_v44  ;;  %2813 = vmatprep.subr.bf16.mxu1 %v3428_v44 }
 0x8fa   : > { %2794 = vmatmul.mubr.msk.bf16.vlgmr.msra.gmra.mrb[28].mxu0 %vm711_vm0, %v1646_v26  ;;  %2802 = vmatmul.mubr.msk.bf16.vlgmr.msra.gmra.mrb[20].mxu1 %vm711_vm0, %v1723_v27 }
 0x8fb   : > { %2806 = vmatpush3.bf16.msra.mxu0 %v3011_v25  ;;  %2814 = vmatpush3.bf16.msra.mxu1 %v3012_v1 }
 0x8fc   : > { %2807 = vmatprep.subr.bf16.mxu0 %v3428_v44  ;;  %2815 = vmatprep.subr.bf16.mxu1 %v3428_v44 }
 0x8fd   : > { %2809 = vmatprep.mubr.msk.bf16.mxu0 %vm3429_vm1, %v3428_v44  ;;  %2817 = vmatprep.mubr.msk.bf16.mxu1 %vm3429_vm1, %v3428_v44 }
 0x8ff   : > { %2808 = vmatpush3.bf16.msra.mxu0 %v3013_v30  ;;  %2816 = vmatpush3.bf16.msra.mxu1 %v3014_v31 }
 0x900   : > { %2821 = vmatprep.subr.bf16.mxu0 %v3428_v44  ;;  %2829 = vmatprep.subr.bf16.mxu1 %v3428_v44 }
 0x902   : > { %2810 = vmatmul.mubr.msk.bf16.vlgmr.msra.gmra.mrb[32].mxu0 %vm711_vm0, %v1787_v38  ;;  %2818 = vmatmul.mubr.msk.bf16.vlgmr.msra.gmra.mrb[24].mxu1 %vm711_vm0, %v1864_v39 }
 0x903   : > { %2822 = vmatpush3.bf16.msra.mxu0 %v3015_v36  ;;  %2830 = vmatpush3.bf16.msra.mxu1 %v3016_v37 }
 0x904   : > { %2823 = vmatprep.subr.bf16.mxu0 %v3428_v44  ;;  %2831 = vmatprep.subr.bf16.mxu1 %v3428_v44 }
 0x905   : > { %2825 = vmatprep.mubr.msk.bf16.mxu0 %vm3429_vm1, %v3428_v44  ;;  %2833 = vmatprep.mubr.msk.bf16.mxu1 %vm3429_vm1, %v3428_v44 }
 0x907   : > { %2824 = vmatpush3.bf16.msra.mxu0 %v3017_v45  ;;  %2832 = vmatpush3.bf16.msra.mxu1 %v3018_v46 }
 0x908   : > { %2837 = vmatprep.subr.bf16.mxu0 %v3428_v44  ;;  %2845 = vmatprep.subr.bf16.mxu1 %v3428_v44 }
 0x90a   : > { %2826 = vmatmul.mubr.msk.bf16.vlgmr.msra.gmra.mrb[36].mxu0 %vm711_vm0, %v1941_v53  ;;  %2834 = vmatmul.mubr.msk.bf16.vlgmr.msra.gmra.mrb[28].mxu1 %vm711_vm0, %v2018_v54  ;;  %v2621_v53 = vld [vmem:[#allocation17] ss:$0 sm:$0xff] }
 0x90b   : > { %2838 = vmatpush3.bf16.msra.mxu0 %v3019_v51  ;;  %2841 = vmatprep.mubr.msk.bf16.mxu0 %vm3429_vm1, %v3428_v44 }
 0x90c   : > { %2839 = vmatprep.subr.bf16.mxu0 %v3428_v44  ;;  %2861 = vmatprep.mubr.msk.bf16.mxu1 %vm3429_vm1, %v3428_v44 }
 0x90d   : > { %2846 = vmatpush3.bf16.msra.mxu1 %v3021_v57 }
 0x90e   : > { %2847 = vmatprep.subr.bf16.mxu1 %v3428_v44 }
 0x90f   : > { %2840 = vmatpush3.bf16.msra.mxu0 %v3020_v52 }
 0x911   : > { %2848 = vmatpush3.bf16.msra.mxu1 %v3022_v58 }
 0x912   : > { %2842 = vmatmul.mubr.msk.bf16.vlgmr.msra.gmra.mrb[40].mxu0 %vm711_vm0, %v2090_v56  ;;  %2849 = vmatprep.subr.bf16.mxu1 %v3428_v44 }
 0x915   : > { %2850 = vmatpush3.bf16.msra.mxu1 %v3023_v59 }
 0x916   : > { %2851 = vmatprep.subr.bf16.mxu1 %v3428_v44 }
 0x919   : > { %2852 = vmatpush3.bf16.msra.mxu1 %v3024_v60 }
 0x91a   : > { %2853 = vmatprep.subr.bf16.mxu1 %v3428_v44 }
 0x91d   : > { %2854 = vmatpush3.bf16.msra.mxu1 %v3025_v61 }
 0x91e   : > { %2855 = vmatprep.subr.bf16.mxu1 %v3428_v44 }
 0x921   : > { %2856 = vmatpush3.bf16.msra.mxu1 %v3026_v62 }
 0x922   : > { %2857 = vmatprep.subr.bf16.mxu1 %v3428_v44 }
 0x925   : > { %2858 = vmatpush3.bf16.msra.mxu1 %v3027_v63 }
 0x926   : > { %2859 = vmatprep.subr.bf16.mxu1 %v3428_v44 }
 0x929   : > { %2860 = vmatpush3.bf16.msra.mxu1 %v3028_v2 }
 0x9c5   : > { %v1570_v3 = vpop.f32.mrb[24].mxu0  ;;  %v1626_v4 = vpop.f32.mrb[16].mxu1 }
 0x9c6   : > { %v1627_v5 = vadd.f32 %v1626_v4, %v1570_v3  ;;  %v2779_v6 = vpop.f32.mrb[25].mxu0  ;;  %v2787_v7 = vpop.f32.mrb[17].mxu1 }
 0x9c7   : > { %v1573_v8 = vpop.f32.mrb[26].mxu0  ;;  %v1629_v9 = vpop.f32.mrb[18].mxu1 }
 0x9c8   : > { %v1630_v10 = vadd.f32 %v1629_v9, %v1573_v8  ;;  %v2780_v11 = vpop.f32.mrb[27].mxu0  ;;  %v2788_v12 = vpop.f32.mrb[19].mxu1 }
 0x9cd   : > { %v1701_v14 = vpop.f32.mrb[28].mxu0  ;;  %v1778_v15 = vpop.f32.mrb[20].mxu1 }
 0x9ce   : > { %v1708_v16 = vadd.f32 %v1701_v14, %v1627_v5  ;;  %v2795_v17 = vpop.f32.mrb[29].mxu0  ;;  %v2803_v18 = vpop.f32.mrb[21].mxu1 }
 0x9cf   : > { %v1704_v20 = vpop.f32.mrb[30].mxu0  ;;  %v1781_v23 = vpop.f32.mrb[22].mxu1 }
 0x9d0   : > { %v1785_v0 = vadd.f32 %v1778_v15, %v1708_v16  ;;  %v1709_v44 = vadd.f32 %v1704_v20, %v1630_v10  ;;  %v2796_v24 = vpop.f32.mrb[31].mxu0  ;;  %v2804_v25 = vpop.f32.mrb[23].mxu1 }
 0x9d2   : > { %v1786_v1 = vadd.f32 %v1781_v23, %v1709_v44  ;;  %v2622_v23 = vld [vmem:[%s4388_s28] ss:$0 sm:$0xff] }
 0x9d5   : > { %v1842_v26 = vpop.f32.mrb[32].mxu0  ;;  %v1919_v27 = vpop.f32.mrb[24].mxu1 }
 0x9d6   : > { %v1849_v28 = vadd.f32 %v1842_v26, %v1785_v0  ;;  %v2811_v29 = vpop.f32.mrb[33].mxu0  ;;  %v2819_v30 = vpop.f32.mrb[25].mxu1 }
 0x9d7   : > { %v1845_v31 = vpop.f32.mrb[34].mxu0  ;;  %v1922_v32 = vpop.f32.mrb[26].mxu1 }
 0x9d8   : > { %v1926_v33 = vadd.f32 %v1919_v27, %v1849_v28  ;;  %v1850_v34 = vadd.f32 %v1845_v31, %v1786_v1  ;;  %v2812_v35 = vpop.f32.mrb[35].mxu0  ;;  %v2820_v36 = vpop.f32.mrb[27].mxu1 }
 0x9da   : > { %v1927_v37 = vadd.f32 %v1922_v32, %v1850_v34 }
 0x9dd   : > { %v1996_v38 = vpop.f32.mrb[36].mxu0  ;;  %v2073_v39 = vpop.f32.mrb[28].mxu1 }
 0x9de   : > { %v2003_v40 = vadd.f32 %v1996_v38, %v1926_v33  ;;  %v2827_v41 = vpop.f32.mrb[37].mxu0  ;;  %v2835_v42 = vpop.f32.mrb[29].mxu1 }
 0x9df   : > { %v1999_v43 = vpop.f32.mrb[38].mxu0  ;;  %v2076_v45 = vpop.f32.mrb[30].mxu1 }
 0x9e0   : > { %v2080_v46 = vadd.f32 %v2073_v39, %v2003_v40  ;;  %v2004_v47 = vadd.f32 %v1999_v43, %v1927_v37  ;;  %v2828_v48 = vpop.f32.mrb[39].mxu0  ;;  %v2836_v49 = vpop.f32.mrb[31].mxu1 }
 0x9e2   : > { %v2081_v50 = vadd.f32 %v2076_v45, %v2004_v47 }
 0x9e5   : > { %v2145_v51 = vpop.f32.mrb[40].mxu0 }
 0x9e6   : > { %v2152_v54 = vadd.f32 %v2145_v51, %v2080_v46  ;;  %v2843_v52 = vpop.f32.mrb[41].mxu0 }
 0x9e7   : > { %v2148_v55 = vpop.f32.mrb[42].mxu0 }
 0x9e8   : > { %v2161_v56 = vadd.f32 %v2621_v53, %v2152_v54  ;;  %v2153_v57 = vadd.f32 %v2148_v55, %v2081_v50  ;;  %v2844_v58 = vpop.f32.mrb[43].mxu0 }
 0x9ea   : > { %v2163_v59 = vmul.f32 0.33333334, %v2161_v56  ;;  %v2162_v60 = vadd.f32 %v2621_v53, %v2153_v57 }
 0x9ec   : > { %v2167_v61 = vmul.f32 0.044715, %v2163_v59  ;;  %v2164_v62 = vmul.f32 0.33333334, %v2162_v60  ;;  %v2165_v14 = vmul.f32 0.5, %v2163_v59 }
 0x9ee   : > { %v2169_v63 = vmul.f32 %v2167_v61, %v2163_v59  ;;  %v2168_v2 = vmul.f32 0.044715, %v2164_v62  ;;  %v2166_v15 = vmul.f32 0.5, %v2164_v62 }
 0x9f0   : > { %v2171_v3 = vmul.f32 %v2169_v63, %v2163_v59  ;;  %v2170_v4 = vmul.f32 %v2168_v2, %v2164_v62 }
 0x9f2   : > { %v2172_v5 = vmul.f32 %v2170_v4, %v2164_v62  ;;  %v2173_v6 = vadd.f32 %v2171_v3, %v2163_v59 }
 0x9f4   : > { %v2174_v7 = vadd.f32 %v2172_v5, %v2164_v62  ;;  %v2175_v8 = vmul.f32 0.7978846, %v2173_v6 }
 0x9f6   : > { %v2176_v9 = vmul.f32 0.7978846, %v2174_v7  ;;  %3069 = vtanh.f32 %v2175_v8 }
 0x9f8   : > { %3071 = vtanh.f32 %v2176_v9 }
 0xa00   : > { %v3070_v10 = vpop.eup %3069 }
 0xa01   : > { %v2179_v11 = vadd.f32 1.0, %v3070_v10 }
 0xa02   : > { %v3072_v12 = vpop.eup %3071 }
 0xa03   : > { %v2180_v16 = vadd.f32 1.0, %v3072_v12  ;;  %v2181_v17 = vmul.f32 %v2179_v11, %v2165_v14 }
 0xa05   : > { %v2182_v18 = vmul.f32 %v2180_v16, %v2166_v15 }
 0xa07   : > { %v2183_v20 = vpack.c.bf16 %v2182_v18, %v2181_v17 }
 0xa09   : > { %2862 = vmatmul.mubr.bf16.vlgmr.msra.gmra.mrb[32].mxu1 %v2183_v20 }
 0xadc   : > { %v2289_v0 = vpop.f32.mrb[32].mxu1 }
 0xadd   : > { %v2290_v44 = vadd.f32 %v2622_v23, %v2289_v0  ;;  %v2863_v24 = vpop.f32.mrb[33].mxu1 }
 0xade   : > { %v2292_v25 = vpop.f32.mrb[34].mxu1 }
 0xadf   : > { %v2296_v1 = vadd.f32 %v2290_v44, %v4011_v19  ;;  %v2293_v26 = vadd.f32 %v2622_v23, %v2292_v25  ;;  %v2864_v27 = vpop.f32.mrb[35].mxu1 }
 0xae1   : > { %v2298_v28 = vmul.f32 %v2296_v1, %v4006_v13  ;;  %v2297_v29 = vadd.f32 %v2293_v26, %v4016_v22 }
 0xae3   : > { %2300 = vst.msk [vmem:[%s694_s18] sm:$0xff] %vm711_vm0, %v2298_v28  ;;  %v2299_v19 = vmul.f32 %v2297_v29, %v4013_v21 }
 0xae5   : > { %2301 = vst.msk [vmem:[%s694_s18 + $0x8] sm:$0xff] %vm711_vm0, %v2299_v19 }
 0xae6   : > { %3344 = shalt.err (!%p3341_p1)
}
 0xae7   : > { %s3345_s10 = scalar_lea.hbm %s4233_s3, 256  ;;  %s3349_s1 = scalar_lea.hbm %s4390_s29, 512 }
 0xae8   : > { %p3346_p13 = scmp.ne.s32.totalorder %s4233_s3, %s3345_s10  ;;  %p3350_p12 = scmp.lt.u32.totalorder %s4233_s3, %s4390_s29 }
 0xae9   : > { %p3351_p3 = scmp.lt.u32.totalorder %s3349_s1, %s3345_s10  ;;  %p3353_p0 = scmp.lt.u32.totalorder %s3345_s10, %s4233_s3 }
 0xaea   : > { %p3347_p5 = pnand %p3346_p13, %p4391_p8 }
 0xaeb   : > { %p3352_p6 = por %p3351_p3, %p3350_p12 }
 0xaec   : > { %p3348_p9 = pneg %p3347_p5 }
 0xaed   : > { %p3354_p10 = por %p3353_p0, %p3352_p6 }
 0xaef   : > { %p3355_p7 = pnand %p3354_p10, %p3348_p9 }
 0xaf1   : > { %3358 = shalt.err (!%p3355_p7)
}
 0xaf2   : > { %s3438_s4 = smov 128   ;;  %s3439_s14 = smov 8  }
 0xaf3   : > { %2895 = dma.vmem_to_hbm [thread:$0]  (%p4391_p8), %s4235_s25, 256, %s4233_s3, %s2303_s8, %s3438_s4, %s3438_s4, %s3439_s14  }
 0xaf4 PF: > { %s4392_s28 = sld [smem:[#allocation25_spill]]  ;;  %s4393_s23 = sld [smem:[#allocation33_spill]] }
 0xaf5   : > { %p4395_p2 = scmp.ge.s32.totalorder %s3413_s21, 2 }
 0xafa   : > { %s2331_s18 = sand.u32 1, %s4392_s28   ;;  %p4394_p4 = scmp.ne.s32.totalorder %s4393_s23, 0 }
 0xafb   : > { %s2332_s13 = scalar_lea.sflag [#allocation5], %s2331_s18 }
 0xafc   : > { %p2927_p11 = pnand %p4395_p2, %p4394_p4 }
 0xafe   : > { %3396 = dma.done.wait (!%p2927_p11), %s2332_s13, 256  }
 0xaff   : > { %3398 = vsyncadd (!%p2927_p11), %s2332_s13, 4294967040  ;;  %s4396_s21 = sld [smem:[#allocation29_spill]]  ;;  %s4397_s18 = sld [smem:[#allocation26_spill]] }
 0xb00   : > { %s4398_s19 = sld [smem:[#allocation27_spill]]  ;;  %s4399_s20 = sld [smem:[#allocation30_spill]] }
 0xb05   : > { %p34_p1 = scmp.ge.s32.totalorder %s4396_s21, 4  }
 0xb07   :  { %36 = sbr.rel (!%p34_p1) target bundleno = 22 (0x16), region = 187 }
 0xb0e   :  { %2337 = vsyncpa [#allocation4], 1 }
 0xb0f   :  { %2339 = vsyncpa [#allocation4 + $0x1], 1 }
 0xb10   :  { %2340 = vsyncpa [#allocation7], 1 }
 0xb11   :  { %2342 = vsyncpa [#allocation7 + $0x1], 1 }
 0xb12   :  { %2343 = vsyncpa [#allocation10], 1 }
 0xb13   :  { %2344 = vsyncpa [#allocation13], 1 }
 0xb14   :  { %2345 = vsyncpa [#allocation16], 1 }
 0xb15   :  { %2346 = vsyncpa [#allocation5], 1 }
 0xb16   :  { %2348 = vsyncpa [#allocation5 + $0x1], 1 }

// kernel: tpu_custom_call.1
= control target key start
LH: loop header
LB: loop body
LE: loop exit
PB: predicated region body
PF: predicated region fallthrough
CT: control target
= control target key end

     0   :  { %s4282_s0 = inlined_call_operand.hbm [shape: f32[2,16,32], index: 0, kind: input, shape index: {}]   ;;  %s4283_s1 = inlined_call_operand.hbm [shape: bf16[2,16,32], index: 1, kind: input, shape index: {}]   ;;  %s4284_s2 = inlined_call_operand.hbm [shape: bf16[2,16,32], index: 2, kind: input, shape index: {}]   ;;  %s4285_s3 = inlined_call_operand.vmem [shape: f32[2,1,16], index: 3, kind: input, shape index: {}]   ;;  %s4286_s4 = inlined_call_operand.vmem [shape: f32[2,16,1], index: 4, kind: input, shape index: {}]   ;;  %s4287_s5 = inlined_call_operand.vmem [shape: f32[1,32], index: 5, kind: input, shape index: {}]   ;;  %s4288_s6 = inlined_call_operand.hbm [shape: f32[1,32], index: 6, kind: input, shape index: {}]   ;;  %s4289_s7 = inlined_call_operand.hbm [shape: bf16[32,96], index: 7, kind: input, shape index: {}]   ;;  %s4290_s8 = inlined_call_operand.hbm [shape: bf16[32,32], index: 8, kind: input, shape index: {}]   ;;  %s4291_s9 = inlined_call_operand.hbm [shape: f32[1,32], index: 9, kind: input, shape index: {}]   ;;  %s4292_s10 = inlined_call_operand.hbm [shape: f32[1,32], index: 10, kind: input, shape index: {}]   ;;  %s4293_s11 = inlined_call_operand.vmem [shape: bf16[9,32,128], index: 11, kind: input, shape index: {}]   ;;  %s4294_s12 = inlined_call_operand.hbm [shape: f32[1,128], index: 12, kind: input, shape index: {}]   ;;  %s4295_s13 = inlined_call_operand.vmem [shape: bf16[128,32], index: 13, kind: input, shape index: {}]   ;;  %s4296_s14 = inlined_call_operand.vmem [shape: f32[1,32], index: 14, kind: input, shape index: {}]   ;;  %s4297_s15 = inlined_call_operand.hbm [shape: f32[2,16,32], index: 15, kind: output, shape index: {}]  }
   0x1   :  { %4331 = sst [smem:[#allocation34_spill]] %s4283_s1 }
   0x2   :  { %4332 = sst [smem:[#allocation35_spill]] %s4285_s3 }
   0x3   :  { %4333 = sst [smem:[#allocation36_spill]] %s4286_s4 }
   0x4   :  { %4334 = sst [smem:[#allocation37_spill]] %s4287_s5 }
   0x5   :  { %4335 = sst [smem:[#allocation38_spill]] %s4288_s6 }
   0x6   :  { %4336 = sst [smem:[#allocation39_spill]] %s4290_s8 }
   0x7   :  { %4337 = sst [smem:[#allocation40_spill]] %s4292_s10 }
   0x8   :  { %4338 = sst [smem:[#allocation41_spill]] %s4293_s11 }
   0x9   :  { %4339 = sst [smem:[#allocation42_spill]] %s4295_s13 }
   0xa   :  { %4340 = sst [smem:[#allocation43_spill]] %s4296_s14 }
   0xb   :  { %4341 = sst [smem:[#allocation44_spill]] %s4297_s15 }
   0xc   :  { %20 = vsyncpa [#allocation4], 0 }
   0xd   :  { %22 = vsyncpa [#allocation4 + $0x1], 0 }
   0xe   :  { %23 = vsyncpa [#allocation7], 0 }
   0xf   :  { %25 = vsyncpa [#allocation7 + $0x1], 0 }
  0x10   :  { %26 = vsyncpa [#allocation10], 0 }
  0x11   :  { %27 = vsyncpa [#allocation13], 0 }
  0x12   :  { %28 = vsyncpa [#allocation16], 0 }
  0x13   :  { %29 = vsyncpa [#allocation5], 0 }
  0x14   :  { %31 = vsyncpa [#allocation5 + $0x1], 0  ;;  %s3520_s18 = smov 0   ;;  %s3522_s19 = smov 0  }
  0x15   :  { %s3524_s20 = smov 0   ;;  %s3526_s21 = smov 0  }
  0x16 LB: > { %4342 = sst [smem:[#allocation25_spill]] %s3401_s18  ;;  %s3415_s22 = smov [#allocation9]   ;;  %s3413_s21 = sphi %s3526_s21, %s4396_s21   ;;  %s3409_s20 = sphi %s3524_s20, %s4399_s20   ;;  %s3405_s19 = sphi %s3522_s19, %s4398_s19   ;;  %s3401_s18 = sphi %s3520_s18, %s4397_s18  }
  0x17   : > { %4343 = sst [smem:[#allocation26_spill]] %s3405_s19  ;;  %s424_s23 = sshll.u32 %s3415_s22, 4  ;;  %s3546_s23 = int_to_ptr.vmem [resolvable:$true] %s424_s23 }
  0x18   : > { %4344 = sst [smem:[#allocation27_spill]] %s3409_s20  ;;  %s3541_s24 = sadd.s32 4294967295, %s3413_s21  }
  0x19   : > { %4345 = sst [smem:[#allocation28_spill]] %s3541_s24  ;;  %p2511_p0 = scmp.ge.s32.totalorder %s3413_s21, 1 }
  0x1a   : > { %p4311_p1 = scmp.eq.s32.totalorder %s3541_s24, 0  ;;  %p408_p2 = scmp.lt.s32.totalorder %s3413_s21, 3 }
  0x1b   : > { %s3416_s26 = smov [#allocation12]   ;;  %s3417_s29 = smov [#allocation15]  }
  0x1c   : > { %p3548_p3 = pnand %p2511_p0, %p408_p2  ;;  %s447_s27 = sshll.u32 %s3416_s26, 4  ;;  %s3561_s27 = int_to_ptr.vmem [resolvable:$true] %s447_s27 }
  0x1d   : > { %s472_s30 = sshll.u32 %s3417_s29, 4  ;;  %s4348_s6 = sld [smem:[#allocation38_spill]]  ;;  %s3563_s30 = int_to_ptr.vmem [resolvable:$true] %s472_s30 }
  0x1e   : > { %s4346_s25 = scalar_select %p3548_p3, 1, 0 }
  0x1f   : > { %p2897_p5 = pneg %p3548_p3 }
  0x21   : > { %p3557_p6 = pnand %p2897_p5, %p4311_p1 }
  0x23   : > { %s4347_s28 = scalar_select %p3557_p6, 1, 0 }
  0x24   : > { %s3073_s22 = scalar_lea.hbm %s4348_s6, 16  ;;  %p3573_p8 = pneg %p3557_p6 }
  0x25   : > { %p3074_p7 = scmp.ne.s32.totalorder %s4348_s6, %s3073_s22  ;;  %p3080_p11 = scmp.lt.u32.totalorder %s3073_s22, %s4348_s6 }
  0x26   : > { %s4349_s26 = scalar_select %p3573_p8, 1, 0 }
  0x27   : > { %p3076_p9 = pnand %p3573_p8, %p3074_p7 }
  0x29   : > { %p3077_p10 = pneg %p3076_p9 }
  0x2b   : > { %p3082_p12 = pnand %p3080_p11, %p3077_p10 }
  0x2d   : > { %3085 = shalt.err (!%p3082_p12)
}
  0x2e   : > { %s3086_s14 = scalar_lea.vmem %s3546_s23, 16  ;;  %s3093_s15 = scalar_lea.vmem %s3546_s23, 32 }
  0x2f   : > { %p3087_p13 = scmp.ne.s32.totalorder %s3546_s23, %s3086_s14  ;;  %p3094_p5 = scmp.lt.s32.totalorder %s3546_s23, %s3546_s23 }
  0x30   : > { %p3095_p7 = scmp.lt.s32.totalorder %s3093_s15, %s3086_s14 }
  0x31   : > { %p3089_p0 = pnand %p3087_p13, %p3573_p8 }
  0x32   : > { %p3096_p9 = por %p3095_p7, %p3094_p5 }
  0x33   : > { %p3090_p2 = pneg %p3089_p0 }
  0x35   : > { %p3097_p4 = pnand %p3096_p9, %p3090_p2 }
  0x37   : > { %3100 = shalt.err (!%p3097_p4)
}
  0x38   : > { %2900 = dma.hbm_to_vmem [thread:$0]  (!%p3557_p6), %s4348_s6, 16, %s3546_s23, [#allocation10]  }
  0x39   : > { %s4350_s8 = sld [smem:[#allocation39_spill]] }
  0x3f   : > { %s3101_s29 = scalar_lea.hbm %s4350_s8, 256 }
  0x40   : > { %p3102_p10 = scmp.ne.s32.totalorder %s4350_s8, %s3101_s29  ;;  %p3108_p4 = scmp.lt.u32.totalorder %s3101_s29, %s4350_s8 }
  0x42   : > { %p3104_p11 = pnand %p3102_p10, %p3573_p8 }
  0x44   : > { %p3105_p12 = pneg %p3104_p11 }
  0x46   : > { %p3110_p13 = pnand %p3108_p4, %p3105_p12 }
  0x48   : > { %3113 = shalt.err (!%p3110_p13)
}
  0x49   : > { %s3114_s23 = scalar_lea.vmem %s3561_s27, 256  ;;  %p3122_p7 = scmp.lt.s32.totalorder %s3561_s27, %s3561_s27 }
  0x4a   : > { %p3115_p0 = scmp.ne.s32.totalorder %s3561_s27, %s3114_s23  ;;  %p3123_p9 = scmp.lt.s32.totalorder %s3114_s23, %s3114_s23 }
  0x4c   : > { %p3117_p2 = pnand %p3115_p0, %p3573_p8  ;;  %p3124_p10 = por %p3123_p9, %p3122_p7 }
  0x4e   : > { %p3118_p5 = pneg %p3117_p2 }
  0x50   : > { %p3125_p11 = pnand %p3124_p10, %p3118_p5 }
  0x52   : > { %3128 = shalt.err (!%p3125_p11)
}
  0x53   : > { %s4302_s4 = smov 64   ;;  %s4304_s11 = smov 4  }
  0x54   : > { %2906 = dma.hbm_to_vmem [thread:$0]  (!%p3557_p6), %s4350_s8, 256, %s3561_s27, [#allocation13], %s4302_s4, %s4302_s4, %s4304_s11  }
  0x55   : > { %s4351_s10 = sld [smem:[#allocation40_spill]] }
  0x5b   : > { %s3129_s29 = scalar_lea.hbm %s4351_s10, 16 }
  0x5c   : > { %p3130_p12 = scmp.ne.s32.totalorder %s4351_s10, %s3129_s29  ;;  %p3136_p0 = scmp.lt.u32.totalorder %s3129_s29, %s4351_s10 }
  0x5e   : > { %p3132_p4 = pnand %p3130_p12, %p3573_p8 }
  0x60   : > { %p3133_p13 = pneg %p3132_p4 }
  0x62   : > { %p3138_p2 = pnand %p3136_p0, %p3133_p13 }
  0x64   : > { %3141 = shalt.err (!%p3138_p2)
}
  0x65   : > { %s3142_s27 = scalar_lea.vmem %s3563_s30, 16  ;;  %s3149_s13 = scalar_lea.vmem %s3563_s30, 32 }
  0x66   : > { %p3143_p5 = scmp.ne.s32.totalorder %s3563_s30, %s3142_s27  ;;  %p3150_p10 = scmp.lt.s32.totalorder %s3563_s30, %s3563_s30 }
  0x67   : > { %p3151_p11 = scmp.lt.s32.totalorder %s3149_s13, %s3142_s27 }
  0x68   : > { %p3145_p7 = pnand %p3143_p5, %p3573_p8 }
  0x69   : > { %p3152_p12 = por %p3151_p11, %p3150_p10 }
  0x6a   : > { %p3146_p9 = pneg %p3145_p7 }
  0x6c   : > { %p3153_p4 = pnand %p3152_p12, %p3146_p9 }
  0x6e   : > { %3156 = shalt.err (!%p3153_p4)
}
  0x6f   : > { %2912 = dma.hbm_to_vmem [thread:$0]  (!%p3557_p6), %s4351_s10, 16, %s3563_s30, [#allocation16]  }
  0x70   : > { %s2510_s17 = sadd.s32 4294967294, %s3413_s21   ;;  %s3647_s22 = sadd.s32 1, %s3413_s21  }
  0x71   : > { %4352 = sst [smem:[#allocation29_spill]] %s3647_s22  ;;  %s44_s29 = sadd.s32 1, %s3409_s20 }
  0x72   : > { %s41_s14 = ssub.s32 %s3413_s21, %s3647_s22  ;;  %p51_p13 = scmp.ne.s32.totalorder %s3409_s20, %s3405_s19 }
  0x73   : > { %p42_p0 = scmp.eq.s32.totalorder %s41_s14, 0  ;;  %p52_p2 = scmp.eq.s32.totalorder %s3413_s21, 0 }
  0x74   : > { %p57_p5 = scmp.ne.s32.totalorder %s3405_s19, %s3401_s18  ;;  %p395_p7 = scmp.eq.s32.totalorder %s3541_s24, 1 }
  0x75   : > { %s3659_s15 = scalar_select %p42_p0, %s3409_s20, %s44_s29  }
  0x76   : > { %p53_p9 = por %p52_p2, %p51_p13  ;;  %p3663_p10 = por %p4311_p1, %p57_p5 }
  0x77   : > { %4353 = sst [smem:[#allocation30_spill]] %s3659_s15  ;;  %p3667_p11 = por %p395_p7, %p51_p13 }
  0x78   : > { %s4354_s30 = scalar_select %p3663_p10, 1, 0 }
  0x79   : > { %s4356_s23 = scalar_select %p3667_p11, 1, 0 }
  0x7a   : > { %4355 = sst [smem:[#allocation31_spill]] %s4354_s30  ;;  %p401_p12 = scmp.eq.s32.totalorder %s2510_s17, 1 }
  0x7b   : > { %4357 = sst [smem:[#allocation32_spill]] %s4356_s23  ;;  %p2936_p4 = scmp.lt.s32.totalorder %s3413_s21, 2 }
  0x7c   : > { %s3673_s27 = sand.u32 1, %s3409_s20   ;;  %p3675_p3 = por %p401_p12, %p57_p5 }
  0x7d   : > { %s524_s6 = sand.u32 1, %s3413_s21   ;;  %p3680_p0 = pnand %p2936_p4, %p53_p9 }
  0x7e   : > { %s4358_s13 = scalar_select %p3675_p3, 1, 0 }
  0x7f   : > { %s4360_s16 = scalar_select %p3680_p0, 1, 0 }
  0x80   : > { %4359 = sst [smem:[#allocation33_spill]] %s4358_s13  ;;  %s4309_s29 = sshll.u32 %s3673_s27, 3 }
  0x81   : > { %s4310_s14 = sshll.u32 %s3413_s21, 7  ;;  %s4361_s1 = sld [smem:[#allocation34_spill]] }
  0x82   : > { %s528_s8 = scalar_lea.vmem [#allocation6], %s4309_s29  ;;  %s3697_s15 = scalar_lea.sflag [#allocation7], %s524_s6 }
  0x83   : > { %s535_s10 = sshll.u32 %s528_s8, 4  ;;  %p3703_p2 = pneg %p3680_p0  ;;  %s3695_s10 = int_to_ptr.vmem [resolvable:$true] %s535_s10 }
  0x85   : > { %s4362_s22 = scalar_select %p3703_p2, 1, 0 }
  0x87   : > { %s3691_s11 = scalar_lea.hbm %s4361_s1, %s4310_s14  ;;  %s3162_s29 = scalar_lea.hbm %s4361_s1, 256 }
  0x88   : > { %s3157_s20 = scalar_lea.hbm %s3691_s11, 128  ;;  %p3163_p9 = scmp.lt.u32.totalorder %s3691_s11, %s4361_s1 }
  0x89   : > { %p3158_p13 = scmp.ne.s32.totalorder %s3691_s11, %s3157_s20  ;;  %p3164_p12 = scmp.lt.u32.totalorder %s3162_s29, %s3157_s20 }
  0x8a   : > { %p3166_p1 = scmp.lt.u32.totalorder %s3157_s20, %s3691_s11 }
  0x8b   : > { %p3160_p5 = pnand %p3703_p2, %p3158_p13  ;;  %p3165_p4 = por %p3164_p12, %p3163_p9 }
  0x8d   : > { %p3161_p7 = pneg %p3160_p5  ;;  %p3167_p3 = por %p3166_p1, %p3165_p4 }
  0x8f   : > { %p3168_p11 = pnand %p3167_p3, %p3161_p7 }
  0x91   : > { %3171 = shalt.err (!%p3168_p11)
}
  0x92   : > { %s3172_s6 = scalar_lea.vmem %s3695_s10, 128  ;;  %s3420_s4 = smov [#allocation6]  }
  0x93   : > { %p3173_p13 = scmp.ne.s32.totalorder %s3695_s10, %s3172_s6  ;;  %s3177_s17 = sshll.u32 %s3420_s4, 4  ;;  %s3178_s17 = int_to_ptr.vmem [resolvable:$false] %s3177_s17 }
  0x94   : > { %s3179_s14 = scalar_lea.vmem %s3178_s17, 256  ;;  %p3180_p6 = scmp.lt.s32.totalorder %s3695_s10, %s3178_s17 }
  0x95   : > { %p3175_p5 = pnand %p3173_p13, %p3703_p2  ;;  %p3181_p8 = scmp.lt.s32.totalorder %s3179_s14, %s3172_s6 }
  0x97   : > { %p3176_p10 = pneg %p3175_p5  ;;  %p3182_p9 = por %p3181_p8, %p3180_p6 }
  0x99   : > { %p3183_p12 = pnand %p3182_p9, %p3176_p10 }
  0x9b   : > { %3186 = shalt.err (!%p3183_p12)
}
  0x9c   : > { %s4363_s20 = smov 4   ;;  %s4364_s29 = smov 64  }
  0x9d   : > { %2922 = dma.hbm_to_vmem [thread:$0]  (!%p3680_p0), %s3691_s11, 128, %s3695_s10, %s3697_s15, %s4364_s29, %s4364_s29, %s4363_s20  }
  0x9e   : > { %s4365_s8 = sshll.u32 %s3413_s21, 7  ;;  %s4366_s17 = sshll.u32 %s3673_s27, 3 }
  0x9f   : > { %s3735_s6 = scalar_lea.hbm %s4284_s2, %s4365_s8  ;;  %s549_s14 = scalar_lea.vmem [#allocation8], %s4366_s17 }
  0xa0   : > { %s556_s13 = sshll.u32 %s549_s14, 4  ;;  %s3421_s18 = smov [#allocation11]   ;;  %s3739_s13 = int_to_ptr.vmem [resolvable:$true] %s556_s13 }
  0xa1   : > { %s434_s23 = sshll.u32 %s3421_s18, 4  ;;  %s3422_s3 = smov [#allocation14]   ;;  %s435_s23 = int_to_ptr.vmem [resolvable:$true] %s434_s23 }
  0xa2   : > { %s461_s5 = sshll.u32 %s3422_s3, 4  ;;  %s3187_s10 = scalar_lea.hbm %s4289_s7, 256  ;;  %s462_s5 = int_to_ptr.vmem [resolvable:$true] %s461_s5 }
  0xa3   : > { %p3188_p1 = scmp.ne.s32.totalorder %s4289_s7, %s3187_s10  ;;  %p4367_p3 = scmp.ne.s32.totalorder %s4349_s26, 0 }
  0xa4   : > { %p3194_p10 = scmp.lt.u32.totalorder %s3187_s10, %s4289_s7 }
  0xa5   : > { %p3190_p6 = pnand %p3188_p1, %p4367_p3 }
  0xa7   : > { %p3191_p8 = pneg %p3190_p6 }
  0xa9   : > { %p3196_p11 = pnand %p3194_p10, %p3191_p8 }
  0xab   : > { %3199 = shalt.err (!%p3196_p11)
}
  0xac   : > { %s3200_s18 = scalar_lea.vmem %s435_s23, 256  ;;  %p3208_p5 = scmp.lt.s32.totalorder %s435_s23, %s435_s23 }
  0xad   : > { %p3201_p7 = scmp.ne.s32.totalorder %s435_s23, %s3200_s18  ;;  %p3209_p9 = scmp.lt.s32.totalorder %s3200_s18, %s3200_s18 }
  0xaf   : > { %p3203_p4 = pnand %p3201_p7, %p4367_p3  ;;  %p3210_p12 = por %p3209_p9, %p3208_p5 }
  0xb1   : > { %p3204_p13 = pneg %p3203_p4 }
  0xb3   : > { %p3211_p0 = pnand %p3210_p12, %p3204_p13 }
  0xb5   : > { %3214 = shalt.err (!%p3211_p0)
}
  0xb6   : > { %p4368_p1 = scmp.ne.s32.totalorder %s4347_s28, 0  ;;  %s3215_s4 = scalar_lea.hbm %s4291_s9, 16 }
  0xb7   : > { %p3216_p6 = scmp.ne.s32.totalorder %s4291_s9, %s3215_s4  ;;  %p3222_p10 = scmp.lt.u32.totalorder %s3215_s4, %s4291_s9 }
  0xb8   : > { %2903 = dma.hbm_to_vmem [thread:$0]  (!%p4368_p1), %s4289_s7, 256, %s435_s23, [#allocation10], %s4364_s29, %s4364_s29, %s4363_s20  }
  0xb9   : > { %p3218_p0 = pnand %p3216_p6, %p4367_p3 }
  0xbb   : > { %p3219_p8 = pneg %p3218_p0 }
  0xbd   : > { %p3224_p11 = pnand %p3222_p10, %p3219_p8 }
  0xbf   : > { %3227 = shalt.err (!%p3224_p11)
}
  0xc0   : > { %s3228_s1 = scalar_lea.vmem %s462_s5, 16  ;;  %s3235_s23 = scalar_lea.vmem %s462_s5, 32 }
  0xc1   : > { %p3229_p7 = scmp.ne.s32.totalorder %s462_s5, %s3228_s1  ;;  %p3236_p5 = scmp.lt.s32.totalorder %s462_s5, %s462_s5 }
  0xc2   : > { %p3237_p9 = scmp.lt.s32.totalorder %s3235_s23, %s3228_s1 }
  0xc3   : > { %p3231_p4 = pnand %p3229_p7, %p4367_p3 }
  0xc4   : > { %p3238_p12 = por %p3237_p9, %p3236_p5 }
  0xc5   : > { %p3232_p13 = pneg %p3231_p4 }
  0xc7   : > { %p3239_p2 = pnand %p3238_p12, %p3232_p13 }
  0xc9   : > { %3242 = shalt.err (!%p3239_p2)
}
  0xca   : > { %2909 = dma.hbm_to_vmem [thread:$0]  (!%p4368_p1), %s4291_s9, 16, %s462_s5, [#allocation13]  }
  0xcb   : > { %s3423_s3 = smov [#allocation17]   ;;  %s2519_s24 = sshll.u32 %s3673_s27, 4 }
  0xcc   : > { %s486_s19 = sshll.u32 %s3423_s3, 4  ;;  %s3243_s17 = scalar_lea.hbm %s4294_s12, 16  ;;  %s487_s19 = int_to_ptr.vmem [resolvable:$true] %s486_s19 }
  0xcd   : > { %p3244_p2 = scmp.ne.s32.totalorder %s4294_s12, %s3243_s17  ;;  %p3250_p8 = scmp.lt.u32.totalorder %s3243_s17, %s4294_s12 }
  0xcf   : > { %p3246_p6 = pnand %p3244_p2, %p4367_p3 }
  0xd1   : > { %p3247_p0 = pneg %p3246_p6 }
  0xd3   : > { %p3252_p10 = pnand %p3250_p8, %p3247_p0 }
  0xd5   : > { %3255 = shalt.err (!%p3252_p10)
}
  0xd6   : > { %s3256_s5 = scalar_lea.vmem %s487_s19, 16  ;;  %s3263_s23 = scalar_lea.vmem %s487_s19, 32 }
  0xd7   : > { %p3257_p11 = scmp.ne.s32.totalorder %s487_s19, %s3256_s5  ;;  %p3264_p13 = scmp.lt.s32.totalorder %s487_s19, %s487_s19 }
  0xd8   : > { %p3265_p5 = scmp.lt.s32.totalorder %s3263_s23, %s3256_s5 }
  0xd9   : > { %p3259_p7 = pnand %p3257_p11, %p4367_p3 }
  0xda   : > { %p3266_p9 = por %p3265_p5, %p3264_p13 }
  0xdb   : > { %p3260_p4 = pneg %p3259_p7 }
  0xdd   : > { %p3267_p12 = pnand %p3266_p9, %p3260_p4 }
  0xdf   : > { %3270 = shalt.err (!%p3267_p12)
}
  0xe0   : > { %2915 = dma.hbm_to_vmem [thread:$0]  (!%p4368_p1), %s4294_s12, 16, %s487_s19, [#allocation16]  }
  0xe1   : > { %s2636_s3 = sshll.u32 %s3413_s21, 8  ;;  %s507_s17 = scalar_lea.vmem [#allocation3], %s2519_s24 }
  0xe2   : > { %s3803_s4 = scalar_lea.hbm %s4282_s0, %s2636_s3  ;;  %s514_s14 = sshll.u32 %s507_s17, 4  ;;  %s3805_s14 = int_to_ptr.vmem [resolvable:$true] %s514_s14 }
  0xe3   : > { %s504_s28 = scalar_lea.sflag [#allocation4], %s3673_s27  ;;  %s3271_s10 = scalar_lea.hbm %s3803_s4, 256 }
  0xe4   : > { %p3272_p3 = scmp.ne.s32.totalorder %s3803_s4, %s3271_s10  ;;  %p4369_p2 = scmp.ne.s32.totalorder %s4362_s22, 0 }
  0xe5   : > { %s3276_s1 = scalar_lea.hbm %s4282_s0, 512  ;;  %p3277_p0 = scmp.lt.u32.totalorder %s3803_s4, %s4282_s0 }
  0xe6   : > { %p3274_p6 = pnand %p3272_p3, %p4369_p2  ;;  %p3278_p8 = scmp.lt.u32.totalorder %s3276_s1, %s3271_s10 }
  0xe7   : > { %p3280_p11 = scmp.lt.u32.totalorder %s3271_s10, %s3803_s4 }
  0xe8   : > { %p3275_p1 = pneg %p3274_p6  ;;  %p3279_p10 = por %p3278_p8, %p3277_p0 }
  0xea   : > { %p3281_p7 = por %p3280_p11, %p3279_p10 }
  0xec   : > { %p3282_p4 = pnand %p3281_p7, %p3275_p1 }
  0xee   : > { %3285 = shalt.err (!%p3282_p4)
}
  0xef   : > { %s3286_s24 = scalar_lea.vmem %s3805_s14, 256  ;;  %s3424_s8 = smov [#allocation3]  }
  0xf0   : > { %p3287_p13 = scmp.ne.s32.totalorder %s3805_s14, %s3286_s24  ;;  %s3291_s18 = sshll.u32 %s3424_s8, 4  ;;  %s3292_s18 = int_to_ptr.vmem [resolvable:$false] %s3291_s18 }
  0xf1   : > { %s3293_s3 = scalar_lea.vmem %s3292_s18, 512  ;;  %p3294_p12 = scmp.lt.s32.totalorder %s3805_s14, %s3292_s18 }
  0xf2   : > { %p3289_p5 = pnand %p3287_p13, %p4369_p2  ;;  %p3295_p3 = scmp.lt.s32.totalorder %s3293_s3, %s3286_s24 }
  0xf4   : > { %p3290_p9 = pneg %p3289_p5  ;;  %p3296_p6 = por %p3295_p3, %p3294_p12 }
  0xf6   : > { %p3297_p0 = pnand %p3296_p6, %p3290_p9 }
  0xf8   : > { %3300 = shalt.err (!%p3297_p0)
}
  0xf9   : > { %s3425_s30 = smov 128   ;;  %s3426_s26 = smov 8  }
  0xfa   : > { %p4370_p1 = scmp.ne.s32.totalorder %s4360_s16, 0  ;;  %s3301_s17 = scalar_lea.hbm %s3735_s6, 128 }
  0xfb   : > { %p3302_p8 = scmp.ne.s32.totalorder %s3735_s6, %s3301_s17  ;;  %s3306_s11 = scalar_lea.hbm %s4284_s2, 256 }
  0xfc   : > { %2919 = dma.hbm_to_vmem [thread:$0]  (!%p4370_p1), %s3803_s4, 256, %s3805_s14, %s504_s28, %s3425_s30, %s3425_s30, %s3426_s26  }
  0xfd   : > { %p3304_p10 = pnand %p3302_p8, %p4369_p2  ;;  %p3307_p7 = scmp.lt.u32.totalorder %s3735_s6, %s4284_s2 }
  0xfe   : > { %p3308_p4 = scmp.lt.u32.totalorder %s3306_s11, %s3301_s17  ;;  %p3310_p5 = scmp.lt.u32.totalorder %s3301_s17, %s3735_s6 }
  0xff   : > { %p3305_p11 = pneg %p3304_p10 }
 0x100   : > { %p3309_p13 = por %p3308_p4, %p3307_p7 }
 0x102   : > { %p3311_p9 = por %p3310_p5, %p3309_p13 }
 0x104   : > { %p3312_p12 = pnand %p3311_p9, %p3305_p11 }
 0x106   : > { %3315 = shalt.err (!%p3312_p12)
}
 0x107   : > { %s3316_s27 = scalar_lea.vmem %s3739_s13, 128  ;;  %s3427_s4 = smov [#allocation8]  }
 0x108   : > { %p3317_p3 = scmp.ne.s32.totalorder %s3739_s13, %s3316_s27  ;;  %s3321_s14 = sshll.u32 %s3427_s4, 4  ;;  %s3322_s14 = int_to_ptr.vmem [resolvable:$false] %s3321_s14 }
 0x109   : > { %s3323_s28 = scalar_lea.vmem %s3322_s14, 256  ;;  %p3324_p8 = scmp.lt.s32.totalorder %s3739_s13, %s3322_s14 }
 0x10a   : > { %p3319_p6 = pnand %p3317_p3, %p4369_p2  ;;  %p3325_p10 = scmp.lt.s32.totalorder %s3323_s28, %s3316_s27 }
 0x10c   : > { %p3320_p0 = pneg %p3319_p6  ;;  %p3326_p7 = por %p3325_p10, %p3324_p8 }
 0x10e   : > { %p3327_p4 = pnand %p3326_p7, %p3320_p0 }
 0x110   : > { %3330 = shalt.err (!%p3327_p4)
}
 0x111   : > { %2925 = dma.hbm_to_vmem [thread:$0]  (!%p4370_p1), %s3735_s6, 128, %s3739_s13, %s3697_s15, %s4364_s29, %s4364_s29, %s4363_s20  }
 0x112   : > { %p4371_p2 = scmp.ne.s32.totalorder %s4346_s25, 0 }
 0x113   : > { %s4372_s22 = sld [smem:[#allocation26_spill]] (!%p4371_p2)  ;;  %s4373_s23 = sld [smem:[#allocation31_spill]] (!%p4371_p2) }
 0x114   : > { %582 = sbr.rel (%p4371_p2) target bundleno = 2804 (0xaf4), region = 80 }
 0x119   : > { %s3859_s24 = sand.u32 (!%p4371_p2), 1, %s4372_s22   ;;  %p4374_p11 = scmp.ne.s32.totalorder (!%p4371_p2), %s4373_s23, 0 }
 0x11a   : > { %s2529_s8 = sshll.u32 (!%p4371_p2), %s3859_s24, 4  ;;  %s585_s18 = scalar_lea.sflag (!%p4371_p2), [#allocation4], %s3859_s24 }
 0x11b   : > { %s588_s16 = scalar_lea.vmem [#allocation3], %s2529_s8 }
 0x11c   : > { %3376 = dma.done.wait (%p4374_p11), %s585_s18, 256  }
 0x11d   : > { %3378 = vsyncadd (%p4374_p11), %s585_s18, 4294967040  ;;  %s4375_s15 = sld [smem:[#allocation28_spill]]  ;;  %s2530_s13 = sshll.u32 %s3859_s24, 3 }
 0x11e   : > { %s3871_s29 = scalar_lea.vmem [#allocation6], %s2530_s13 }
 0x123   : > { %s593_s25 = sand.u32 1, %s4375_s15  }
 0x124   : > { %s594_s20 = scalar_lea.sflag [#allocation7], %s593_s25 }
 0x125   : > { %3380 = dma.done.wait (%p4374_p11), %s594_s20, 256  }
 0x126   : > { %3382 = vsyncadd (%p4374_p11), %s594_s20, 4294967040  ;;  %s3877_s6 = scalar_lea.vmem [#allocation8], %s2530_s13  ;;  %p4376_p1 = scmp.eq.s32.totalorder %s4375_s15, 0 }
 0x128   : > { %3384 = dma.done.wait (%p4376_p1), [#allocation10], 272   ;;  %p4377_p13 = pmov %p4376_p1 }
 0x129   : > { %p4378_p5 = pmov %p4376_p1 }
 0x12a   : > { %3386 = vsyncadd (%p4377_p13), [#allocation10], 4294967024 }
 0x12b   : > { %3388 = dma.done.wait (%p4378_p5), [#allocation13], 272   ;;  %p4379_p9 = pmov %p4376_p1 }
 0x12c   : > { %p4380_p12 = pmov %p4376_p1 }
 0x12d   : > { %3390 = vsyncadd (%p4379_p9), [#allocation13], 4294967024 }
 0x12e   : > { %3392 = dma.done.wait (%p4380_p12), [#allocation16], 32   ;;  %p4381_p3 = pmov %p4376_p1 }
 0x12f   : > { %vm711_vm0 = vcmask 261120   ;;  %v3891_v0 = vld [vmem:[%s588_s16] sm:$0xff]  ;;  %v3893_v1 = vld [vmem:[%s588_s16 + $0x8] sm:$0xff]  ;;  %s4382_s26 = sld [smem:[#allocation37_spill]]  ;;  %v3428_v44 = vmov 0.0   ;;  %vm3429_vm1 = vmmov 0  }
 0x130   : > { %3394 = vsyncadd (%p4381_p3), [#allocation16], 4294967264  ;;  %v712_v2 = vsel %vm711_vm0, %v3891_v0, 0.0  ;;  %v715_v3 = vsel %vm711_vm0, %v3893_v1, 0.0  ;;  %v2999_v14 = vld [vmem:[#allocation11] sm:$0xff]   ;;  %v3000_v15 = vld [vmem:[#allocation11 + $0x8] sm:$0xff]   ;;  %2729 = vmatprep.subr.bf16.mxu1 %v3428_v44  ;;  %2731 = vmatprep.mubr.msk.bf16.mxu1 %vm3429_vm1, %v3428_v44 }
 0x131   : > { %713 = vadd.xlane.f32.xlu0 %v712_v2  ;;  %2709 = vmatprep.subr.bf16.mxu0 %v2999_v14  ;;  %v2642_v26 = vld [vmem:[%s3871_s29] sm:$0xff]   ;;  %v2646_v27 = vld [vmem:[%s3877_s6] sm:$0xff]   ;;  %s3430_s17 = smov 80   ;;  %s3431_s10 = smov 96   ;;  %vm851_vm2 = vcmask 130048   ;;  %vm1097_vm3 = vcmask 261248  }
 0x132   : > { %2710 = vmatpush3.bf16.msra.mxu0 %v2999_v14  ;;  %v2542_v29 = vld [vmem:[#allocation9] ss:$0 sm:$0xff]  ;;  %v2643_v31 = vunpack.c.l.bf16 %v2642_v26  ;;  %v2647_v32 = vunpack.c.l.bf16 %v2646_v27  ;;  %v2644_v35 = vunpack.c.h.bf16 %v2642_v26  ;;  %v2648_v36 = vunpack.c.h.bf16 %v2646_v27  ;;  %s3432_s19 = smov 112   ;;  %p695_p6 = scmp.lt.s32.totalorder %s4375_s15, 1 }
 0x133   : > { %2711 = vmatprep.subr.bf16.mxu0 %v3000_v15  ;;  %s4383_s27 = sld [smem:[#allocation35_spill]]  ;;  %s3433_s14 = smov 48  }
 0x134   : > { %s3947_s11 = scalar_select %p695_p6, %s4375_s15, 1 }
 0x135   : > { %716 = vadd.xlane.f32.xlu0 %v715_v3  ;;  %v2541_v23 = vld [vmem:[%s4382_s26] ss:$0 sm:$0xff]  ;;  %s3434_s28 = smov 64   ;;  %s3435_s22 = smov 16  }
 0x136   : > { %2712 = vmatpush3.bf16.msra.mxu0 %v3000_v15  ;;  %s2639_s23 = sshll.u32 %s3947_s11, 4  ;;  %s4384_s25 = sld [smem:[#allocation36_spill]] }
 0x137   : > { %2717 = vmatprep.subr.bf16.mxu0 %v3428_v44  ;;  %s4385_s6 = sld [smem:[#allocation41_spill]]  ;;  %s4386_s18 = sld [smem:[#allocation42_spill]] }
 0x138   : > { %s4390_s29 = sld [smem:[#allocation44_spill]]  ;;  %s3437_s30 = smov [#allocation18]  }
 0x139   : > { %s697_s4 = scalar_lea.vmem %s4383_s27, %s3947_s11  ;;  %s3335_s26 = sshll.u32 %s3437_s30, 4  ;;  %s3336_s26 = int_to_ptr.vmem [resolvable:$false] %s3335_s26 }
 0x13a   : > { %v2547_v61 = vld [vmem:[%s697_s4] ss:$0 sm:$0xff] }
 0x13c   : > { %s702_s13 = scalar_lea.vmem %s4384_s25, %s2639_s23  ;;  %s2640_s23 = sshll.u32 %s4375_s15, 8 }
 0x13d   : > { %s4387_s16 = smov %s4386_s18 }
 0x13e   : > { %s4233_s3 = scalar_lea.hbm %s4390_s29, %s2640_s23 }
 0x1be   : > { %v714_v4 = vpop.xlane.xlu0 %713 }
 0x1bf   : > { %v719_v5 = vmul.f32 0.03125, %v714_v4 }
 0x1c1   : > { %v721_v6 = vsub.f32 %v3891_v0, %v719_v5 }
 0x1c2   : > { %v717_v7 = vpop.xlane.xlu0 %716 }
 0x1c3   : > { %v720_v8 = vmul.f32 0.03125, %v717_v7  ;;  %v723_v9 = vmul.f32 %v721_v6, %v721_v6 }
 0x1c5   : > { %v722_v10 = vsub.f32 %v3893_v1, %v720_v8  ;;  %v725_v11 = vsel %vm711_vm0, %v723_v9, 0.0 }
 0x1c6   : > { %726 = vadd.xlane.f32.xlu1 %v725_v11 }
 0x1c7   : > { %v724_v12 = vmul.f32 %v722_v10, %v722_v10 }
 0x1c9   : > { %v728_v13 = vsel %vm711_vm0, %v724_v12, 0.0 }
 0x1ca   : > { %729 = vadd.xlane.f32.xlu1 %v728_v13 }
 0x253   : > { %v727_v16 = vpop.xlane.xlu1 %726 }
 0x254   : > { %v731_v17 = vmul.f32 0.03125, %v727_v16 }
 0x256   : > { %v733_v18 = vadd.f32 1e-05, %v731_v17 }
 0x257   : > { %v730_v19 = vpop.xlane.xlu1 %729 }
 0x258   : > { %3029 = vrsqrt.f32 %v733_v18  ;;  %v732_v20 = vmul.f32 0.03125, %v730_v19 }
 0x25a   : > { %v734_v21 = vadd.f32 1e-05, %v732_v20 }
 0x25c   : > { %3031 = vrsqrt.f32 %v734_v21 }
 0x262   : > { %v3030_v22 = vpop.eup %3029 }
 0x263   : > { %v737_v24 = vmul.f32 %v3030_v22, %v721_v6 }
 0x265   : > { %v745_v25 = vmul.f32 %v2541_v23, %v737_v24 }
 0x266   : > { %v3032_v28 = vpop.eup %3031 }
 0x267   : > { %v738_v30 = vmul.f32 %v3032_v28, %v722_v10  ;;  %v753_v34 = vadd.f32 %v2542_v29, %v745_v25 }
 0x269   : > { %v746_v33 = vmul.f32 %v2541_v23, %v738_v30  ;;  %v759_v38 = vadd.f32 %v2643_v31, %v753_v34  ;;  %v766_v40 = vadd.f32 %v2647_v32, %v753_v34 }
 0x26b   : > { %v754_v37 = vadd.f32 %v2542_v29, %v746_v33 }
 0x26d   : > { %v760_v39 = vadd.f32 %v2644_v35, %v754_v37  ;;  %v767_v41 = vadd.f32 %v2648_v36, %v754_v37 }
 0x26f   : > { %v761_v42 = vpack.c.bf16 %v760_v39, %v759_v38  ;;  %v768_v43 = vpack.c.bf16 %v767_v41, %v766_v40 }
 0x271   : > { %2713 = vmatprep.mubr.msk.bf16.mxu0 %vm711_vm0, %v761_v42 }
 0x272   : > { %2714 = vmatmul.mubr.msk.bf16.vlgmr.msra.gmra.mrb[0].mxu0 %vm711_vm0, %v768_v43 }
 0x273   : > { %2719 = vmatprep.mubr.msk.bf16.mxu0 %vm3429_vm1, %v3428_v44 }
 0x345   : > { %v2715_v45 = vpop.f32.mrb[0].mxu0 }
 0x346   : > { %v825_v46 = vpop.f32.mrb[1].mxu0 }
 0x347   : > { %v2716_v47 = vpop.f32.mrb[2].mxu0 }
 0x348   : > { %v3916_v48 = vpack.c.bf16 %v2716_v47, %v2715_v45  ;;  %v828_v49 = vpop.f32.mrb[3].mxu0 }
 0x349   : > { %v3918_v50 = vpack.c.bf16 %v828_v49, %v825_v46 }
 0x34b   : > { %973 = vrot.lane.b32.xlu1 %v3918_v50, %s3430_s17  ;;  %849 = vrot.lane.b32.xlu0 %v3918_v50, %s3431_s10 }
 0x34f   : > { %971 = vrot.lane.b32.xlu1 %v3918_v50, %s3432_s19  ;;  %1223 = vrot.lane.b32.xlu0 %v3916_v48, %s3430_s17  ;;  %s3337_s17 = scalar_lea.vmem %s3336_s26, 512 }
 0x353   : > { %1100 = vrot.lane.b32.xlu1 %v3916_v48, %s3431_s10 }
 0x357   : > { %1221 = vrot.lane.b32.xlu1 %v3916_v48, %s3432_s19 }
 0x3bd   : > { %v974_v51 = vpop.permute.xlu1 %973  ;;  %v850_v52 = vpop.permute.xlu0 %849 }
 0x3be   : > { %v856_v53 = vsel %vm851_vm2, %v850_v52, 0  ;;  %v979_v54 = vsel %vm851_vm2, %v974_v51, 0 }
 0x3bf   : > { %2718 = vmatpush3.bf16.xpose.msra.mxu0 %v856_v53  ;;  %2730 = vmatpush3.bf16.xpose.msra.mxu1 %v979_v54 }
 0x3c0   : > { %2741 = vmatprep.subr.bf16.mxu1 %v3428_v44  ;;  %2723 = vmatprep.subr.bf16.mxu0 %v3428_v44 }
 0x3c1   : > { %v972_v55 = vpop.permute.xlu1 %971  ;;  %v1224_v58 = vpop.permute.xlu0 %1223 }
 0x3c2   : > { %v1229_v59 = vsel %vm851_vm2, %v1224_v58, 0 }
 0x3c5   : > { %v1101_v56 = vpop.permute.xlu1 %1100 }
 0x3c6   : > { %v1106_v57 = vsel %vm851_vm2, %v1101_v56, 0  ;;  %2720 = vmatmul.mubr.msk.bf16.vlgmr.msra.gmra.mrb[4].mxu0 %vm851_vm2, %v3918_v50  ;;  %2732 = vmatmul.mubr.msk.bf16.vlgmr.msra.gmra.mrb[0].mxu1 %vm851_vm2, %v972_v55 }
 0x3c7   : > { %2742 = vmatpush3.bf16.xpose.msra.mxu1 %v1106_v57  ;;  %2743 = vmatprep.mubr.msk.bf16.mxu1 %vm3429_vm1, %v3428_v44 }
 0x3c8   : > { %2753 = vmatprep.subr.bf16.mxu1 %v3428_v44  ;;  %2725 = vmatprep.mubr.msk.bf16.mxu0 %vm3429_vm1, %v3428_v44 }
 0x3c9   : > { %v1222_v60 = vpop.permute.xlu1 %1221 }
 0x3ce   : > { %2744 = vmatmul.mubr.msk.bf16.vlgmr.msra.gmra.mrb[4].mxu1 %vm851_vm2, %v3916_v48 }
 0x3cf   : > { %2754 = vmatpush3.bf16.xpose.msra.mxu1 %v1229_v59  ;;  %2755 = vmatprep.mubr.msk.bf16.mxu1 %vm3429_vm1, %v3428_v44 }
 0x3d6   : > { %2756 = vmatmul.mubr.msk.bf16.vlgmr.msra.gmra.mrb[8].mxu1 %vm851_vm2, %v1222_v60 }
 0x499   : > { %v892_v62 = vpop.f32.mrb[4].mxu0  ;;  %v1015_v63 = vpop.f32.mrb[0].mxu1 }
 0x49a   : > { %v893_v2 = vadd.f32 %v2547_v61, %v892_v62  ;;  %v2721_v3 = vpop.f32.mrb[5].mxu0  ;;  %v2733_v4 = vpop.f32.mrb[1].mxu1  ;;  %v1016_v7 = vadd.f32 %v2547_v61, %v1015_v63 }
 0x49b   : > { %v895_v5 = vpop.f32.mrb[6].mxu0  ;;  %v1018_v6 = vpop.f32.mrb[2].mxu1 }
 0x49c   : > { %v896_v8 = vadd.f32 %v2547_v61, %v895_v5  ;;  %v2722_v9 = vpop.f32.mrb[7].mxu0  ;;  %v2734_v10 = vpop.f32.mrb[3].mxu1  ;;  %v899_v11 = vsel %vm851_vm2, %v893_v2, -inf  ;;  %v1019_v13 = vadd.f32 %v2547_v61, %v1018_v6  ;;  %v1022_v14 = vsel %vm851_vm2, %v1016_v7, -inf }
 0x49d   : > { %900 = vmax.xlane.f32.xlu0 %v899_v11 }
 0x49e   : > { %v902_v12 = vsel %vm851_vm2, %v896_v8, -inf  ;;  %v1025_v21 = vsel %vm851_vm2, %v1019_v13, -inf }
 0x49f   : > { %903 = vmax.xlane.f32.xlu1 %v902_v12 }
 0x4a1   : > { %v1142_v15 = vpop.f32.mrb[4].mxu1  ;;  %1023 = vmax.xlane.f32.xlu0 %v1022_v14 }
 0x4a2   : > { %v2745_v16 = vpop.f32.mrb[5].mxu1  ;;  %v1143_v18 = vadd.f32 %v2547_v61, %v1142_v15 }
 0x4a3   : > { %v1145_v17 = vpop.f32.mrb[6].mxu1 }
 0x4a4   : > { %v1146_v19 = vadd.f32 %v2547_v61, %v1145_v17  ;;  %v2746_v20 = vpop.f32.mrb[7].mxu1  ;;  %v1149_v23 = vsel %vm851_vm2, %v1143_v18, -inf }
 0x4a5   : > { %1026 = vmax.xlane.f32.xlu0 %v1025_v21 }
 0x4a6   : > { %v1152_v22 = vsel %vm851_vm2, %v1146_v19, -inf }
 0x4a7   : > { %1153 = vmax.xlane.f32.xlu1 %v1152_v22 }
 0x4a9   : > { %1150 = vmax.xlane.f32.xlu0 %v1149_v23  ;;  %v1265_v24 = vpop.f32.mrb[8].mxu1 }
 0x4aa   : > { %v1266_v25 = vadd.f32 %v2547_v61, %v1265_v24  ;;  %v2757_v26 = vpop.f32.mrb[9].mxu1 }
 0x4ab   : > { %v1268_v27 = vpop.f32.mrb[10].mxu1 }
 0x4ac   : > { %v3959_v28 = vadd.f32 %v2547_v61, %v1268_v27  ;;  %v2758_v29 = vpop.f32.mrb[11].mxu1  ;;  %v1272_v30 = vsel %vm851_vm2, %v1266_v25, -inf }
 0x4ad   : > { %1273 = vmax.xlane.f32.xlu0 %v1272_v30 }
 0x4ae   : > { %v1275_v31 = vsel %vm851_vm2, %v3959_v28, -inf }
 0x4b8   : > { %1041 = vrot.lane.b32.xlu1 %v3918_v50, %s3433_s14 }
 0x4bc   : > { %1168 = vrot.lane.b32.xlu1 %v3916_v48, %s3434_s28 }
 0x4c3   : > { %918 = vrot.lane.b32.xlu0 %v3918_v50, %s3434_s28  ;;  %s4388_s28 = sld [smem:[#allocation43_spill]] }
 0x4e0   : > { %1276 = vmax.xlane.f32.xlu1 %v1275_v31 }
 0x4f1   : > { %1291 = vrot.lane.b32.xlu1 %v3916_v48, %s3433_s14 }
 0x52a   : > { %v901_v32 = vpop.xlane.xlu0 %900 }
 0x52b   : > { %v905_v34 = vsub.f32 %v893_v2, %v901_v32 }
 0x52c   : > { %v904_v33 = vpop.xlane.xlu1 %903 }
 0x52d   : > { %v906_v35 = vsub.f32 %v896_v8, %v904_v33  ;;  %v907_v39 = vmul.f32 1.442695, %v905_v34 }
 0x52e   : > { %v1024_v36 = vpop.xlane.xlu0 %1023 }
 0x52f   : > { %v909_v37 = vmul.f32 1.442695, %v906_v35  ;;  %v1028_v38 = vsub.f32 %v1016_v7, %v1024_v36 }
 0x531   : > { %v1030_v40 = vmul.f32 1.442695, %v1028_v38  ;;  %3033 = vpow2.f32 %v909_v37 }
 0x532   : > { %v1027_v41 = vpop.xlane.xlu0 %1026 }
 0x533   : > { %3035 = vpow2.f32 %v1030_v40  ;;  %v1029_v42 = vsub.f32 %v1019_v13, %v1027_v41 }
 0x534   : > { %v1154_v43 = vpop.xlane.xlu1 %1153  ;;  %3037 = vpow2.f32 %v907_v39 }
 0x535   : > { %v1032_v45 = vmul.f32 1.442695, %v1029_v42  ;;  %v1156_v46 = vsub.f32 %v1146_v19, %v1154_v43 }
 0x536   : > { %v1151_v47 = vpop.xlane.xlu0 %1150 }
 0x537   : > { %3039 = vpow2.f32 %v1032_v45  ;;  %v1159_v48 = vmul.f32 1.442695, %v1156_v46  ;;  %v1155_v50 = vsub.f32 %v1143_v18, %v1151_v47 }
 0x538   : > { %v1042_v61 = vpop.permute.xlu1 %1041 }
 0x539   : > { %3041 = vpow2.f32 %v1159_v48  ;;  %v1157_v58 = vmul.f32 1.442695, %v1155_v50 }
 0x53a   : > { %v1274_v49 = vpop.xlane.xlu0 %1273 }
 0x53b   : > { %v1278_v51 = vsub.f32 %v1266_v25, %v1274_v49  ;;  %v3034_v52 = vpop.eup %3033 }
 0x53c   : > { %v914_v63 = vsel %vm851_vm2, %v3034_v52, 0.0  ;;  %v1169_v5 = vpop.permute.xlu1 %1168 }
 0x53d   : > { %v3036_v53 = vpop.eup %3035  ;;  %v1280_v54 = vmul.f32 1.442695, %v1278_v51 }
 0x53e   : > { %v919_v55 = vpop.permute.xlu0 %918  ;;  %v1034_v56 = vsel %vm851_vm2, %v3036_v53, 0.0  ;;  %v3038_v57 = vpop.eup %3037 }
 0x53f   : > { %3043 = vpow2.f32 %v1280_v54  ;;  %1035 = vadd.xlane.f32.xlu0 %v1034_v56  ;;  %2724 = vmatpush3.bf16.msra.mxu0 %v919_v55  ;;  %v917_v59 = vpack.c.bf16 %v3034_v52, %v3038_v57  ;;  %v911_v17 = vsel %vm851_vm2, %v3038_v57, 0.0  ;;  %v3001_v55 = vld [vmem:[#allocation12] sm:$0xff]   ;;  %v3002_v56 = vld [vmem:[#allocation12 + $0x8] sm:$0xff]  }
 0x540   : > { %2735 = vmatprep.subr.bf16.mxu0 %v3428_v44  ;;  %3045 = vpow2.f32 %v1157_v58  ;;  %2765 = vmatprep.subr.bf16.mxu1 %v3001_v55 }
 0x541   : > { %v3040_v60 = vpop.eup %3039  ;;  %2766 = vmatpush3.bf16.msra.mxu1 %v3001_v55 }
 0x542   : > { %2726 = vmatmul.mubr.msk.bf16.vlgmr.msra.gmra.mrb[8].mxu0 %vm851_vm2, %v917_v59  ;;  %v1037_v62 = vsel %vm851_vm2, %v3040_v60, 0.0  ;;  %v1040_v3 = vpack.c.bf16 %v3040_v60, %v3036_v53  ;;  %2767 = vmatprep.subr.bf16.mxu1 %v3002_v56 }
 0x543   : > { %1038 = vadd.xlane.f32.xlu1 %v1037_v62  ;;  %2736 = vmatpush3.bf16.msra.mxu0 %v1042_v61  ;;  %v3042_v2 = vpop.eup %3041 }
 0x544   : > { %2737 = vmatprep.mubr.msk.bf16.mxu0 %vm3429_vm1, %v3428_v44  ;;  %2747 = vmatprep.subr.bf16.mxu0 %v3428_v44  ;;  %v1164_v6 = vsel %vm851_vm2, %v3042_v2, 0.0 }
 0x545   : > { %2768 = vmatpush3.bf16.msra.mxu1 %v3002_v56 }
 0x546   : > { %2781 = vmatprep.subr.bf16.mxu1 %v3428_v44 }
 0x547   : > { %915 = vadd.xlane.f32.xlu1 %v914_v63 }
 0x549   : > { %v3044_v4 = vpop.eup %3043 }
 0x54a   : > { %2738 = vmatmul.mubr.msk.bf16.vlgmr.msra.gmra.mrb[12].mxu0 %vm851_vm2, %v1040_v3  ;;  %v1284_v7 = vsel %vm851_vm2, %v3044_v4, 0.0  ;;  %v3046_v8 = vpop.eup %3045  ;;  %v3436_v3 = vmov 0  }
 0x54b   : > { %2748 = vmatpush3.bf16.msra.mxu0 %v1169_v5  ;;  %1165 = vadd.xlane.f32.xlu1 %v1164_v6  ;;  %v1167_v9 = vpack.c.bf16 %v3042_v2, %v3046_v8  ;;  %v1161_v18 = vsel %vm851_vm2, %v3046_v8, 0.0  ;;  %v707_v5 = vld [vmem:[%s702_s13] sm:$0xff]  ;;  %v708_v6 = vld [vmem:[%s702_s13 + $0x8] sm:$0xff] }
 0x54c   : > { %1285 = vadd.xlane.f32.xlu0 %v1284_v7  ;;  %2749 = vmatprep.mubr.msk.bf16.mxu0 %vm3429_vm1, %v3428_v44 }
 0x54d   : > { %2759 = vmatprep.subr.bf16.mxu0 %v3428_v44  ;;  %2997 = vset.pattern.permute.xlu1 %v3436_v3 }
 0x54e   : > { %2998 = vset.pattern.permute.xlu0 %v3436_v3 }
 0x552   : > { %2750 = vmatmul.mubr.msk.bf16.vlgmr.msra.gmra.mrb[16].mxu0 %vm851_vm2, %v1167_v9 }
 0x553   : > { %2761 = vmatprep.mubr.msk.bf16.mxu0 %vm3429_vm1, %v3428_v44 }
 0x56d   : > { %v1277_v10 = vpop.xlane.xlu1 %1276 }
 0x56e   : > { %v1279_v11 = vsub.f32 %v3959_v28, %v1277_v10 }
 0x570   : > { %v1282_v12 = vmul.f32 1.442695, %v1279_v11 }
 0x571   : > { %v1292_v13 = vpop.permute.xlu1 %1291 }
 0x572   : > { %3047 = vpow2.f32 %v1282_v12  ;;  %2760 = vmatpush3.bf16.msra.mxu0 %v1292_v13 }
 0x573   : > { %2773 = vmatprep.subr.bf16.mxu0 %v3428_v44 }
 0x57c   : > { %v3048_v14 = vpop.eup %3047 }
 0x57d   : > { %v1287_v15 = vsel %vm851_vm2, %v3048_v14, 0.0  ;;  %v1290_v16 = vpack.c.bf16 %v3048_v14, %v3044_v4 }
 0x57e   : > { %1288 = vadd.xlane.f32.xlu0 %v1287_v15 }
 0x57f   : > { %2762 = vmatmul.mubr.msk.bf16.vlgmr.msra.gmra.mrb[20].mxu0 %vm851_vm2, %v1290_v16 }
 0x580   : > { %2777 = vmatprep.mubr.msk.bf16.mxu0 %vm3429_vm1, %v3428_v44 }
 0x582   : > { %912 = vadd.xlane.f32.xlu0 %v911_v17 }
 0x586   : > { %1162 = vadd.xlane.f32.xlu0 %v1161_v18 }
 0x5cc   : > { %v1036_v19 = vpop.xlane.xlu0 %1035 }
 0x5d0   : > { %v1039_v20 = vpop.xlane.xlu1 %1038 }
 0x5d4   : > { %v916_v23 = vpop.xlane.xlu1 %915 }
 0x5d5   : > { %3049 = vrcp.f32 %v916_v23 }
 0x5d8   : > { %v1166_v30 = vpop.xlane.xlu1 %1165 }
 0x5d9   : > { %v1286_v21 = vpop.xlane.xlu0 %1285 }
 0x5df   : > { %v3050_v29 = vpop.eup %3049 }
 0x60b   : > { %v1289_v22 = vpop.xlane.xlu0 %1288 }
 0x60f   : > { %v913_v24 = vpop.xlane.xlu0 %912 }
 0x610   : > { %3051 = vrcp.f32 %v913_v24 }
 0x611   : > { %3053 = vrcp.f32 %v1036_v19 }
 0x612   : > { %3055 = vrcp.f32 %v1039_v20 }
 0x613   : > { %v1163_v32 = vpop.xlane.xlu0 %1162  ;;  %3057 = vrcp.f32 %v1166_v30 }
 0x614   : > { %3059 = vrcp.f32 %v1163_v32 }
 0x615   : > { %v958_v25 = vpop.f32.mrb[8].mxu0  ;;  %3061 = vrcp.f32 %v1286_v21 }
 0x616   : > { %v2727_v26 = vpop.f32.mrb[9].mxu0  ;;  %3063 = vrcp.f32 %v1289_v22 }
 0x617   : > { %v961_v27 = vpop.f32.mrb[10].mxu0 }
 0x618   : > { %v2728_v28 = vpop.f32.mrb[11].mxu0  ;;  %v968_v34 = vmul.f32 %v3050_v29, %v961_v27 }
 0x61a   : > { %v3052_v31 = vpop.eup %3051 }
 0x61b   : > { %v967_v33 = vmul.f32 %v3052_v31, %v958_v25  ;;  %v3054_v37 = vpop.eup %3053 }
 0x61c   : > { %v3056_v39 = vpop.eup %3055 }
 0x61d   : > { %v969_v35 = vpack.c.bf16 %v968_v34, %v967_v33  ;;  %v1081_v36 = vpop.f32.mrb[12].mxu0  ;;  %v3058_v47 = vpop.eup %3057  ;;  %v3003_v33 = vld [vmem:[%s4385_s6 + $0x10] sm:$0xff]   ;;  %v3004_v34 = vld [vmem:[%s4385_s6] sm:$0xff]  }
 0x61e   : > { %v2739_v38 = vpop.f32.mrb[13].mxu0  ;;  %v1090_v41 = vmul.f32 %v3054_v37, %v1081_v36  ;;  %v3060_v49 = vpop.eup %3059  ;;  %2774 = vmatpush3.bf16.msra.mxu0 %v3003_v33  ;;  %v3006_v36 = vld [vmem:[%s4385_s6 + $0x8] sm:$0xff]  }
 0x61f   : > { %970 = vst.msk [vmem:[#allocation2] sm:$0xff] %vm851_vm2, %v969_v35  ;;  %v1084_v40 = vpop.f32.mrb[14].mxu0  ;;  %v3062_v57 = vpop.eup %3061  ;;  %v3005_v35 = vld [vmem:[%s4385_s6 + $0x18] sm:$0xff]   ;;  %2775 = vmatprep.subr.bf16.mxu0 %v3428_v44 }
 0x620   : > { %v1091_v42 = vmul.f32 %v3056_v39, %v1084_v40  ;;  %v2740_v43 = vpop.f32.mrb[15].mxu0  ;;  %v3064_v61 = vpop.eup %3063 }
 0x622   : > { %v1092_v45 = vpack.c.bf16 %v1091_v42, %v1090_v41  ;;  %2776 = vmatpush3.bf16.msra.mxu0 %v3005_v35 }
 0x623   : > { %2789 = vmatprep.subr.bf16.mxu0 %v3428_v44 }
 0x624   : > { %1094 = vrot.lane.b32.xlu0 %v1092_v45, %s3435_s22  ;;  %v2560_v45 = vld [vmem:[#allocation14] ss:$0 sm:$0xff] }
 0x625   : > { %v1208_v46 = vpop.f32.mrb[16].mxu0 }
 0x626   : > { %v2751_v48 = vpop.f32.mrb[17].mxu0  ;;  %v1217_v51 = vmul.f32 %v3060_v49, %v1208_v46 }
 0x627   : > { %v1211_v50 = vpop.f32.mrb[18].mxu0 }
 0x628   : > { %v1218_v52 = vmul.f32 %v3058_v47, %v1211_v50  ;;  %v2752_v53 = vpop.f32.mrb[19].mxu0  ;;  %v1481_v47 = vlaneseq  ;;  %v2561_v50 = vld [vmem:[#allocation15] ss:$0 sm:$0xff] }
 0x62a   : > { %v1219_v54 = vpack.c.bf16 %v1218_v52, %v1217_v51  ;;  %v4042_v52 = vshrl.u32 %v1481_v47, 7 }
 0x62c   : > { %1220 = vst.msk [vmem:[#allocation2 + $0x8] sm:$0xff] %vm851_vm2, %v1219_v54  ;;  %vm1504_vm4 = vcmp.lt.s32.totalorder %v4042_v52, 3  ;;  %vm1507_vm5 = vcmp.ge.s32.totalorder %v4042_v52, 3  ;;  %vm1486_vm6 = vcmp.lt.s32.totalorder %v4042_v52, 4  ;;  %vm1489_vm7 = vcmp.ge.s32.totalorder %v4042_v52, 4 }
 0x62d   : > { %vm1635_vm8 = vcmp.lt.s32.totalorder %v4042_v52, 2  ;;  %vm1712_vm9 = vcmp.lt.s32.totalorder %v4042_v52, 1  ;;  %vm1638_vm10 = vcmp.ge.s32.totalorder %v4042_v52, 2  ;;  %vm1715_vm11 = vcmp.ge.s32.totalorder %v4042_v52, 1 }
 0x62e   : > { %vm1853_vm12 = vcmp.lt.s32.totalorder %v4042_v52, 7  ;;  %vm1930_vm14 = vcmp.lt.s32.totalorder %v4042_v52, 6  ;;  %vm2007_vm15 = vcmp.lt.s32.totalorder %v4042_v52, 5 }
 0x652   : > { %v1331_v58 = vpop.f32.mrb[20].mxu0 }
 0x653   : > { %v1340_v59 = vmul.f32 %v3062_v57, %v1331_v58  ;;  %v2763_v60 = vpop.f32.mrb[21].mxu0 }
 0x654   : > { %v1334_v62 = vpop.f32.mrb[22].mxu0 }
 0x655   : > { %v1341_v63 = vmul.f32 %v3064_v61, %v1334_v62  ;;  %v2764_v2 = vpop.f32.mrb[23].mxu0 }
 0x657   : > { %v1342_v4 = vpack.c.bf16 %v1341_v63, %v1340_v59 }
 0x659   : > { %1344 = vrot.lane.b32.xlu1 %v1342_v4, %s3435_s22  ;;  %s4389_s22 = sld [smem:[#allocation32_spill]] }
 0x65d   : > { %1427 = vperm.xlu1 %2997, %v707_v5  }
 0x65f   : > { %p4391_p8 = scmp.ne.s32.totalorder %s4389_s22, 0 }
 0x661   : > { %1432 = vperm.xlu1 %2997, %v708_v6   ;;  %v3007_v6 = vld [vmem:[%s4385_s6 + $0x20] sm:$0xff]  }
 0x696   : > { %v1095_v7 = vpop.permute.xlu0 %1094 }
 0x697   : > { %1098 = vst.msk [vmem:[#allocation2] sm:$0xff] %vm1097_vm3, %v1095_v7  ;;  %v3008_v7 = vld [vmem:[%s4385_s6 + $0x30] sm:$0xff]  }
 0x69e   : > { %v1348_v8 = vld [vmem:[#allocation2] sm:$0xff] }
 0x69f   : > { %2769 = vmatprep.mubr.msk.bf16.mxu1 %vm711_vm0, %v1348_v8 }
 0x6cb   : > { %v1345_v9 = vpop.permute.xlu1 %1344 }
 0x6cc   : > { %1347 = vst.msk [vmem:[#allocation2 + $0x8] sm:$0xff] %vm1097_vm3, %v1345_v9 }
 0x6d3   : > { %v1349_v10 = vld [vmem:[#allocation2 + $0x8] sm:$0xff] }
 0x6d4   : > { %2770 = vmatmul.mubr.msk.bf16.vlgmr.msra.gmra.mrb[12].mxu1 %vm711_vm0, %v1349_v10 }
 0x6d5   : > { %2785 = vmatprep.mubr.msk.bf16.mxu1 %vm3429_vm1, %v3428_v44  ;;  %2782 = vmatpush3.bf16.msra.mxu1 %v3004_v34 }
 0x6d6   : > { %2783 = vmatprep.subr.bf16.mxu1 %v3428_v44 }
 0x6d9   : > { %2784 = vmatpush3.bf16.msra.mxu1 %v3006_v36  ;;  %v3015_v36 = vld [vmem:[%s4385_s6 + $0x60] sm:$0xff]  }
 0x6da   : > { %2797 = vmatprep.subr.bf16.mxu1 %v3428_v44 }
 0x6dc   : > { %v4006_v13 = vpop.permute.xlu1 %1427 }
 0x6e0   : > { %v4013_v21 = vpop.permute.xlu1 %1432 }
 0x7a7   : > { %v2771_v11 = vpop.f32.mrb[12].mxu1 }
 0x7a8   : > { %v1406_v12 = vpop.f32.mrb[13].mxu1 }
 0x7a9   : > { %v1421_v14 = vadd.f32 %v1406_v12, %v3891_v0  ;;  %v2772_v15 = vpop.f32.mrb[14].mxu1 }
 0x7aa   : > { %v1409_v16 = vpop.f32.mrb[15].mxu1 }
 0x7ab   : > { %v1423_v17 = vadd.f32 %v2771_v11, %v1421_v14  ;;  %v1422_v18 = vadd.f32 %v1409_v16, %v3893_v1  ;;  %v3010_v16 = vld [vmem:[%s4385_s6 + $0x38] sm:$0xff]  }
 0x7ad   : > { %v4011_v19 = vmul.f32 %v4006_v13, %v1423_v17  ;;  %v1424_v20 = vadd.f32 %v2772_v15, %v1422_v18  ;;  %v3009_v15 = vld [vmem:[%s4385_s6 + $0x28] sm:$0xff]  }
 0x7af   : > { %v4016_v22 = vmul.f32 %v4013_v21, %v1424_v20  ;;  %v1439_v23 = vsel %vm711_vm0, %v4011_v19, 0.0 }
 0x7b0   : > { %1440 = vadd.xlane.f32.xlu0 %v1439_v23 }
 0x7b1   : > { %v1442_v0 = vsel %vm711_vm0, %v4016_v22, 0.0 }
 0x7b2   : > { %1443 = vadd.xlane.f32.xlu1 %v1442_v0  ;;  %v4099_v0 = vadd.s32 8, %v4042_v52  ;;  %v3020_v52 = vld [vmem:[%s4385_s6 + $0x88] sm:$0xff]  }
 0x7b4   : > { %vm1857_vm13 = vcmp.lt.s32.totalorder %v4099_v0, 15  ;;  %vm1934_vm2 = vcmp.lt.s32.totalorder %v4099_v0, 14  ;;  %vm2011_vm3 = vcmp.lt.s32.totalorder %v4099_v0, 13 }
 0x83d   : > { %v1441_v24 = vpop.xlane.xlu0 %1440 }
 0x83e   : > { %v1445_v25 = vmul.f32 0.03125, %v1441_v24 }
 0x83f   : > { %v1444_v1 = vpop.xlane.xlu1 %1443 }
 0x840   : > { %v1447_v26 = vsub.f32 %v4011_v19, %v1445_v25  ;;  %v1446_v27 = vmul.f32 0.03125, %v1444_v1  ;;  %v3011_v25 = vld [vmem:[%s4385_s6 + $0x40] sm:$0xff]   ;;  %v3012_v1 = vld [vmem:[%s4385_s6 + $0x50] sm:$0xff]  }
 0x842   : > { %v1448_v28 = vsub.f32 %v4016_v22, %v1446_v27  ;;  %v1449_v29 = vmul.f32 %v1447_v26, %v1447_v26 }
 0x844   : > { %v1451_v30 = vsel %vm711_vm0, %v1449_v29, 0.0  ;;  %v1450_v31 = vmul.f32 %v1448_v28, %v1448_v28 }
 0x845   : > { %1452 = vadd.xlane.f32.xlu0 %v1451_v30  ;;  %v3013_v30 = vld [vmem:[%s4385_s6 + $0x48] sm:$0xff]  }
 0x846   : > { %v1454_v32 = vsel %vm711_vm0, %v1450_v31, 0.0  ;;  %v3014_v31 = vld [vmem:[%s4385_s6 + $0x58] sm:$0xff]  }
 0x849   : > { %1455 = vadd.xlane.f32.xlu0 %v1454_v32 }
 0x8d2   : > { %v1453_v37 = vpop.xlane.xlu0 %1452 }
 0x8d3   : > { %v1457_v38 = vmul.f32 0.03125, %v1453_v37  ;;  %v3016_v37 = vld [vmem:[%s4385_s6 + $0x70] sm:$0xff]  }
 0x8d5   : > { %v1459_v39 = vadd.f32 1e-05, %v1457_v38 }
 0x8d6   : > { %v1456_v40 = vpop.xlane.xlu0 %1455 }
 0x8d7   : > { %3065 = vrsqrt.f32 %v1459_v39  ;;  %v1458_v41 = vmul.f32 0.03125, %v1456_v40 }
 0x8d9   : > { %v1460_v42 = vadd.f32 1e-05, %v1458_v41 }
 0x8db   : > { %3067 = vrsqrt.f32 %v1460_v42 }
 0x8e1   : > { %v3066_v43 = vpop.eup %3065 }
 0x8e2   : > { %v1463_v46 = vmul.f32 %v3066_v43, %v1447_v26 }
 0x8e4   : > { %v1471_v48 = vmul.f32 %v2560_v45, %v1463_v46  ;;  %v3018_v46 = vld [vmem:[%s4385_s6 + $0x78] sm:$0xff]  }
 0x8e5   : > { %v3068_v49 = vpop.eup %3067 }
 0x8e6   : > { %v1464_v51 = vmul.f32 %v3068_v49, %v1448_v28  ;;  %v4044_v53 = vadd.f32 %v2561_v50, %v1471_v48 }
 0x8e8   : > { %v1472_v54 = vmul.f32 %v2560_v45, %v1464_v51  ;;  %v1502_v56 = vrot.slane %v4044_v53, 5  ;;  %v1484_v58 = vrot.slane %v4044_v53, 4  ;;  %v1633_v10 = vrot.slane %v4044_v53, 6  ;;  %v3017_v45 = vld [vmem:[%s4385_s6 + $0x68] sm:$0xff]   ;;  %v3019_v51 = vld [vmem:[%s4385_s6 + $0x80] sm:$0xff]  }
 0x8e9   : > { %v1710_v11 = vrot.slane %v4044_v53, 7  ;;  %v1851_v28 = vrot.slane %v4044_v53, 1  ;;  %v1928_v40 = vrot.slane %v4044_v53, 2  ;;  %v2005_v41 = vrot.slane %v4044_v53, 3 }
 0x8ea   : > { %v4046_v55 = vadd.f32 %v2561_v50, %v1472_v54 }
 0x8ec   : > { %v1503_v57 = vrot.slane %v4046_v55, 5  ;;  %v1485_v59 = vrot.slane %v4046_v55, 4  ;;  %v1634_v60 = vrot.slane %v4046_v55, 6  ;;  %v1711_v61 = vrot.slane %v4046_v55, 7 }
 0x8ed   : > { %v1852_v24 = vrot.slane %v4046_v55, 1  ;;  %v1929_v34 = vrot.slane %v4046_v55, 2  ;;  %v2006_v35 = vrot.slane %v4046_v55, 3  ;;  %v1787_v38 = vpack.c.bf16 %v4046_v55, %v4044_v53 }
 0x8ee   : > { %v1505_v62 = vsel %vm1504_vm4, %v1502_v56, %v1503_v57  ;;  %v1506_v63 = vsel %vm1504_vm4, %v1503_v57, %v1502_v56  ;;  %v4058_v2 = vsel %vm1486_vm6, %v1484_v58, %v1485_v59  ;;  %v4060_v3 = vsel %vm1486_vm6, %v1485_v59, %v1484_v58  ;;  %v3021_v57 = vld [vmem:[%s4386_s18] sm:$0xff]   ;;  %v3022_v58 = vld [vmem:[%s4387_s16 + $0x8] sm:$0xff]   ;;  %v3023_v59 = vld [vmem:[%s4387_s16 + $0x10] sm:$0xff]   ;;  %s694_s18 = scalar_lea.vmem [#allocation18], %s2529_s8  ;;  %s2303_s8 = scalar_lea.sflag [#allocation5], %s3859_s24 }
 0x8ef   : > { %v1513_v4 = vsel %vm1507_vm5, %v1506_v63, 0.0  ;;  %v1495_v5 = vsel %vm1489_vm7, %v4060_v3, 0.0  ;;  %v1637_v12 = vsel %vm1635_vm8, %v1634_v60, %v1633_v10  ;;  %v1714_v14 = vsel %vm1712_vm9, %v1711_v61, %v1710_v11  ;;  %v3027_v63 = vld [vmem:[%s4387_s16 + $0x30] sm:$0xff]   ;;  %s2316_s25 = sshll.u32 %s694_s18, 4  ;;  %s4235_s25 = int_to_ptr.vmem [resolvable:$true] %s2316_s25 }
 0x8f0   : > { %v1515_v8 = vpack.c.bf16 %v1505_v62, %v1513_v4  ;;  %v1497_v9 = vpack.c.bf16 %v4058_v2, %v1495_v5  ;;  %v1636_v17 = vsel %vm1635_vm8, %v1633_v10, %v1634_v60  ;;  %v1644_v18 = vsel %vm1638_vm10, %v1637_v12, 0.0  ;;  %v3024_v60 = vld [vmem:[%s4387_s16 + $0x18] sm:$0xff]   ;;  %v3026_v62 = vld [vmem:[%s4387_s16 + $0x28] sm:$0xff]   ;;  %s3331_s15 = scalar_lea.vmem %s4235_s25, 256  ;;  %p3338_p4 = scmp.lt.s32.totalorder %s4235_s25, %s3336_s26 }
 0x8f1   : > { %v1713_v20 = vsel %vm1712_vm9, %v1710_v11, %v1711_v61  ;;  %v1721_v23 = vsel %vm1715_vm11, %v1714_v14, 0.0  ;;  %v1646_v26 = vpack.c.bf16 %v1636_v17, %v1644_v18  ;;  %v1855_v29 = vsel %vm1853_vm12, %v1852_v24, %v1851_v28  ;;  %v3025_v61 = vld [vmem:[%s4387_s16 + $0x20] sm:$0xff]   ;;  %p3332_p0 = scmp.ne.s32.totalorder %s4235_s25, %s3331_s15  ;;  %p3339_p2 = scmp.lt.s32.totalorder %s3337_s17, %s3331_s15 }
 0x8f2   : > { %2778 = vmatmul.mubr.msk.bf16.vlgmr.msra.gmra.mrb[24].mxu0 %vm711_vm0, %v1515_v8  ;;  %2786 = vmatmul.mubr.msk.bf16.vlgmr.msra.gmra.mrb[16].mxu1 %vm711_vm0, %v1497_v9  ;;  %v1723_v27 = vpack.c.bf16 %v1713_v20, %v1721_v23  ;;  %v1854_v32 = vsel %vm1853_vm12, %v1851_v28, %v1852_v24  ;;  %v1863_v33 = vsel %vm1857_vm13, %v1855_v29, 0.0  ;;  %v1932_v42 = vsel %vm1930_vm14, %v1929_v34, %v1928_v40 }
 0x8f3   : > { %2790 = vmatpush3.bf16.msra.mxu0 %v3007_v6  ;;  %2798 = vmatpush3.bf16.msra.mxu1 %v3008_v7  ;;  %v1864_v39 = vpack.c.bf16 %v1863_v33, %v1854_v32  ;;  %v2009_v43 = vsel %vm2007_vm15, %v2006_v35, %v2005_v41  ;;  %v1931_v47 = vsel %vm1930_vm14, %v1928_v40, %v1929_v34  ;;  %v1940_v48 = vsel %vm1934_vm2, %v1932_v42, 0.0  ;;  %p3333_p10 = pnand %p3332_p0, %p4391_p8  ;;  %p3340_p11 = por %p3339_p2, %p3338_p4 }
 0x8f4   : > { %2791 = vmatprep.subr.bf16.mxu0 %v3428_v44  ;;  %2799 = vmatprep.subr.bf16.mxu1 %v3428_v44  ;;  %v2008_v49 = vsel %vm2007_vm15, %v2005_v41, %v2006_v35  ;;  %v2017_v50 = vsel %vm2011_vm3, %v2009_v43, 0.0  ;;  %v1941_v53 = vpack.c.bf16 %v1940_v48, %v1931_v47  ;;  %vm2083_vm4 = vcmp.lt.s32.totalorder %v4099_v0, 12 }
 0x8f5   : > { %2793 = vmatprep.mubr.msk.bf16.mxu0 %vm3429_vm1, %v3428_v44  ;;  %2801 = vmatprep.mubr.msk.bf16.mxu1 %vm3429_vm1, %v3428_v44  ;;  %v2018_v54 = vpack.c.bf16 %v2017_v50, %v2008_v49  ;;  %v2089_v55 = vsel %vm2083_vm4, %v4060_v3, 0.0  ;;  %p3334_p7 = pneg %p3333_p10 }
 0x8f6   : > { %v2090_v56 = vpack.c.bf16 %v2089_v55, %v4058_v2  ;;  %v3028_v2 = vld [vmem:[%s4387_s16 + $0x38] sm:$0xff]  }
 0x8f7   : > { %2792 = vmatpush3.bf16.msra.mxu0 %v3009_v15  ;;  %2800 = vmatpush3.bf16.msra.mxu1 %v3010_v16  ;;  %p3341_p1 = pnand %p3340_p11, %p3334_p7 }
 0x8f8   : > { %2805 = vmatprep.subr.bf16.mxu0 %v3428_v44  ;;  %2813 = vmatprep.subr.bf16.mxu1 %v3428_v44 }
 0x8fa   : > { %2794 = vmatmul.mubr.msk.bf16.vlgmr.msra.gmra.mrb[28].mxu0 %vm711_vm0, %v1646_v26  ;;  %2802 = vmatmul.mubr.msk.bf16.vlgmr.msra.gmra.mrb[20].mxu1 %vm711_vm0, %v1723_v27 }
 0x8fb   : > { %2806 = vmatpush3.bf16.msra.mxu0 %v3011_v25  ;;  %2814 = vmatpush3.bf16.msra.mxu1 %v3012_v1 }
 0x8fc   : > { %2807 = vmatprep.subr.bf16.mxu0 %v3428_v44  ;;  %2815 = vmatprep.subr.bf16.mxu1 %v3428_v44 }
 0x8fd   : > { %2809 = vmatprep.mubr.msk.bf16.mxu0 %vm3429_vm1, %v3428_v44  ;;  %2817 = vmatprep.mubr.msk.bf16.mxu1 %vm3429_vm1, %v3428_v44 }
 0x8ff   : > { %2808 = vmatpush3.bf16.msra.mxu0 %v3013_v30  ;;  %2816 = vmatpush3.bf16.msra.mxu1 %v3014_v31 }
 0x900   : > { %2821 = vmatprep.subr.bf16.mxu0 %v3428_v44  ;;  %2829 = vmatprep.subr.bf16.mxu1 %v3428_v44 }
 0x902   : > { %2810 = vmatmul.mubr.msk.bf16.vlgmr.msra.gmra.mrb[32].mxu0 %vm711_vm0, %v1787_v38  ;;  %2818 = vmatmul.mubr.msk.bf16.vlgmr.msra.gmra.mrb[24].mxu1 %vm711_vm0, %v1864_v39 }
 0x903   : > { %2822 = vmatpush3.bf16.msra.mxu0 %v3015_v36  ;;  %2830 = vmatpush3.bf16.msra.mxu1 %v3016_v37 }
 0x904   : > { %2823 = vmatprep.subr.bf16.mxu0 %v3428_v44  ;;  %2831 = vmatprep.subr.bf16.mxu1 %v3428_v44 }
 0x905   : > { %2825 = vmatprep.mubr.msk.bf16.mxu0 %vm3429_vm1, %v3428_v44  ;;  %2833 = vmatprep.mubr.msk.bf16.mxu1 %vm3429_vm1, %v3428_v44 }
 0x907   : > { %2824 = vmatpush3.bf16.msra.mxu0 %v3017_v45  ;;  %2832 = vmatpush3.bf16.msra.mxu1 %v3018_v46 }
 0x908   : > { %2837 = vmatprep.subr.bf16.mxu0 %v3428_v44  ;;  %2845 = vmatprep.subr.bf16.mxu1 %v3428_v44 }
 0x90a   : > { %2826 = vmatmul.mubr.msk.bf16.vlgmr.msra.gmra.mrb[36].mxu0 %vm711_vm0, %v1941_v53  ;;  %2834 = vmatmul.mubr.msk.bf16.vlgmr.msra.gmra.mrb[28].mxu1 %vm711_vm0, %v2018_v54  ;;  %v2621_v53 = vld [vmem:[#allocation17] ss:$0 sm:$0xff] }
 0x90b   : > { %2838 = vmatpush3.bf16.msra.mxu0 %v3019_v51  ;;  %2841 = vmatprep.mubr.msk.bf16.mxu0 %vm3429_vm1, %v3428_v44 }
 0x90c   : > { %2839 = vmatprep.subr.bf16.mxu0 %v3428_v44  ;;  %2861 = vmatprep.mubr.msk.bf16.mxu1 %vm3429_vm1, %v3428_v44 }
 0x90d   : > { %2846 = vmatpush3.bf16.msra.mxu1 %v3021_v57 }
 0x90e   : > { %2847 = vmatprep.subr.bf16.mxu1 %v3428_v44 }
 0x90f   : > { %2840 = vmatpush3.bf16.msra.mxu0 %v3020_v52 }
 0x911   : > { %2848 = vmatpush3.bf16.msra.mxu1 %v3022_v58 }
 0x912   : > { %2842 = vmatmul.mubr.msk.bf16.vlgmr.msra.gmra.mrb[40].mxu0 %vm711_vm0, %v2090_v56  ;;  %2849 = vmatprep.subr.bf16.mxu1 %v3428_v44 }
 0x915   : > { %2850 = vmatpush3.bf16.msra.mxu1 %v3023_v59 }
 0x916   : > { %2851 = vmatprep.subr.bf16.mxu1 %v3428_v44 }
 0x919   : > { %2852 = vmatpush3.bf16.msra.mxu1 %v3024_v60 }
 0x91a   : > { %2853 = vmatprep.subr.bf16.mxu1 %v3428_v44 }
 0x91d   : > { %2854 = vmatpush3.bf16.msra.mxu1 %v3025_v61 }
 0x91e   : > { %2855 = vmatprep.subr.bf16.mxu1 %v3428_v44 }
 0x921   : > { %2856 = vmatpush3.bf16.msra.mxu1 %v3026_v62 }
 0x922   : > { %2857 = vmatprep.subr.bf16.mxu1 %v3428_v44 }
 0x925   : > { %2858 = vmatpush3.bf16.msra.mxu1 %v3027_v63 }
 0x926   : > { %2859 = vmatprep.subr.bf16.mxu1 %v3428_v44 }
 0x929   : > { %2860 = vmatpush3.bf16.msra.mxu1 %v3028_v2 }
 0x9c5   : > { %v1570_v3 = vpop.f32.mrb[24].mxu0  ;;  %v1626_v4 = vpop.f32.mrb[16].mxu1 }
 0x9c6   : > { %v1627_v5 = vadd.f32 %v1626_v4, %v1570_v3  ;;  %v2779_v6 = vpop.f32.mrb[25].mxu0  ;;  %v2787_v7 = vpop.f32.mrb[17].mxu1 }
 0x9c7   : > { %v1573_v8 = vpop.f32.mrb[26].mxu0  ;;  %v1629_v9 = vpop.f32.mrb[18].mxu1 }
 0x9c8   : > { %v1630_v10 = vadd.f32 %v1629_v9, %v1573_v8  ;;  %v2780_v11 = vpop.f32.mrb[27].mxu0  ;;  %v2788_v12 = vpop.f32.mrb[19].mxu1 }
 0x9cd   : > { %v1701_v14 = vpop.f32.mrb[28].mxu0  ;;  %v1778_v15 = vpop.f32.mrb[20].mxu1 }
 0x9ce   : > { %v1708_v16 = vadd.f32 %v1701_v14, %v1627_v5  ;;  %v2795_v17 = vpop.f32.mrb[29].mxu0  ;;  %v2803_v18 = vpop.f32.mrb[21].mxu1 }
 0x9cf   : > { %v1704_v20 = vpop.f32.mrb[30].mxu0  ;;  %v1781_v23 = vpop.f32.mrb[22].mxu1 }
 0x9d0   : > { %v1785_v0 = vadd.f32 %v1778_v15, %v1708_v16  ;;  %v1709_v44 = vadd.f32 %v1704_v20, %v1630_v10  ;;  %v2796_v24 = vpop.f32.mrb[31].mxu0  ;;  %v2804_v25 = vpop.f32.mrb[23].mxu1 }
 0x9d2   : > { %v1786_v1 = vadd.f32 %v1781_v23, %v1709_v44  ;;  %v2622_v23 = vld [vmem:[%s4388_s28] ss:$0 sm:$0xff] }
 0x9d5   : > { %v1842_v26 = vpop.f32.mrb[32].mxu0  ;;  %v1919_v27 = vpop.f32.mrb[24].mxu1 }
 0x9d6   : > { %v1849_v28 = vadd.f32 %v1842_v26, %v1785_v0  ;;  %v2811_v29 = vpop.f32.mrb[33].mxu0  ;;  %v2819_v30 = vpop.f32.mrb[25].mxu1 }
 0x9d7   : > { %v1845_v31 = vpop.f32.mrb[34].mxu0  ;;  %v1922_v32 = vpop.f32.mrb[26].mxu1 }
 0x9d8   : > { %v1926_v33 = vadd.f32 %v1919_v27, %v1849_v28  ;;  %v1850_v34 = vadd.f32 %v1845_v31, %v1786_v1  ;;  %v2812_v35 = vpop.f32.mrb[35].mxu0  ;;  %v2820_v36 = vpop.f32.mrb[27].mxu1 }
 0x9da   : > { %v1927_v37 = vadd.f32 %v1922_v32, %v1850_v34 }
 0x9dd   : > { %v1996_v38 = vpop.f32.mrb[36].mxu0  ;;  %v2073_v39 = vpop.f32.mrb[28].mxu1 }
 0x9de   : > { %v2003_v40 = vadd.f32 %v1996_v38, %v1926_v33  ;;  %v2827_v41 = vpop.f32.mrb[37].mxu0  ;;  %v2835_v42 = vpop.f32.mrb[29].mxu1 }
 0x9df   : > { %v1999_v43 = vpop.f32.mrb[38].mxu0  ;;  %v2076_v45 = vpop.f32.mrb[30].mxu1 }
 0x9e0   : > { %v2080_v46 = vadd.f32 %v2073_v39, %v2003_v40  ;;  %v2004_v47 = vadd.f32 %v1999_v43, %v1927_v37  ;;  %v2828_v48 = vpop.f32.mrb[39].mxu0  ;;  %v2836_v49 = vpop.f32.mrb[31].mxu1 }
 0x9e2   : > { %v2081_v50 = vadd.f32 %v2076_v45, %v2004_v47 }
 0x9e5   : > { %v2145_v51 = vpop.f32.mrb[40].mxu0 }
 0x9e6   : > { %v2152_v54 = vadd.f32 %v2145_v51, %v2080_v46  ;;  %v2843_v52 = vpop.f32.mrb[41].mxu0 }
 0x9e7   : > { %v2148_v55 = vpop.f32.mrb[42].mxu0 }
 0x9e8   : > { %v2161_v56 = vadd.f32 %v2621_v53, %v2152_v54  ;;  %v2153_v57 = vadd.f32 %v2148_v55, %v2081_v50  ;;  %v2844_v58 = vpop.f32.mrb[43].mxu0 }
 0x9ea   : > { %v2163_v59 = vmul.f32 0.33333334, %v2161_v56  ;;  %v2162_v60 = vadd.f32 %v2621_v53, %v2153_v57 }
 0x9ec   : > { %v2167_v61 = vmul.f32 0.044715, %v2163_v59  ;;  %v2164_v62 = vmul.f32 0.33333334, %v2162_v60  ;;  %v2165_v14 = vmul.f32 0.5, %v2163_v59 }
 0x9ee   : > { %v2169_v63 = vmul.f32 %v2167_v61, %v2163_v59  ;;  %v2168_v2 = vmul.f32 0.044715, %v2164_v62  ;;  %v2166_v15 = vmul.f32 0.5, %v2164_v62 }
 0x9f0   : > { %v2171_v3 = vmul.f32 %v2169_v63, %v2163_v59  ;;  %v2170_v4 = vmul.f32 %v2168_v2, %v2164_v62 }
 0x9f2   : > { %v2172_v5 = vmul.f32 %v2170_v4, %v2164_v62  ;;  %v2173_v6 = vadd.f32 %v2171_v3, %v2163_v59 }
 0x9f4   : > { %v2174_v7 = vadd.f32 %v2172_v5, %v2164_v62  ;;  %v2175_v8 = vmul.f32 0.7978846, %v2173_v6 }
 0x9f6   : > { %v2176_v9 = vmul.f32 0.7978846, %v2174_v7  ;;  %3069 = vtanh.f32 %v2175_v8 }
 0x9f8   : > { %3071 = vtanh.f32 %v2176_v9 }
 0xa00   : > { %v3070_v10 = vpop.eup %3069 }
 0xa01   : > { %v2179_v11 = vadd.f32 1.0, %v3070_v10 }
 0xa02   : > { %v3072_v12 = vpop.eup %3071 }
 0xa03   : > { %v2180_v16 = vadd.f32 1.0, %v3072_v12  ;;  %v2181_v17 = vmul.f32 %v2179_v11, %v2165_v14 }
 0xa05   : > { %v2182_v18 = vmul.f32 %v2180_v16, %v2166_v15 }
 0xa07   : > { %v2183_v20 = vpack.c.bf16 %v2182_v18, %v2181_v17 }
 0xa09   : > { %2862 = vmatmul.mubr.bf16.vlgmr.msra.gmra.mrb[32].mxu1 %v2183_v20 }
 0xadc   : > { %v2289_v0 = vpop.f32.mrb[32].mxu1 }
 0xadd   : > { %v2290_v44 = vadd.f32 %v2622_v23, %v2289_v0  ;;  %v2863_v24 = vpop.f32.mrb[33].mxu1 }
 0xade   : > { %v2292_v25 = vpop.f32.mrb[34].mxu1 }
 0xadf   : > { %v2296_v1 = vadd.f32 %v2290_v44, %v4011_v19  ;;  %v2293_v26 = vadd.f32 %v2622_v23, %v2292_v25  ;;  %v2864_v27 = vpop.f32.mrb[35].mxu1 }
 0xae1   : > { %v2298_v28 = vmul.f32 %v2296_v1, %v4006_v13  ;;  %v2297_v29 = vadd.f32 %v2293_v26, %v4016_v22 }
 0xae3   : > { %2300 = vst.msk [vmem:[%s694_s18] sm:$0xff] %vm711_vm0, %v2298_v28  ;;  %v2299_v19 = vmul.f32 %v2297_v29, %v4013_v21 }
 0xae5   : > { %2301 = vst.msk [vmem:[%s694_s18 + $0x8] sm:$0xff] %vm711_vm0, %v2299_v19 }
 0xae6   : > { %3344 = shalt.err (!%p3341_p1)
}
 0xae7   : > { %s3345_s10 = scalar_lea.hbm %s4233_s3, 256  ;;  %s3349_s1 = scalar_lea.hbm %s4390_s29, 512 }
 0xae8   : > { %p3346_p13 = scmp.ne.s32.totalorder %s4233_s3, %s3345_s10  ;;  %p3350_p12 = scmp.lt.u32.totalorder %s4233_s3, %s4390_s29 }
 0xae9   : > { %p3351_p3 = scmp.lt.u32.totalorder %s3349_s1, %s3345_s10  ;;  %p3353_p0 = scmp.lt.u32.totalorder %s3345_s10, %s4233_s3 }
 0xaea   : > { %p3347_p5 = pnand %p3346_p13, %p4391_p8 }
 0xaeb   : > { %p3352_p6 = por %p3351_p3, %p3350_p12 }
 0xaec   : > { %p3348_p9 = pneg %p3347_p5 }
 0xaed   : > { %p3354_p10 = por %p3353_p0, %p3352_p6 }
 0xaef   : > { %p3355_p7 = pnand %p3354_p10, %p3348_p9 }
 0xaf1   : > { %3358 = shalt.err (!%p3355_p7)
}
 0xaf2   : > { %s3438_s4 = smov 128   ;;  %s3439_s14 = smov 8  }
 0xaf3   : > { %2895 = dma.vmem_to_hbm [thread:$0]  (%p4391_p8), %s4235_s25, 256, %s4233_s3, %s2303_s8, %s3438_s4, %s3438_s4, %s3439_s14  }
 0xaf4 PF: > { %s4392_s28 = sld [smem:[#allocation25_spill]]  ;;  %s4393_s23 = sld [smem:[#allocation33_spill]] }
 0xaf5   : > { %p4395_p2 = scmp.ge.s32.totalorder %s3413_s21, 2 }
 0xafa   : > { %s2331_s18 = sand.u32 1, %s4392_s28   ;;  %p4394_p4 = scmp.ne.s32.totalorder %s4393_s23, 0 }
 0xafb   : > { %s2332_s13 = scalar_lea.sflag [#allocation5], %s2331_s18 }
 0xafc   : > { %p2927_p11 = pnand %p4395_p2, %p4394_p4 }
 0xafe   : > { %3396 = dma.done.wait (!%p2927_p11), %s2332_s13, 256  }
 0xaff   : > { %3398 = vsyncadd (!%p2927_p11), %s2332_s13, 4294967040  ;;  %s4396_s21 = sld [smem:[#allocation29_spill]]  ;;  %s4397_s18 = sld [smem:[#allocation26_spill]] }
 0xb00   : > { %s4398_s19 = sld [smem:[#allocation27_spill]]  ;;  %s4399_s20 = sld [smem:[#allocation30_spill]] }
 0xb05   : > { %p34_p1 = scmp.ge.s32.totalorder %s4396_s21, 4  }
 0xb07   :  { %36 = sbr.rel (!%p34_p1) target bundleno = 22 (0x16), region = 187 }
 0xb0e   :  { %2337 = vsyncpa [#allocation4], 1 }
 0xb0f   :  { %2339 = vsyncpa [#allocation4 + $0x1], 1 }
 0xb10   :  { %2340 = vsyncpa [#allocation7], 1 }
 0xb11   :  { %2342 = vsyncpa [#allocation7 + $0x1], 1 }
 0xb12   :  { %2343 = vsyncpa [#allocation10], 1 }
 0xb13   :  { %2344 = vsyncpa [#allocation13], 1 }
 0xb14   :  { %2345 = vsyncpa [#allocation16], 1 }
 0xb15   :  { %2346 = vsyncpa [#allocation5], 1 }
 0xb16   :  { %2348 = vsyncpa [#allocation5 + $0x1], 1 }

</bundles_post_ra>
